<compile_context>
chip_gen: v7x
topology: tpu7x:2x2x1
jax: 0.10.0
libtpu: 0.0.40
codegen_flags: <defaults>
</compile_context>

<pallas_src>
import functools

import numpy as np
import jax
import jax.numpy as jnp
from jax.experimental import pallas as pl
from jax.experimental.pallas import tpu as pltpu

EPS = 1e-5  # torch.nn.InstanceNorm2d default eps


# ----------------------------- in-kernel helpers -----------------------------

def _shift_cols(y, delta):
    """shifted[:, p] = y[:, p + delta] for p + delta in range, 0 outside (static lane shift)."""
    if delta == 0:
        return y
    c, n = y.shape
    z = jnp.zeros((c, abs(delta)), y.dtype)
    if delta > 0:
        return jnp.concatenate([y[:, delta:], z], axis=1)
    return jnp.concatenate([z, y[:, :n + delta]], axis=1)


def _make_col_masks(h, w):
    """Masks (1, h*w) zeroing columns whose 3x3 source column is out of bounds (W power of 2)."""
    hw = h * w
    p = jax.lax.broadcasted_iota(jnp.int32, (1, hw), 1)
    col = jnp.bitwise_and(p, w - 1)
    return {-1: jnp.where(col != 0, 1.0, 0.0).astype(jnp.float32),
            +1: jnp.where(col != (w - 1), 1.0, 0.0).astype(jnp.float32)}


def _conv3x3_in_relu(x, w_all, h, w, col_masks):
    """3x3 conv (pad=1, bias-free) + InstanceNorm2d(affine=False) + ReLU, channel-major.

    x       : (Cin, h*w)  f32
    w_all   : (9*Cout, Cin) bf16, tap-major: row (kh*3+kw)*Cout + co holds W[co, ci, kh, kw]
    returns : (Cout, h*w) f32
    """
    hw = h * w
    cout = w_all.shape[0] // 9
    # One MXU matmul for all 9 taps; result is lane-dense on h*w.
    y_all = jnp.dot(w_all, x.astype(jnp.bfloat16), preferred_element_type=jnp.float32)

    # Zero-padded 3x3 conv == sum over taps of (shifted, column-masked) per-tap products.
    # Row (H-direction) out-of-range is handled exactly by the zero fill of the flat shift.
    acc = None
    for kw in range(3):
        col_acc = None
        for kh in range(3):
            t = kh * 3 + kw
            delta = (kh - 1) * w + (kw - 1)
            yt = _shift_cols(y_all[t * cout:(t + 1) * cout, :], delta)
            col_acc = yt if col_acc is None else col_acc + yt
        if kw != 1:
            col_acc = col_acc * col_masks[kw - 1]
        acc = col_acc if acc is None else acc + col_acc

    # InstanceNorm2d(affine=False): per-channel spatial stats, biased variance, f32.
    inv_n = 1.0 / hw
    mean = jnp.sum(acc, axis=1, keepdims=True) * inv_n
    msq = jnp.sum(acc * acc, axis=1, keepdims=True) * inv_n
    var = jnp.maximum(msq - mean * mean, 0.0)
    y = (acc - mean) * jax.lax.rsqrt(var + EPS)
    return jnp.maximum(y, 0.0)          # ReLU (Dropout2d = identity)


def _maxpool2x2(x, h, w):
    """F.max_pool2d(kernel_size=2) on channel-major (C, h*w) -> (C, (h//2)*(w//2))."""
    hw = h * w
    ho, wo = h // 2, w // 2
    m = x
    for d in (1, w, w + 1):
        m = jnp.maximum(m, _shift_cols(x, d))        # per-position 2x2 window max
    # 0/1 decimation matrix selecting the top-left anchor of every 2x2 window.
    p = jax.lax.broadcasted_iota(jnp.int32, (hw, ho * wo), 0)
    q = jax.lax.broadcasted_iota(jnp.int32, (hw, ho * wo), 1)
    p_row = jnp.right_shift(p, (w - 1).bit_length() - 0 if False else w.bit_length() - 1)
    p_col = jnp.bitwise_and(p, w - 1)
    q_row = jnp.right_shift(q, wo.bit_length() - 1)
    q_col = jnp.bitwise_and(q, wo - 1)
    hit = jnp.logical_and(p_row == 2 * q_row, p_col == 2 * q_col)
    sel = jnp.where(hit, 1.0, 0.0).astype(jnp.bfloat16)
    return jnp.dot(m.astype(jnp.bfloat16), sel, preferred_element_type=jnp.float32)


# ----------------------------- the fused UNet kernel -----------------------------

def _unet_kernel(*refs, L, H, W):
    """One sample per grid step.  Ref order:
       x, down(w1,w2)*L, mid(w1,w2), up(w1,w2)*L, upsample-mat*L, head_w, head_b, out."""
    x_ref = refs[0]
    o_ref = refs[-1]
    wr = list(refs[1:-1])
    down_w = [(wr[2 * i], wr[2 * i + 1]) for i in range(L)]
    mid_w = (wr[2 * L], wr[2 * L + 1])
    up_w = [(wr[2 * L + 2 + 2 * i], wr[2 * L + 3 + 2 * i]) for i in range(L)]
    up_m = wr[4 * L + 2: 5 * L + 2]
    wh_ref, bh_ref = wr[5 * L + 2], wr[5 * L + 3]

    mask_cache = {}

    def conv_block(a, w1_ref, w2_ref, h, w):
        if (h, w) not in mask_cache:
            mask_cache[(h, w)] = _make_col_masks(h, w)
        cm = mask_cache[(h, w)]
        a = _conv3x3_in_relu(a, w1_ref[...], h, w, cm)
        a = _conv3x3_in_relu(a, w2_ref[...], h, w, cm)
        return a

    cin = x_ref.shape[1]
    out = x_ref[...].reshape(cin, H * W)               # (Cin, H*W) f32, channel-major

    # ---- encoder ----
    h, w = H, W
    skips = []
    for (w1, w2) in down_w:
        s = conv_block(out, w1, w2, h, w)              # ConvBlock (variant=None)
        skips.append((s, h, w))
        out = _maxpool2x2(s, h, w)                     # fused F.max_pool2d(2)
        h, w = h // 2, w // 2

    # ---- bottleneck ----
    out = conv_block(out, mid_w[0], mid_w[1], h, w)

    # ---- decoder ----
    for i in range(L):
        s, hs, ws = skips.pop()
        # bilinear upsample (align_corners=False) as one lane-dense matmul.
        out = jnp.dot(out.astype(jnp.bfloat16), up_m[i][...],
                      preferred_element_type=jnp.float32)          # (C, hs*ws)
        out = jnp.concatenate([out, s], axis=0)        # torch.cat([output, skip], dim=1)
        out = conv_block(out, up_w[i][0], up_w[i][1], hs, ws)

    # ---- folded 1x1 head (three chained 1x1 convs, no nonlinearity) ----
    y = jnp.dot(wh_ref[...], out.astype(jnp.bfloat16),
                preferred_element_type=jnp.float32) + bh_ref[...]
    o_ref[...] = y.reshape(o_ref.shape)                # lane-dense (1, Cout, H*W) store


# ----------------------------- host-side helpers -----------------------------

def _interp_matrix(in_size, out_size):
    """Row-interp matrix matching torch F.interpolate(mode='bilinear', align_corners=False)."""
    scale = in_size / out_size
    m = np.zeros((out_size, in_size), dtype=np.float32)
    for d in range(out_size):
        src = max((d + 0.5) * scale - 0.5, 0.0)
        i0 = min(int(np.floor(src)), in_size - 1)
        i1 = min(i0 + 1, in_size - 1)
        frac = src - i0
        m[d, i0] += 1.0 - frac
        m[d, i1] += frac
    return m


def init_unet_params(key, in_chans, out_chans, chans, num_pool_layers):
    keys = iter(jax.random.split(key, 64))

    def conv3x3(cin, cout):
        # tap-major (9*Cout, Cin) bf16 layout consumed by the kernel.
        # Conv bias omitted: InstanceNorm2d(affine=False) cancels a per-channel bias exactly.
        w = jax.random.normal(next(keys), (3, 3, cout, cin), jnp.float32) / np.sqrt(9 * cin)
        return w.reshape(9 * cout, cin).astype(jnp.bfloat16)

    def block(cin, cout):                              # ConvBlock (variant=None)
        return (conv3x3(cin, cout), conv3x3(cout, cout))

    params = {'down': [block(in_chans, chans)]}
    ch = chans
    for _ in range(num_pool_layers - 1):
        params['down'].append(block(ch, ch * 2))
        ch *= 2
    params['mid'] = block(ch, ch)
    params['up'] = []
    for _ in range(num_pool_layers - 1):
        params['up'].append(block(ch * 2, ch // 2))
        ch //= 2
    params['up'].append(block(ch * 2, ch))

    def conv1x1(cin, cout):
        a = jax.random.normal(next(keys), (cout, cin), jnp.float32) / np.sqrt(cin)
        b = 0.01 * jax.random.normal(next(keys), (cout, 1), jnp.float32)
        return a, b

    params['head'] = (conv1x1(ch, ch // 2),
                      conv1x1(ch // 2, out_chans),
                      conv1x1(out_chans, out_chans))
    return params


# ----------------------------- model forward -----------------------------

def unet_forward(x_nchw, params):
    """Mirrors UnetModel.forward.  Input/output NCHW; kernel works channel-major (C, H*W)."""
    N, Cin, H, W = x_nchw.shape
    L = len(params['down'])
    assert (W & (W - 1)) == 0 and (H & (H - 1)) == 0, "power-of-two spatial dims assumed"
    assert H % (1 << L) == 0 and W % (1 << L) == 0
    HW = H * W
    x = x_nchw.reshape(N, Cin, HW).astype(jnp.float32)

    conv_ws = []
    for (w1, w2) in params['down']:
        conv_ws += [w1, w2]
    conv_ws += list(params['mid'])
    for (w1, w2) in params['up']:
        conv_ws += [w1, w2]

    # Upsample matrices (transposed so the in-kernel matmul output is lane-dense on H*W).
    up_mats = []
    for i in range(L):
        h_in, w_in = H >> (L - i), W >> (L - i)
        m = np.kron(_interp_matrix(h_in, 2 * h_in), _interp_matrix(w_in, 2 * w_in))
        up_mats.append(jnp.asarray(m.T, dtype=jnp.bfloat16))   # exact in bf16 for 2x scaling

    # Fold the three 1x1 head convs (no nonlinearity between them) into one matmul + bias.
    (a1, b1), (a2, b2), (a3, b3) = params['head']
    A = (a3 @ a2 @ a1).astype(jnp.bfloat16)                    # (Cout, ch)
    b = a3 @ (a2 @ b1 + b2) + b3                               # (Cout, 1) f32
    Cout = A.shape[0]

    inputs = [x] + conv_ws + up_mats + [A, b]
    in_specs = [pl.BlockSpec((1, Cin, HW), lambda n: (n, 0, 0))]
    in_specs += [pl.BlockSpec(a.shape, lambda n: (0, 0)) for a in inputs[1:]]

    out = pl.pallas_call(
        functools.partial(_unet_kernel, L=L, H=H, W=W),
        out_shape=jax.ShapeDtypeStruct((N, Cout, HW), jnp.float32),
        grid=(N,),
        in_specs=in_specs,
        out_specs=pl.BlockSpec((1, Cout, HW), lambda n: (n, 0, 0)),
        compiler_params=pltpu.CompilerParams(dimension_semantics=("parallel",)),
    )(*inputs)
    return out.reshape(N, Cout, H, W)


# ----------------------------- main -----------------------------

if __name__ == "__main__":
    # args: in_chans=4, out_chans=4, chans=8, num_pool_layers=2, drop_prob=0.0
    in_chans, out_chans, chans, num_pool = 4, 4, 8, 2
    N, H, W = 2, 16, 16

    key = jax.random.PRNGKey(0)
    kparam, kx = jax.random.split(key)
    params = init_unet_params(kparam, in_chans, out_chans, chans, num_pool)
    x = jax.random.normal(kx, (N, in_chans, H, W), jnp.float32)

    fwd = jax.jit(unet_forward)
    y = jax.block_until_ready(fwd(x, params))

    assert y.shape == (N, out_chans, H, W), y.shape
    assert bool(jnp.all(jnp.isfinite(y))), "non-finite output"
    print("KERNEL_OK")
</pallas_src>

<mosaic_0001>
module attributes {stable_mosaic.version = 11 : i64} {
  func.func @_unet_kernel(%arg0: i32, %arg1: memref<1x4x256xf32, #tpu.memory_space<vmem>>, %arg2: memref<72x4xbf16, #tpu.memory_space<vmem>>, %arg3: memref<72x8xbf16, #tpu.memory_space<vmem>>, %arg4: memref<144x8xbf16, #tpu.memory_space<vmem>>, %arg5: memref<144x16xbf16, #tpu.memory_space<vmem>>, %arg6: memref<144x16xbf16, #tpu.memory_space<vmem>>, %arg7: memref<144x16xbf16, #tpu.memory_space<vmem>>, %arg8: memref<72x32xbf16, #tpu.memory_space<vmem>>, %arg9: memref<72x8xbf16, #tpu.memory_space<vmem>>, %arg10: memref<72x16xbf16, #tpu.memory_space<vmem>>, %arg11: memref<72x8xbf16, #tpu.memory_space<vmem>>, %arg12: memref<16x64xbf16, #tpu.memory_space<vmem>>, %arg13: memref<64x256xbf16, #tpu.memory_space<vmem>>, %arg14: memref<4x8xbf16, #tpu.memory_space<vmem>>, %arg15: memref<4x1xf32, #tpu.memory_space<vmem>>, %arg16: memref<1x4x256xf32, #tpu.memory_space<vmem>>) attributes {dimension_semantics = [#tpu.dimension_semantics<parallel>], iteration_bounds = array<i64: 2>, scalar_prefetch = 0 : i64, scratch_operands = 0 : i64, tpu.core_type = #tpu.core_type<tc>, window_params = [{transform_indices = @transform_0, window_bounds = array<i64: 1, 4, 256>}, {pipeline_mode = #tpu.pipeline_mode<synchronous>, transform_indices = @transform_1, window_bounds = array<i64: 72, 4>}, {pipeline_mode = #tpu.pipeline_mode<synchronous>, transform_indices = @transform_2, window_bounds = array<i64: 72, 8>}, {pipeline_mode = #tpu.pipeline_mode<synchronous>, transform_indices = @transform_3, window_bounds = array<i64: 144, 8>}, {pipeline_mode = #tpu.pipeline_mode<synchronous>, transform_indices = @transform_4, window_bounds = array<i64: 144, 16>}, {pipeline_mode = #tpu.pipeline_mode<synchronous>, transform_indices = @transform_5, window_bounds = array<i64: 144, 16>}, {pipeline_mode = #tpu.pipeline_mode<synchronous>, transform_indices = @transform_6, window_bounds = array<i64: 144, 16>}, {pipeline_mode = #tpu.pipeline_mode<synchronous>, transform_indices = @transform_7, window_bounds = array<i64: 72, 32>}, {pipeline_mode = #tpu.pipeline_mode<synchronous>, transform_indices = @transform_8, window_bounds = array<i64: 72, 8>}, {pipeline_mode = #tpu.pipeline_mode<synchronous>, transform_indices = @transform_9, window_bounds = array<i64: 72, 16>}, {pipeline_mode = #tpu.pipeline_mode<synchronous>, transform_indices = @transform_10, window_bounds = array<i64: 72, 8>}, {pipeline_mode = #tpu.pipeline_mode<synchronous>, transform_indices = @transform_11, window_bounds = array<i64: 16, 64>}, {pipeline_mode = #tpu.pipeline_mode<synchronous>, transform_indices = @transform_12, window_bounds = array<i64: 64, 256>}, {pipeline_mode = #tpu.pipeline_mode<synchronous>, transform_indices = @transform_13, window_bounds = array<i64: 4, 8>}, {pipeline_mode = #tpu.pipeline_mode<synchronous>, transform_indices = @transform_14, window_bounds = array<i64: 4, 1>}, {transform_indices = @transform_15, window_bounds = array<i64: 1, 4, 256>}]} {
    %c0 = arith.constant 0 : index
    %c0_0 = arith.constant 0 : index
    %c0_1 = arith.constant 0 : index
    %0 = vector.load %arg1[%c0, %c0_0, %c0_1] : memref<1x4x256xf32, #tpu.memory_space<vmem>>, vector<1x4x256xf32>
    %1 = vector.shape_cast %0 : vector<1x4x256xf32> to vector<4x256xf32>
    %2 = tpu.iota {dimensions = array<i32: 1>} : vector<1x256xi32>
    %c15_i32 = arith.constant 15 : i32
    %3 = vector.broadcast %c15_i32 : i32 to vector<1x256xi32>
    %4 = arith.andi %2, %3 : vector<1x256xi32>
    %c0_i32 = arith.constant 0 : i32
    %5 = vector.broadcast %c0_i32 : i32 to vector<1x256xi32>
    %6 = arith.cmpi ne, %4, %5 : vector<1x256xi32>
    %cst = arith.constant 1.000000e+00 : f32
    %cst_2 = arith.constant 0.000000e+00 : f32
    %7 = vector.broadcast %cst : f32 to vector<1x256xf32>
    %8 = vector.broadcast %cst_2 : f32 to vector<1x256xf32>
    %9 = arith.select %6, %7, %8 : vector<1x256xi1>, vector<1x256xf32>
    %c15_i32_3 = arith.constant 15 : i32
    %10 = vector.broadcast %c15_i32_3 : i32 to vector<1x256xi32>
    %11 = arith.cmpi ne, %4, %10 : vector<1x256xi32>
    %cst_4 = arith.constant 1.000000e+00 : f32
    %cst_5 = arith.constant 0.000000e+00 : f32
    %12 = vector.broadcast %cst_4 : f32 to vector<1x256xf32>
    %13 = vector.broadcast %cst_5 : f32 to vector<1x256xf32>
    %14 = arith.select %11, %12, %13 : vector<1x256xi1>, vector<1x256xf32>
    %c0_6 = arith.constant 0 : index
    %c0_7 = arith.constant 0 : index
    %15 = vector.load %arg2[%c0_6, %c0_7] : memref<72x4xbf16, #tpu.memory_space<vmem>>, vector<72x4xbf16>
    %16 = arith.truncf %1 : vector<4x256xf32> to vector<4x256xbf16>
    %cst_8 = arith.constant dense<0.000000e+00> : vector<72x256xf32>
    %17 = tpu.matmul %15, %16, %cst_8 {dimension_numbers = #tpu.dot_dimension_numbers<[1], [0], [0], [1], [0, 0, 1, 1], [], []>} : vector<72x4xbf16>, vector<4x256xbf16>, vector<72x256xf32> -> vector<72x256xf32>
    %18 = vector.extract_strided_slice %17 {offsets = [0, 0], sizes = [8, 256], strides = [1, 1]} : vector<72x256xf32> to vector<8x256xf32>
    %cst_9 = arith.constant 0.000000e+00 : f32
    %19 = vector.broadcast %cst_9 : f32 to vector<8x17xf32>
    %20 = vector.extract_strided_slice %18 {offsets = [0, 0], sizes = [8, 239], strides = [1, 1]} : vector<8x256xf32> to vector<8x239xf32>
    %21 = tpu.concatenate %19, %20 in 1 : vector<8x17xf32>, vector<8x239xf32> -> vector<8x256xf32>
    %22 = vector.extract_strided_slice %17 {offsets = [24, 0], sizes = [8, 256], strides = [1, 1]} : vector<72x256xf32> to vector<8x256xf32>
    %cst_10 = arith.constant 0.000000e+00 : f32
    %23 = vector.broadcast %cst_10 : f32 to vector<8x1xf32>
    %24 = vector.extract_strided_slice %22 {offsets = [0, 0], sizes = [8, 255], strides = [1, 1]} : vector<8x256xf32> to vector<8x255xf32>
    %25 = tpu.concatenate %23, %24 in 1 : vector<8x1xf32>, vector<8x255xf32> -> vector<8x256xf32>
    %26 = arith.addf %21, %25 : vector<8x256xf32>
    %27 = vector.extract_strided_slice %17 {offsets = [48, 0], sizes = [8, 256], strides = [1, 1]} : vector<72x256xf32> to vector<8x256xf32>
    %cst_11 = arith.constant 0.000000e+00 : f32
    %28 = vector.broadcast %cst_11 : f32 to vector<8x15xf32>
    %29 = vector.extract_strided_slice %27 {offsets = [0, 15], sizes = [8, 241], strides = [1, 1]} : vector<8x256xf32> to vector<8x241xf32>
    %30 = tpu.concatenate %29, %28 in 1 : vector<8x241xf32>, vector<8x15xf32> -> vector<8x256xf32>
    %31 = arith.addf %26, %30 : vector<8x256xf32>
    %32 = vector.broadcast %9 : vector<1x256xf32> to vector<8x256xf32>
    %33 = arith.mulf %31, %32 : vector<8x256xf32>
    %34 = vector.extract_strided_slice %17 {offsets = [8, 0], sizes = [8, 256], strides = [1, 1]} : vector<72x256xf32> to vector<8x256xf32>
    %cst_12 = arith.constant 0.000000e+00 : f32
    %35 = vector.broadcast %cst_12 : f32 to vector<8x16xf32>
    %36 = vector.extract_strided_slice %34 {offsets = [0, 0], sizes = [8, 240], strides = [1, 1]} : vector<8x256xf32> to vector<8x240xf32>
    %37 = tpu.concatenate %35, %36 in 1 : vector<8x16xf32>, vector<8x240xf32> -> vector<8x256xf32>
    %38 = vector.extract_strided_slice %17 {offsets = [32, 0], sizes = [8, 256], strides = [1, 1]} : vector<72x256xf32> to vector<8x256xf32>
    %39 = arith.addf %37, %38 : vector<8x256xf32>
    %40 = vector.extract_strided_slice %17 {offsets = [56, 0], sizes = [8, 256], strides = [1, 1]} : vector<72x256xf32> to vector<8x256xf32>
    %cst_13 = arith.constant 0.000000e+00 : f32
    %41 = vector.broadcast %cst_13 : f32 to vector<8x16xf32>
    %42 = vector.extract_strided_slice %40 {offsets = [0, 16], sizes = [8, 240], strides = [1, 1]} : vector<8x256xf32> to vector<8x240xf32>
    %43 = tpu.concatenate %42, %41 in 1 : vector<8x240xf32>, vector<8x16xf32> -> vector<8x256xf32>
    %44 = arith.addf %39, %43 : vector<8x256xf32>
    %45 = arith.addf %33, %44 : vector<8x256xf32>
    %46 = vector.extract_strided_slice %17 {offsets = [16, 0], sizes = [8, 256], strides = [1, 1]} : vector<72x256xf32> to vector<8x256xf32>
    %cst_14 = arith.constant 0.000000e+00 : f32
    %47 = vector.broadcast %cst_14 : f32 to vector<8x15xf32>
    %48 = vector.extract_strided_slice %46 {offsets = [0, 0], sizes = [8, 241], strides = [1, 1]} : vector<8x256xf32> to vector<8x241xf32>
    %49 = tpu.concatenate %47, %48 in 1 : vector<8x15xf32>, vector<8x241xf32> -> vector<8x256xf32>
    %50 = vector.extract_strided_slice %17 {offsets = [40, 0], sizes = [8, 256], strides = [1, 1]} : vector<72x256xf32> to vector<8x256xf32>
    %cst_15 = arith.constant 0.000000e+00 : f32
    %51 = vector.broadcast %cst_15 : f32 to vector<8x1xf32>
    %52 = vector.extract_strided_slice %50 {offsets = [0, 1], sizes = [8, 255], strides = [1, 1]} : vector<8x256xf32> to vector<8x255xf32>
    %53 = tpu.concatenate %52, %51 in 1 : vector<8x255xf32>, vector<8x1xf32> -> vector<8x256xf32>
    %54 = arith.addf %49, %53 : vector<8x256xf32>
    %55 = vector.extract_strided_slice %17 {offsets = [64, 0], sizes = [8, 256], strides = [1, 1]} : vector<72x256xf32> to vector<8x256xf32>
    %cst_16 = arith.constant 0.000000e+00 : f32
    %56 = vector.broadcast %cst_16 : f32 to vector<8x17xf32>
    %57 = vector.extract_strided_slice %55 {offsets = [0, 17], sizes = [8, 239], strides = [1, 1]} : vector<8x256xf32> to vector<8x239xf32>
    %58 = tpu.concatenate %57, %56 in 1 : vector<8x239xf32>, vector<8x17xf32> -> vector<8x256xf32>
    %59 = arith.addf %54, %58 : vector<8x256xf32>
    %60 = vector.broadcast %14 : vector<1x256xf32> to vector<8x256xf32>
    %61 = arith.mulf %59, %60 : vector<8x256xf32>
    %62 = arith.addf %45, %61 : vector<8x256xf32>
    %cst_17 = arith.constant dense<0.000000e+00> : vector<8xf32>
    %63 = vector.multi_reduction <add>, %62, %cst_17 [1] : vector<8x256xf32> to vector<8xf32>
    %64 = vector.shape_cast %63 : vector<8xf32> to vector<8x1xf32>
    %cst_18 = arith.constant 3.906250e-03 : f32
    %65 = vector.broadcast %cst_18 : f32 to vector<8x1xf32>
    %66 = arith.mulf %64, %65 : vector<8x1xf32>
    %67 = arith.mulf %62, %62 : vector<8x256xf32>
    %cst_19 = arith.constant dense<0.000000e+00> : vector<8xf32>
    %68 = vector.multi_reduction <add>, %67, %cst_19 [1] : vector<8x256xf32> to vector<8xf32>
    %69 = vector.shape_cast %68 : vector<8xf32> to vector<8x1xf32>
    %cst_20 = arith.constant 3.906250e-03 : f32
    %70 = vector.broadcast %cst_20 : f32 to vector<8x1xf32>
    %71 = arith.mulf %69, %70 : vector<8x1xf32>
    %72 = arith.mulf %66, %66 : vector<8x1xf32>
    %73 = arith.subf %71, %72 : vector<8x1xf32>
    %cst_21 = arith.constant 0.000000e+00 : f32
    %74 = vector.broadcast %cst_21 : f32 to vector<8x1xf32>
    %75 = arith.maximumf %73, %74 : vector<8x1xf32>
    %76 = vector.broadcast %66 : vector<8x1xf32> to vector<8x256xf32>
    %77 = arith.subf %62, %76 : vector<8x256xf32>
    %cst_22 = arith.constant 9.99999974E-6 : f32
    %78 = vector.broadcast %cst_22 : f32 to vector<8x1xf32>
    %79 = arith.addf %75, %78 : vector<8x1xf32>
    %80 = math.rsqrt %79 : vector<8x1xf32>
    %81 = vector.broadcast %80 : vector<8x1xf32> to vector<8x256xf32>
    %82 = arith.mulf %77, %81 : vector<8x256xf32>
    %cst_23 = arith.constant 0.000000e+00 : f32
    %83 = vector.broadcast %cst_23 : f32 to vector<8x256xf32>
    %84 = arith.maximumf %82, %83 : vector<8x256xf32>
    %c0_24 = arith.constant 0 : index
    %c0_25 = arith.constant 0 : index
    %85 = vector.load %arg3[%c0_24, %c0_25] : memref<72x8xbf16, #tpu.memory_space<vmem>>, vector<72x8xbf16>
    %86 = arith.truncf %84 : vector<8x256xf32> to vector<8x256xbf16>
    %cst_26 = arith.constant dense<0.000000e+00> : vector<72x256xf32>
    %87 = tpu.matmul %85, %86, %cst_26 {dimension_numbers = #tpu.dot_dimension_numbers<[1], [0], [0], [1], [0, 0, 1, 1], [], []>} : vector<72x8xbf16>, vector<8x256xbf16>, vector<72x256xf32> -> vector<72x256xf32>
    %88 = vector.extract_strided_slice %87 {offsets = [0, 0], sizes = [8, 256], strides = [1, 1]} : vector<72x256xf32> to vector<8x256xf32>
    %cst_27 = arith.constant 0.000000e+00 : f32
    %89 = vector.broadcast %cst_27 : f32 to vector<8x17xf32>
    %90 = vector.extract_strided_slice %88 {offsets = [0, 0], sizes = [8, 239], strides = [1, 1]} : vector<8x256xf32> to vector<8x239xf32>
    %91 = tpu.concatenate %89, %90 in 1 : vector<8x17xf32>, vector<8x239xf32> -> vector<8x256xf32>
    %92 = vector.extract_strided_slice %87 {offsets = [24, 0], sizes = [8, 256], strides = [1, 1]} : vector<72x256xf32> to vector<8x256xf32>
    %cst_28 = arith.constant 0.000000e+00 : f32
    %93 = vector.broadcast %cst_28 : f32 to vector<8x1xf32>
    %94 = vector.extract_strided_slice %92 {offsets = [0, 0], sizes = [8, 255], strides = [1, 1]} : vector<8x256xf32> to vector<8x255xf32>
    %95 = tpu.concatenate %93, %94 in 1 : vector<8x1xf32>, vector<8x255xf32> -> vector<8x256xf32>
    %96 = arith.addf %91, %95 : vector<8x256xf32>
    %97 = vector.extract_strided_slice %87 {offsets = [48, 0], sizes = [8, 256], strides = [1, 1]} : vector<72x256xf32> to vector<8x256xf32>
    %cst_29 = arith.constant 0.000000e+00 : f32
    %98 = vector.broadcast %cst_29 : f32 to vector<8x15xf32>
    %99 = vector.extract_strided_slice %97 {offsets = [0, 15], sizes = [8, 241], strides = [1, 1]} : vector<8x256xf32> to vector<8x241xf32>
    %100 = tpu.concatenate %99, %98 in 1 : vector<8x241xf32>, vector<8x15xf32> -> vector<8x256xf32>
    %101 = arith.addf %96, %100 : vector<8x256xf32>
    %102 = vector.broadcast %9 : vector<1x256xf32> to vector<8x256xf32>
    %103 = arith.mulf %101, %102 : vector<8x256xf32>
    %104 = vector.extract_strided_slice %87 {offsets = [8, 0], sizes = [8, 256], strides = [1, 1]} : vector<72x256xf32> to vector<8x256xf32>
    %cst_30 = arith.constant 0.000000e+00 : f32
    %105 = vector.broadcast %cst_30 : f32 to vector<8x16xf32>
    %106 = vector.extract_strided_slice %104 {offsets = [0, 0], sizes = [8, 240], strides = [1, 1]} : vector<8x256xf32> to vector<8x240xf32>
    %107 = tpu.concatenate %105, %106 in 1 : vector<8x16xf32>, vector<8x240xf32> -> vector<8x256xf32>
    %108 = vector.extract_strided_slice %87 {offsets = [32, 0], sizes = [8, 256], strides = [1, 1]} : vector<72x256xf32> to vector<8x256xf32>
    %109 = arith.addf %107, %108 : vector<8x256xf32>
    %110 = vector.extract_strided_slice %87 {offsets = [56, 0], sizes = [8, 256], strides = [1, 1]} : vector<72x256xf32> to vector<8x256xf32>
    %cst_31 = arith.constant 0.000000e+00 : f32
    %111 = vector.broadcast %cst_31 : f32 to vector<8x16xf32>
    %112 = vector.extract_strided_slice %110 {offsets = [0, 16], sizes = [8, 240], strides = [1, 1]} : vector<8x256xf32> to vector<8x240xf32>
    %113 = tpu.concatenate %112, %111 in 1 : vector<8x240xf32>, vector<8x16xf32> -> vector<8x256xf32>
    %114 = arith.addf %109, %113 : vector<8x256xf32>
    %115 = arith.addf %103, %114 : vector<8x256xf32>
    %116 = vector.extract_strided_slice %87 {offsets = [16, 0], sizes = [8, 256], strides = [1, 1]} : vector<72x256xf32> to vector<8x256xf32>
    %cst_32 = arith.constant 0.000000e+00 : f32
    %117 = vector.broadcast %cst_32 : f32 to vector<8x15xf32>
    %118 = vector.extract_strided_slice %116 {offsets = [0, 0], sizes = [8, 241], strides = [1, 1]} : vector<8x256xf32> to vector<8x241xf32>
    %119 = tpu.concatenate %117, %118 in 1 : vector<8x15xf32>, vector<8x241xf32> -> vector<8x256xf32>
    %120 = vector.extract_strided_slice %87 {offsets = [40, 0], sizes = [8, 256], strides = [1, 1]} : vector<72x256xf32> to vector<8x256xf32>
    %cst_33 = arith.constant 0.000000e+00 : f32
    %121 = vector.broadcast %cst_33 : f32 to vector<8x1xf32>
    %122 = vector.extract_strided_slice %120 {offsets = [0, 1], sizes = [8, 255], strides = [1, 1]} : vector<8x256xf32> to vector<8x255xf32>
    %123 = tpu.concatenate %122, %121 in 1 : vector<8x255xf32>, vector<8x1xf32> -> vector<8x256xf32>
    %124 = arith.addf %119, %123 : vector<8x256xf32>
    %125 = vector.extract_strided_slice %87 {offsets = [64, 0], sizes = [8, 256], strides = [1, 1]} : vector<72x256xf32> to vector<8x256xf32>
    %cst_34 = arith.constant 0.000000e+00 : f32
    %126 = vector.broadcast %cst_34 : f32 to vector<8x17xf32>
    %127 = vector.extract_strided_slice %125 {offsets = [0, 17], sizes = [8, 239], strides = [1, 1]} : vector<8x256xf32> to vector<8x239xf32>
    %128 = tpu.concatenate %127, %126 in 1 : vector<8x239xf32>, vector<8x17xf32> -> vector<8x256xf32>
    %129 = arith.addf %124, %128 : vector<8x256xf32>
    %130 = vector.broadcast %14 : vector<1x256xf32> to vector<8x256xf32>
    %131 = arith.mulf %129, %130 : vector<8x256xf32>
    %132 = arith.addf %115, %131 : vector<8x256xf32>
    %cst_35 = arith.constant dense<0.000000e+00> : vector<8xf32>
    %133 = vector.multi_reduction <add>, %132, %cst_35 [1] : vector<8x256xf32> to vector<8xf32>
    %134 = vector.shape_cast %133 : vector<8xf32> to vector<8x1xf32>
    %cst_36 = arith.constant 3.906250e-03 : f32
    %135 = vector.broadcast %cst_36 : f32 to vector<8x1xf32>
    %136 = arith.mulf %134, %135 : vector<8x1xf32>
    %137 = arith.mulf %132, %132 : vector<8x256xf32>
    %cst_37 = arith.constant dense<0.000000e+00> : vector<8xf32>
    %138 = vector.multi_reduction <add>, %137, %cst_37 [1] : vector<8x256xf32> to vector<8xf32>
    %139 = vector.shape_cast %138 : vector<8xf32> to vector<8x1xf32>
    %cst_38 = arith.constant 3.906250e-03 : f32
    %140 = vector.broadcast %cst_38 : f32 to vector<8x1xf32>
    %141 = arith.mulf %139, %140 : vector<8x1xf32>
    %142 = arith.mulf %136, %136 : vector<8x1xf32>
    %143 = arith.subf %141, %142 : vector<8x1xf32>
    %cst_39 = arith.constant 0.000000e+00 : f32
    %144 = vector.broadcast %cst_39 : f32 to vector<8x1xf32>
    %145 = arith.maximumf %143, %144 : vector<8x1xf32>
    %146 = vector.broadcast %136 : vector<8x1xf32> to vector<8x256xf32>
    %147 = arith.subf %132, %146 : vector<8x256xf32>
    %cst_40 = arith.constant 9.99999974E-6 : f32
    %148 = vector.broadcast %cst_40 : f32 to vector<8x1xf32>
    %149 = arith.addf %145, %148 : vector<8x1xf32>
    %150 = math.rsqrt %149 : vector<8x1xf32>
    %151 = vector.broadcast %150 : vector<8x1xf32> to vector<8x256xf32>
    %152 = arith.mulf %147, %151 : vector<8x256xf32>
    %cst_41 = arith.constant 0.000000e+00 : f32
    %153 = vector.broadcast %cst_41 : f32 to vector<8x256xf32>
    %154 = arith.maximumf %152, %153 : vector<8x256xf32>
    %cst_42 = arith.constant 0.000000e+00 : f32
    %155 = vector.broadcast %cst_42 : f32 to vector<8x1xf32>
    %156 = vector.extract_strided_slice %154 {offsets = [0, 1], sizes = [8, 255], strides = [1, 1]} : vector<8x256xf32> to vector<8x255xf32>
    %157 = tpu.concatenate %156, %155 in 1 : vector<8x255xf32>, vector<8x1xf32> -> vector<8x256xf32>
    %158 = arith.maximumf %154, %157 : vector<8x256xf32>
    %cst_43 = arith.constant 0.000000e+00 : f32
    %159 = vector.broadcast %cst_43 : f32 to vector<8x16xf32>
    %160 = vector.extract_strided_slice %154 {offsets = [0, 16], sizes = [8, 240], strides = [1, 1]} : vector<8x256xf32> to vector<8x240xf32>
    %161 = tpu.concatenate %160, %159 in 1 : vector<8x240xf32>, vector<8x16xf32> -> vector<8x256xf32>
    %162 = arith.maximumf %158, %161 : vector<8x256xf32>
    %cst_44 = arith.constant 0.000000e+00 : f32
    %163 = vector.broadcast %cst_44 : f32 to vector<8x17xf32>
    %164 = vector.extract_strided_slice %154 {offsets = [0, 17], sizes = [8, 239], strides = [1, 1]} : vector<8x256xf32> to vector<8x239xf32>
    %165 = tpu.concatenate %164, %163 in 1 : vector<8x239xf32>, vector<8x17xf32> -> vector<8x256xf32>
    %166 = arith.maximumf %162, %165 : vector<8x256xf32>
    %167 = tpu.iota {dimensions = array<i32: 0>} : vector<256x64xi32>
    %168 = tpu.iota {dimensions = array<i32: 1>} : vector<256x64xi32>
    %c4_i32 = arith.constant 4 : i32
    %169 = vector.broadcast %c4_i32 : i32 to vector<256x64xi32>
    %170 = arith.shrsi %167, %169 : vector<256x64xi32>
    %c15_i32_45 = arith.constant 15 : i32
    %171 = vector.broadcast %c15_i32_45 : i32 to vector<256x64xi32>
    %172 = arith.andi %167, %171 : vector<256x64xi32>
    %c3_i32 = arith.constant 3 : i32
    %173 = vector.broadcast %c3_i32 : i32 to vector<256x64xi32>
    %174 = arith.shrsi %168, %173 : vector<256x64xi32>
    %c7_i32 = arith.constant 7 : i32
    %175 = vector.broadcast %c7_i32 : i32 to vector<256x64xi32>
    %176 = arith.andi %168, %175 : vector<256x64xi32>
    %c2_i32 = arith.constant 2 : i32
    %177 = vector.broadcast %c2_i32 : i32 to vector<256x64xi32>
    %178 = arith.muli %177, %174 : vector<256x64xi32>
    %179 = arith.cmpi eq, %170, %178 : vector<256x64xi32>
    %c2_i32_46 = arith.constant 2 : i32
    %180 = vector.broadcast %c2_i32_46 : i32 to vector<256x64xi32>
    %181 = arith.muli %180, %176 : vector<256x64xi32>
    %182 = arith.cmpi eq, %172, %181 : vector<256x64xi32>
    %183 = arith.andi %179, %182 : vector<256x64xi1>
    %cst_47 = arith.constant 1.000000e+00 : f32
    %cst_48 = arith.constant 0.000000e+00 : f32
    %184 = vector.broadcast %cst_47 : f32 to vector<256x64xf32>
    %185 = vector.broadcast %cst_48 : f32 to vector<256x64xf32>
    %186 = arith.select %183, %184, %185 : vector<256x64xi1>, vector<256x64xf32>
    %187 = arith.truncf %186 : vector<256x64xf32> to vector<256x64xbf16>
    %188 = arith.truncf %166 : vector<8x256xf32> to vector<8x256xbf16>
    %cst_49 = arith.constant dense<0.000000e+00> : vector<8x64xf32>
    %189 = tpu.matmul %188, %187, %cst_49 {dimension_numbers = #tpu.dot_dimension_numbers<[1], [0], [0], [1], [0, 0, 1, 1], [], []>} : vector<8x256xbf16>, vector<256x64xbf16>, vector<8x64xf32> -> vector<8x64xf32>
    %190 = tpu.iota {dimensions = array<i32: 1>} : vector<1x64xi32>
    %c7_i32_50 = arith.constant 7 : i32
    %191 = vector.broadcast %c7_i32_50 : i32 to vector<1x64xi32>
    %192 = arith.andi %190, %191 : vector<1x64xi32>
    %c0_i32_51 = arith.constant 0 : i32
    %193 = vector.broadcast %c0_i32_51 : i32 to vector<1x64xi32>
    %194 = arith.cmpi ne, %192, %193 : vector<1x64xi32>
    %cst_52 = arith.constant 1.000000e+00 : f32
    %cst_53 = arith.constant 0.000000e+00 : f32
    %195 = vector.broadcast %cst_52 : f32 to vector<1x64xf32>
    %196 = vector.broadcast %cst_53 : f32 to vector<1x64xf32>
    %197 = arith.select %194, %195, %196 : vector<1x64xi1>, vector<1x64xf32>
    %c7_i32_54 = arith.constant 7 : i32
    %198 = vector.broadcast %c7_i32_54 : i32 to vector<1x64xi32>
    %199 = arith.cmpi ne, %192, %198 : vector<1x64xi32>
    %cst_55 = arith.constant 1.000000e+00 : f32
    %cst_56 = arith.constant 0.000000e+00 : f32
    %200 = vector.broadcast %cst_55 : f32 to vector<1x64xf32>
    %201 = vector.broadcast %cst_56 : f32 to vector<1x64xf32>
    %202 = arith.select %199, %200, %201 : vector<1x64xi1>, vector<1x64xf32>
    %c0_57 = arith.constant 0 : index
    %c0_58 = arith.constant 0 : index
    %203 = vector.load %arg4[%c0_57, %c0_58] : memref<144x8xbf16, #tpu.memory_space<vmem>>, vector<144x8xbf16>
    %204 = arith.truncf %189 : vector<8x64xf32> to vector<8x64xbf16>
    %cst_59 = arith.constant dense<0.000000e+00> : vector<144x64xf32>
    %205 = tpu.matmul %203, %204, %cst_59 {dimension_numbers = #tpu.dot_dimension_numbers<[1], [0], [0], [1], [0, 0, 1, 1], [], []>} : vector<144x8xbf16>, vector<8x64xbf16>, vector<144x64xf32> -> vector<144x64xf32>
    %206 = vector.extract_strided_slice %205 {offsets = [0, 0], sizes = [16, 64], strides = [1, 1]} : vector<144x64xf32> to vector<16x64xf32>
    %cst_60 = arith.constant 0.000000e+00 : f32
    %207 = vector.broadcast %cst_60 : f32 to vector<16x9xf32>
    %208 = vector.extract_strided_slice %206 {offsets = [0, 0], sizes = [16, 55], strides = [1, 1]} : vector<16x64xf32> to vector<16x55xf32>
    %209 = tpu.concatenate %207, %208 in 1 : vector<16x9xf32>, vector<16x55xf32> -> vector<16x64xf32>
    %210 = vector.extract_strided_slice %205 {offsets = [48, 0], sizes = [16, 64], strides = [1, 1]} : vector<144x64xf32> to vector<16x64xf32>
    %cst_61 = arith.constant 0.000000e+00 : f32
    %211 = vector.broadcast %cst_61 : f32 to vector<16x1xf32>
    %212 = vector.extract_strided_slice %210 {offsets = [0, 0], sizes = [16, 63], strides = [1, 1]} : vector<16x64xf32> to vector<16x63xf32>
    %213 = tpu.concatenate %211, %212 in 1 : vector<16x1xf32>, vector<16x63xf32> -> vector<16x64xf32>
    %214 = arith.addf %209, %213 : vector<16x64xf32>
    %215 = vector.extract_strided_slice %205 {offsets = [96, 0], sizes = [16, 64], strides = [1, 1]} : vector<144x64xf32> to vector<16x64xf32>
    %cst_62 = arith.constant 0.000000e+00 : f32
    %216 = vector.broadcast %cst_62 : f32 to vector<16x7xf32>
    %217 = vector.extract_strided_slice %215 {offsets = [0, 7], sizes = [16, 57], strides = [1, 1]} : vector<16x64xf32> to vector<16x57xf32>
    %218 = tpu.concatenate %217, %216 in 1 : vector<16x57xf32>, vector<16x7xf32> -> vector<16x64xf32>
    %219 = arith.addf %214, %218 : vector<16x64xf32>
    %220 = vector.broadcast %197 : vector<1x64xf32> to vector<16x64xf32>
    %221 = arith.mulf %219, %220 : vector<16x64xf32>
    %222 = vector.extract_strided_slice %205 {offsets = [16, 0], sizes = [16, 64], strides = [1, 1]} : vector<144x64xf32> to vector<16x64xf32>
    %cst_63 = arith.constant 0.000000e+00 : f32
    %223 = vector.broadcast %cst_63 : f32 to vector<16x8xf32>
    %224 = vector.extract_strided_slice %222 {offsets = [0, 0], sizes = [16, 56], strides = [1, 1]} : vector<16x64xf32> to vector<16x56xf32>
    %225 = tpu.concatenate %223, %224 in 1 : vector<16x8xf32>, vector<16x56xf32> -> vector<16x64xf32>
    %226 = vector.extract_strided_slice %205 {offsets = [64, 0], sizes = [16, 64], strides = [1, 1]} : vector<144x64xf32> to vector<16x64xf32>
    %227 = arith.addf %225, %226 : vector<16x64xf32>
    %228 = vector.extract_strided_slice %205 {offsets = [112, 0], sizes = [16, 64], strides = [1, 1]} : vector<144x64xf32> to vector<16x64xf32>
    %cst_64 = arith.constant 0.000000e+00 : f32
    %229 = vector.broadcast %cst_64 : f32 to vector<16x8xf32>
    %230 = vector.extract_strided_slice %228 {offsets = [0, 8], sizes = [16, 56], strides = [1, 1]} : vector<16x64xf32> to vector<16x56xf32>
    %231 = tpu.concatenate %230, %229 in 1 : vector<16x56xf32>, vector<16x8xf32> -> vector<16x64xf32>
    %232 = arith.addf %227, %231 : vector<16x64xf32>
    %233 = arith.addf %221, %232 : vector<16x64xf32>
    %234 = vector.extract_strided_slice %205 {offsets = [32, 0], sizes = [16, 64], strides = [1, 1]} : vector<144x64xf32> to vector<16x64xf32>
    %cst_65 = arith.constant 0.000000e+00 : f32
    %235 = vector.broadcast %cst_65 : f32 to vector<16x7xf32>
    %236 = vector.extract_strided_slice %234 {offsets = [0, 0], sizes = [16, 57], strides = [1, 1]} : vector<16x64xf32> to vector<16x57xf32>
    %237 = tpu.concatenate %235, %236 in 1 : vector<16x7xf32>, vector<16x57xf32> -> vector<16x64xf32>
    %238 = vector.extract_strided_slice %205 {offsets = [80, 0], sizes = [16, 64], strides = [1, 1]} : vector<144x64xf32> to vector<16x64xf32>
    %cst_66 = arith.constant 0.000000e+00 : f32
    %239 = vector.broadcast %cst_66 : f32 to vector<16x1xf32>
    %240 = vector.extract_strided_slice %238 {offsets = [0, 1], sizes = [16, 63], strides = [1, 1]} : vector<16x64xf32> to vector<16x63xf32>
    %241 = tpu.concatenate %240, %239 in 1 : vector<16x63xf32>, vector<16x1xf32> -> vector<16x64xf32>
    %242 = arith.addf %237, %241 : vector<16x64xf32>
    %243 = vector.extract_strided_slice %205 {offsets = [128, 0], sizes = [16, 64], strides = [1, 1]} : vector<144x64xf32> to vector<16x64xf32>
    %cst_67 = arith.constant 0.000000e+00 : f32
    %244 = vector.broadcast %cst_67 : f32 to vector<16x9xf32>
    %245 = vector.extract_strided_slice %243 {offsets = [0, 9], sizes = [16, 55], strides = [1, 1]} : vector<16x64xf32> to vector<16x55xf32>
    %246 = tpu.concatenate %245, %244 in 1 : vector<16x55xf32>, vector<16x9xf32> -> vector<16x64xf32>
    %247 = arith.addf %242, %246 : vector<16x64xf32>
    %248 = vector.broadcast %202 : vector<1x64xf32> to vector<16x64xf32>
    %249 = arith.mulf %247, %248 : vector<16x64xf32>
    %250 = arith.addf %233, %249 : vector<16x64xf32>
    %cst_68 = arith.constant dense<0.000000e+00> : vector<16xf32>
    %251 = vector.multi_reduction <add>, %250, %cst_68 [1] : vector<16x64xf32> to vector<16xf32>
    %252 = vector.shape_cast %251 : vector<16xf32> to vector<16x1xf32>
    %cst_69 = arith.constant 1.562500e-02 : f32
    %253 = vector.broadcast %cst_69 : f32 to vector<16x1xf32>
    %254 = arith.mulf %252, %253 : vector<16x1xf32>
    %255 = arith.mulf %250, %250 : vector<16x64xf32>
    %cst_70 = arith.constant dense<0.000000e+00> : vector<16xf32>
    %256 = vector.multi_reduction <add>, %255, %cst_70 [1] : vector<16x64xf32> to vector<16xf32>
    %257 = vector.shape_cast %256 : vector<16xf32> to vector<16x1xf32>
    %cst_71 = arith.constant 1.562500e-02 : f32
    %258 = vector.broadcast %cst_71 : f32 to vector<16x1xf32>
    %259 = arith.mulf %257, %258 : vector<16x1xf32>
    %260 = arith.mulf %254, %254 : vector<16x1xf32>
    %261 = arith.subf %259, %260 : vector<16x1xf32>
    %cst_72 = arith.constant 0.000000e+00 : f32
    %262 = vector.broadcast %cst_72 : f32 to vector<16x1xf32>
    %263 = arith.maximumf %261, %262 : vector<16x1xf32>
    %264 = vector.broadcast %254 : vector<16x1xf32> to vector<16x64xf32>
    %265 = arith.subf %250, %264 : vector<16x64xf32>
    %cst_73 = arith.constant 9.99999974E-6 : f32
    %266 = vector.broadcast %cst_73 : f32 to vector<16x1xf32>
    %267 = arith.addf %263, %266 : vector<16x1xf32>
    %268 = math.rsqrt %267 : vector<16x1xf32>
    %269 = vector.broadcast %268 : vector<16x1xf32> to vector<16x64xf32>
    %270 = arith.mulf %265, %269 : vector<16x64xf32>
    %cst_74 = arith.constant 0.000000e+00 : f32
    %271 = vector.broadcast %cst_74 : f32 to vector<16x64xf32>
    %272 = arith.maximumf %270, %271 : vector<16x64xf32>
    %c0_75 = arith.constant 0 : index
    %c0_76 = arith.constant 0 : index
    %273 = vector.load %arg5[%c0_75, %c0_76] : memref<144x16xbf16, #tpu.memory_space<vmem>>, vector<144x16xbf16>
    %274 = arith.truncf %272 : vector<16x64xf32> to vector<16x64xbf16>
    %cst_77 = arith.constant dense<0.000000e+00> : vector<144x64xf32>
    %275 = tpu.matmul %273, %274, %cst_77 {dimension_numbers = #tpu.dot_dimension_numbers<[1], [0], [0], [1], [0, 0, 1, 1], [], []>} : vector<144x16xbf16>, vector<16x64xbf16>, vector<144x64xf32> -> vector<144x64xf32>
    %276 = vector.extract_strided_slice %275 {offsets = [0, 0], sizes = [16, 64], strides = [1, 1]} : vector<144x64xf32> to vector<16x64xf32>
    %cst_78 = arith.constant 0.000000e+00 : f32
    %277 = vector.broadcast %cst_78 : f32 to vector<16x9xf32>
    %278 = vector.extract_strided_slice %276 {offsets = [0, 0], sizes = [16, 55], strides = [1, 1]} : vector<16x64xf32> to vector<16x55xf32>
    %279 = tpu.concatenate %277, %278 in 1 : vector<16x9xf32>, vector<16x55xf32> -> vector<16x64xf32>
    %280 = vector.extract_strided_slice %275 {offsets = [48, 0], sizes = [16, 64], strides = [1, 1]} : vector<144x64xf32> to vector<16x64xf32>
    %cst_79 = arith.constant 0.000000e+00 : f32
    %281 = vector.broadcast %cst_79 : f32 to vector<16x1xf32>
    %282 = vector.extract_strided_slice %280 {offsets = [0, 0], sizes = [16, 63], strides = [1, 1]} : vector<16x64xf32> to vector<16x63xf32>
    %283 = tpu.concatenate %281, %282 in 1 : vector<16x1xf32>, vector<16x63xf32> -> vector<16x64xf32>
    %284 = arith.addf %279, %283 : vector<16x64xf32>
    %285 = vector.extract_strided_slice %275 {offsets = [96, 0], sizes = [16, 64], strides = [1, 1]} : vector<144x64xf32> to vector<16x64xf32>
    %cst_80 = arith.constant 0.000000e+00 : f32
    %286 = vector.broadcast %cst_80 : f32 to vector<16x7xf32>
    %287 = vector.extract_strided_slice %285 {offsets = [0, 7], sizes = [16, 57], strides = [1, 1]} : vector<16x64xf32> to vector<16x57xf32>
    %288 = tpu.concatenate %287, %286 in 1 : vector<16x57xf32>, vector<16x7xf32> -> vector<16x64xf32>
    %289 = arith.addf %284, %288 : vector<16x64xf32>
    %290 = vector.broadcast %197 : vector<1x64xf32> to vector<16x64xf32>
    %291 = arith.mulf %289, %290 : vector<16x64xf32>
    %292 = vector.extract_strided_slice %275 {offsets = [16, 0], sizes = [16, 64], strides = [1, 1]} : vector<144x64xf32> to vector<16x64xf32>
    %cst_81 = arith.constant 0.000000e+00 : f32
    %293 = vector.broadcast %cst_81 : f32 to vector<16x8xf32>
    %294 = vector.extract_strided_slice %292 {offsets = [0, 0], sizes = [16, 56], strides = [1, 1]} : vector<16x64xf32> to vector<16x56xf32>
    %295 = tpu.concatenate %293, %294 in 1 : vector<16x8xf32>, vector<16x56xf32> -> vector<16x64xf32>
    %296 = vector.extract_strided_slice %275 {offsets = [64, 0], sizes = [16, 64], strides = [1, 1]} : vector<144x64xf32> to vector<16x64xf32>
    %297 = arith.addf %295, %296 : vector<16x64xf32>
    %298 = vector.extract_strided_slice %275 {offsets = [112, 0], sizes = [16, 64], strides = [1, 1]} : vector<144x64xf32> to vector<16x64xf32>
    %cst_82 = arith.constant 0.000000e+00 : f32
    %299 = vector.broadcast %cst_82 : f32 to vector<16x8xf32>
    %300 = vector.extract_strided_slice %298 {offsets = [0, 8], sizes = [16, 56], strides = [1, 1]} : vector<16x64xf32> to vector<16x56xf32>
    %301 = tpu.concatenate %300, %299 in 1 : vector<16x56xf32>, vector<16x8xf32> -> vector<16x64xf32>
    %302 = arith.addf %297, %301 : vector<16x64xf32>
    %303 = arith.addf %291, %302 : vector<16x64xf32>
    %304 = vector.extract_strided_slice %275 {offsets = [32, 0], sizes = [16, 64], strides = [1, 1]} : vector<144x64xf32> to vector<16x64xf32>
    %cst_83 = arith.constant 0.000000e+00 : f32
    %305 = vector.broadcast %cst_83 : f32 to vector<16x7xf32>
    %306 = vector.extract_strided_slice %304 {offsets = [0, 0], sizes = [16, 57], strides = [1, 1]} : vector<16x64xf32> to vector<16x57xf32>
    %307 = tpu.concatenate %305, %306 in 1 : vector<16x7xf32>, vector<16x57xf32> -> vector<16x64xf32>
    %308 = vector.extract_strided_slice %275 {offsets = [80, 0], sizes = [16, 64], strides = [1, 1]} : vector<144x64xf32> to vector<16x64xf32>
    %cst_84 = arith.constant 0.000000e+00 : f32
    %309 = vector.broadcast %cst_84 : f32 to vector<16x1xf32>
    %310 = vector.extract_strided_slice %308 {offsets = [0, 1], sizes = [16, 63], strides = [1, 1]} : vector<16x64xf32> to vector<16x63xf32>
    %311 = tpu.concatenate %310, %309 in 1 : vector<16x63xf32>, vector<16x1xf32> -> vector<16x64xf32>
    %312 = arith.addf %307, %311 : vector<16x64xf32>
    %313 = vector.extract_strided_slice %275 {offsets = [128, 0], sizes = [16, 64], strides = [1, 1]} : vector<144x64xf32> to vector<16x64xf32>
    %cst_85 = arith.constant 0.000000e+00 : f32
    %314 = vector.broadcast %cst_85 : f32 to vector<16x9xf32>
    %315 = vector.extract_strided_slice %313 {offsets = [0, 9], sizes = [16, 55], strides = [1, 1]} : vector<16x64xf32> to vector<16x55xf32>
    %316 = tpu.concatenate %315, %314 in 1 : vector<16x55xf32>, vector<16x9xf32> -> vector<16x64xf32>
    %317 = arith.addf %312, %316 : vector<16x64xf32>
    %318 = vector.broadcast %202 : vector<1x64xf32> to vector<16x64xf32>
    %319 = arith.mulf %317, %318 : vector<16x64xf32>
    %320 = arith.addf %303, %319 : vector<16x64xf32>
    %cst_86 = arith.constant dense<0.000000e+00> : vector<16xf32>
    %321 = vector.multi_reduction <add>, %320, %cst_86 [1] : vector<16x64xf32> to vector<16xf32>
    %322 = vector.shape_cast %321 : vector<16xf32> to vector<16x1xf32>
    %cst_87 = arith.constant 1.562500e-02 : f32
    %323 = vector.broadcast %cst_87 : f32 to vector<16x1xf32>
    %324 = arith.mulf %322, %323 : vector<16x1xf32>
    %325 = arith.mulf %320, %320 : vector<16x64xf32>
    %cst_88 = arith.constant dense<0.000000e+00> : vector<16xf32>
    %326 = vector.multi_reduction <add>, %325, %cst_88 [1] : vector<16x64xf32> to vector<16xf32>
    %327 = vector.shape_cast %326 : vector<16xf32> to vector<16x1xf32>
    %cst_89 = arith.constant 1.562500e-02 : f32
    %328 = vector.broadcast %cst_89 : f32 to vector<16x1xf32>
    %329 = arith.mulf %327, %328 : vector<16x1xf32>
    %330 = arith.mulf %324, %324 : vector<16x1xf32>
    %331 = arith.subf %329, %330 : vector<16x1xf32>
    %cst_90 = arith.constant 0.000000e+00 : f32
    %332 = vector.broadcast %cst_90 : f32 to vector<16x1xf32>
    %333 = arith.maximumf %331, %332 : vector<16x1xf32>
    %334 = vector.broadcast %324 : vector<16x1xf32> to vector<16x64xf32>
    %335 = arith.subf %320, %334 : vector<16x64xf32>
    %cst_91 = arith.constant 9.99999974E-6 : f32
    %336 = vector.broadcast %cst_91 : f32 to vector<16x1xf32>
    %337 = arith.addf %333, %336 : vector<16x1xf32>
    %338 = math.rsqrt %337 : vector<16x1xf32>
    %339 = vector.broadcast %338 : vector<16x1xf32> to vector<16x64xf32>
    %340 = arith.mulf %335, %339 : vector<16x64xf32>
    %cst_92 = arith.constant 0.000000e+00 : f32
    %341 = vector.broadcast %cst_92 : f32 to vector<16x64xf32>
    %342 = arith.maximumf %340, %341 : vector<16x64xf32>
    %cst_93 = arith.constant 0.000000e+00 : f32
    %343 = vector.broadcast %cst_93 : f32 to vector<16x1xf32>
    %344 = vector.extract_strided_slice %342 {offsets = [0, 1], sizes = [16, 63], strides = [1, 1]} : vector<16x64xf32> to vector<16x63xf32>
    %345 = tpu.concatenate %344, %343 in 1 : vector<16x63xf32>, vector<16x1xf32> -> vector<16x64xf32>
    %346 = arith.maximumf %342, %345 : vector<16x64xf32>
    %cst_94 = arith.constant 0.000000e+00 : f32
    %347 = vector.broadcast %cst_94 : f32 to vector<16x8xf32>
    %348 = vector.extract_strided_slice %342 {offsets = [0, 8], sizes = [16, 56], strides = [1, 1]} : vector<16x64xf32> to vector<16x56xf32>
    %349 = tpu.concatenate %348, %347 in 1 : vector<16x56xf32>, vector<16x8xf32> -> vector<16x64xf32>
    %350 = arith.maximumf %346, %349 : vector<16x64xf32>
    %cst_95 = arith.constant 0.000000e+00 : f32
    %351 = vector.broadcast %cst_95 : f32 to vector<16x9xf32>
    %352 = vector.extract_strided_slice %342 {offsets = [0, 9], sizes = [16, 55], strides = [1, 1]} : vector<16x64xf32> to vector<16x55xf32>
    %353 = tpu.concatenate %352, %351 in 1 : vector<16x55xf32>, vector<16x9xf32> -> vector<16x64xf32>
    %354 = arith.maximumf %350, %353 : vector<16x64xf32>
    %355 = tpu.iota {dimensions = array<i32: 0>} : vector<64x16xi32>
    %356 = tpu.iota {dimensions = array<i32: 1>} : vector<64x16xi32>
    %c3_i32_96 = arith.constant 3 : i32
    %357 = vector.broadcast %c3_i32_96 : i32 to vector<64x16xi32>
    %358 = arith.shrsi %355, %357 : vector<64x16xi32>
    %c7_i32_97 = arith.constant 7 : i32
    %359 = vector.broadcast %c7_i32_97 : i32 to vector<64x16xi32>
    %360 = arith.andi %355, %359 : vector<64x16xi32>
    %c2_i32_98 = arith.constant 2 : i32
    %361 = vector.broadcast %c2_i32_98 : i32 to vector<64x16xi32>
    %362 = arith.shrsi %356, %361 : vector<64x16xi32>
    %c3_i32_99 = arith.constant 3 : i32
    %363 = vector.broadcast %c3_i32_99 : i32 to vector<64x16xi32>
    %364 = arith.andi %356, %363 : vector<64x16xi32>
    %c2_i32_100 = arith.constant 2 : i32
    %365 = vector.broadcast %c2_i32_100 : i32 to vector<64x16xi32>
    %366 = arith.muli %365, %362 : vector<64x16xi32>
    %367 = arith.cmpi eq, %358, %366 : vector<64x16xi32>
    %c2_i32_101 = arith.constant 2 : i32
    %368 = vector.broadcast %c2_i32_101 : i32 to vector<64x16xi32>
    %369 = arith.muli %368, %364 : vector<64x16xi32>
    %370 = arith.cmpi eq, %360, %369 : vector<64x16xi32>
    %371 = arith.andi %367, %370 : vector<64x16xi1>
    %cst_102 = arith.constant 1.000000e+00 : f32
    %cst_103 = arith.constant 0.000000e+00 : f32
    %372 = vector.broadcast %cst_102 : f32 to vector<64x16xf32>
    %373 = vector.broadcast %cst_103 : f32 to vector<64x16xf32>
    %374 = arith.select %371, %372, %373 : vector<64x16xi1>, vector<64x16xf32>
    %375 = arith.truncf %374 : vector<64x16xf32> to vector<64x16xbf16>
    %376 = arith.truncf %354 : vector<16x64xf32> to vector<16x64xbf16>
    %cst_104 = arith.constant dense<0.000000e+00> : vector<16x16xf32>
    %377 = tpu.matmul %376, %375, %cst_104 {dimension_numbers = #tpu.dot_dimension_numbers<[1], [0], [0], [1], [0, 0, 1, 1], [], []>} : vector<16x64xbf16>, vector<64x16xbf16>, vector<16x16xf32> -> vector<16x16xf32>
    %378 = tpu.iota {dimensions = array<i32: 1>} : vector<1x16xi32>
    %c3_i32_105 = arith.constant 3 : i32
    %379 = vector.broadcast %c3_i32_105 : i32 to vector<1x16xi32>
    %380 = arith.andi %378, %379 : vector<1x16xi32>
    %c0_i32_106 = arith.constant 0 : i32
    %381 = vector.broadcast %c0_i32_106 : i32 to vector<1x16xi32>
    %382 = arith.cmpi ne, %380, %381 : vector<1x16xi32>
    %cst_107 = arith.constant 1.000000e+00 : f32
    %cst_108 = arith.constant 0.000000e+00 : f32
    %383 = vector.broadcast %cst_107 : f32 to vector<1x16xf32>
    %384 = vector.broadcast %cst_108 : f32 to vector<1x16xf32>
    %385 = arith.select %382, %383, %384 : vector<1x16xi1>, vector<1x16xf32>
    %c3_i32_109 = arith.constant 3 : i32
    %386 = vector.broadcast %c3_i32_109 : i32 to vector<1x16xi32>
    %387 = arith.cmpi ne, %380, %386 : vector<1x16xi32>
    %cst_110 = arith.constant 1.000000e+00 : f32
    %cst_111 = arith.constant 0.000000e+00 : f32
    %388 = vector.broadcast %cst_110 : f32 to vector<1x16xf32>
    %389 = vector.broadcast %cst_111 : f32 to vector<1x16xf32>
    %390 = arith.select %387, %388, %389 : vector<1x16xi1>, vector<1x16xf32>
    %c0_112 = arith.constant 0 : index
    %c0_113 = arith.constant 0 : index
    %391 = vector.load %arg6[%c0_112, %c0_113] : memref<144x16xbf16, #tpu.memory_space<vmem>>, vector<144x16xbf16>
    %392 = arith.truncf %377 : vector<16x16xf32> to vector<16x16xbf16>
    %cst_114 = arith.constant dense<0.000000e+00> : vector<144x16xf32>
    %393 = tpu.matmul %391, %392, %cst_114 {dimension_numbers = #tpu.dot_dimension_numbers<[1], [0], [0], [1], [0, 0, 1, 1], [], []>} : vector<144x16xbf16>, vector<16x16xbf16>, vector<144x16xf32> -> vector<144x16xf32>
    %394 = vector.extract_strided_slice %393 {offsets = [0, 0], sizes = [16, 16], strides = [1, 1]} : vector<144x16xf32> to vector<16x16xf32>
    %cst_115 = arith.constant 0.000000e+00 : f32
    %395 = vector.broadcast %cst_115 : f32 to vector<16x5xf32>
    %396 = vector.extract_strided_slice %394 {offsets = [0, 0], sizes = [16, 11], strides = [1, 1]} : vector<16x16xf32> to vector<16x11xf32>
    %397 = tpu.concatenate %395, %396 in 1 : vector<16x5xf32>, vector<16x11xf32> -> vector<16x16xf32>
    %398 = vector.extract_strided_slice %393 {offsets = [48, 0], sizes = [16, 16], strides = [1, 1]} : vector<144x16xf32> to vector<16x16xf32>
    %cst_116 = arith.constant 0.000000e+00 : f32
    %399 = vector.broadcast %cst_116 : f32 to vector<16x1xf32>
    %400 = vector.extract_strided_slice %398 {offsets = [0, 0], sizes = [16, 15], strides = [1, 1]} : vector<16x16xf32> to vector<16x15xf32>
    %401 = tpu.concatenate %399, %400 in 1 : vector<16x1xf32>, vector<16x15xf32> -> vector<16x16xf32>
    %402 = arith.addf %397, %401 : vector<16x16xf32>
    %403 = vector.extract_strided_slice %393 {offsets = [96, 0], sizes = [16, 16], strides = [1, 1]} : vector<144x16xf32> to vector<16x16xf32>
    %cst_117 = arith.constant 0.000000e+00 : f32
    %404 = vector.broadcast %cst_117 : f32 to vector<16x3xf32>
    %405 = vector.extract_strided_slice %403 {offsets = [0, 3], sizes = [16, 13], strides = [1, 1]} : vector<16x16xf32> to vector<16x13xf32>
    %406 = tpu.concatenate %405, %404 in 1 : vector<16x13xf32>, vector<16x3xf32> -> vector<16x16xf32>
    %407 = arith.addf %402, %406 : vector<16x16xf32>
    %408 = vector.broadcast %385 : vector<1x16xf32> to vector<16x16xf32>
    %409 = arith.mulf %407, %408 : vector<16x16xf32>
    %410 = vector.extract_strided_slice %393 {offsets = [16, 0], sizes = [16, 16], strides = [1, 1]} : vector<144x16xf32> to vector<16x16xf32>
    %cst_118 = arith.constant 0.000000e+00 : f32
    %411 = vector.broadcast %cst_118 : f32 to vector<16x4xf32>
    %412 = vector.extract_strided_slice %410 {offsets = [0, 0], sizes = [16, 12], strides = [1, 1]} : vector<16x16xf32> to vector<16x12xf32>
    %413 = tpu.concatenate %411, %412 in 1 : vector<16x4xf32>, vector<16x12xf32> -> vector<16x16xf32>
    %414 = vector.extract_strided_slice %393 {offsets = [64, 0], sizes = [16, 16], strides = [1, 1]} : vector<144x16xf32> to vector<16x16xf32>
    %415 = arith.addf %413, %414 : vector<16x16xf32>
    %416 = vector.extract_strided_slice %393 {offsets = [112, 0], sizes = [16, 16], strides = [1, 1]} : vector<144x16xf32> to vector<16x16xf32>
    %cst_119 = arith.constant 0.000000e+00 : f32
    %417 = vector.broadcast %cst_119 : f32 to vector<16x4xf32>
    %418 = vector.extract_strided_slice %416 {offsets = [0, 4], sizes = [16, 12], strides = [1, 1]} : vector<16x16xf32> to vector<16x12xf32>
    %419 = tpu.concatenate %418, %417 in 1 : vector<16x12xf32>, vector<16x4xf32> -> vector<16x16xf32>
    %420 = arith.addf %415, %419 : vector<16x16xf32>
    %421 = arith.addf %409, %420 : vector<16x16xf32>
    %422 = vector.extract_strided_slice %393 {offsets = [32, 0], sizes = [16, 16], strides = [1, 1]} : vector<144x16xf32> to vector<16x16xf32>
    %cst_120 = arith.constant 0.000000e+00 : f32
    %423 = vector.broadcast %cst_120 : f32 to vector<16x3xf32>
    %424 = vector.extract_strided_slice %422 {offsets = [0, 0], sizes = [16, 13], strides = [1, 1]} : vector<16x16xf32> to vector<16x13xf32>
    %425 = tpu.concatenate %423, %424 in 1 : vector<16x3xf32>, vector<16x13xf32> -> vector<16x16xf32>
    %426 = vector.extract_strided_slice %393 {offsets = [80, 0], sizes = [16, 16], strides = [1, 1]} : vector<144x16xf32> to vector<16x16xf32>
    %cst_121 = arith.constant 0.000000e+00 : f32
    %427 = vector.broadcast %cst_121 : f32 to vector<16x1xf32>
    %428 = vector.extract_strided_slice %426 {offsets = [0, 1], sizes = [16, 15], strides = [1, 1]} : vector<16x16xf32> to vector<16x15xf32>
    %429 = tpu.concatenate %428, %427 in 1 : vector<16x15xf32>, vector<16x1xf32> -> vector<16x16xf32>
    %430 = arith.addf %425, %429 : vector<16x16xf32>
    %431 = vector.extract_strided_slice %393 {offsets = [128, 0], sizes = [16, 16], strides = [1, 1]} : vector<144x16xf32> to vector<16x16xf32>
    %cst_122 = arith.constant 0.000000e+00 : f32
    %432 = vector.broadcast %cst_122 : f32 to vector<16x5xf32>
    %433 = vector.extract_strided_slice %431 {offsets = [0, 5], sizes = [16, 11], strides = [1, 1]} : vector<16x16xf32> to vector<16x11xf32>
    %434 = tpu.concatenate %433, %432 in 1 : vector<16x11xf32>, vector<16x5xf32> -> vector<16x16xf32>
    %435 = arith.addf %430, %434 : vector<16x16xf32>
    %436 = vector.broadcast %390 : vector<1x16xf32> to vector<16x16xf32>
    %437 = arith.mulf %435, %436 : vector<16x16xf32>
    %438 = arith.addf %421, %437 : vector<16x16xf32>
    %cst_123 = arith.constant dense<0.000000e+00> : vector<16xf32>
    %439 = vector.multi_reduction <add>, %438, %cst_123 [1] : vector<16x16xf32> to vector<16xf32>
    %440 = vector.shape_cast %439 : vector<16xf32> to vector<16x1xf32>
    %cst_124 = arith.constant 6.250000e-02 : f32
    %441 = vector.broadcast %cst_124 : f32 to vector<16x1xf32>
    %442 = arith.mulf %440, %441 : vector<16x1xf32>
    %443 = arith.mulf %438, %438 : vector<16x16xf32>
    %cst_125 = arith.constant dense<0.000000e+00> : vector<16xf32>
    %444 = vector.multi_reduction <add>, %443, %cst_125 [1] : vector<16x16xf32> to vector<16xf32>
    %445 = vector.shape_cast %444 : vector<16xf32> to vector<16x1xf32>
    %cst_126 = arith.constant 6.250000e-02 : f32
    %446 = vector.broadcast %cst_126 : f32 to vector<16x1xf32>
    %447 = arith.mulf %445, %446 : vector<16x1xf32>
    %448 = arith.mulf %442, %442 : vector<16x1xf32>
    %449 = arith.subf %447, %448 : vector<16x1xf32>
    %cst_127 = arith.constant 0.000000e+00 : f32
    %450 = vector.broadcast %cst_127 : f32 to vector<16x1xf32>
    %451 = arith.maximumf %449, %450 : vector<16x1xf32>
    %452 = vector.broadcast %442 : vector<16x1xf32> to vector<16x16xf32>
    %453 = arith.subf %438, %452 : vector<16x16xf32>
    %cst_128 = arith.constant 9.99999974E-6 : f32
    %454 = vector.broadcast %cst_128 : f32 to vector<16x1xf32>
    %455 = arith.addf %451, %454 : vector<16x1xf32>
    %456 = math.rsqrt %455 : vector<16x1xf32>
    %457 = vector.broadcast %456 : vector<16x1xf32> to vector<16x16xf32>
    %458 = arith.mulf %453, %457 : vector<16x16xf32>
    %cst_129 = arith.constant 0.000000e+00 : f32
    %459 = vector.broadcast %cst_129 : f32 to vector<16x16xf32>
    %460 = arith.maximumf %458, %459 : vector<16x16xf32>
    %c0_130 = arith.constant 0 : index
    %c0_131 = arith.constant 0 : index
    %461 = vector.load %arg7[%c0_130, %c0_131] : memref<144x16xbf16, #tpu.memory_space<vmem>>, vector<144x16xbf16>
    %462 = arith.truncf %460 : vector<16x16xf32> to vector<16x16xbf16>
    %cst_132 = arith.constant dense<0.000000e+00> : vector<144x16xf32>
    %463 = tpu.matmul %461, %462, %cst_132 {dimension_numbers = #tpu.dot_dimension_numbers<[1], [0], [0], [1], [0, 0, 1, 1], [], []>} : vector<144x16xbf16>, vector<16x16xbf16>, vector<144x16xf32> -> vector<144x16xf32>
    %464 = vector.extract_strided_slice %463 {offsets = [0, 0], sizes = [16, 16], strides = [1, 1]} : vector<144x16xf32> to vector<16x16xf32>
    %cst_133 = arith.constant 0.000000e+00 : f32
    %465 = vector.broadcast %cst_133 : f32 to vector<16x5xf32>
    %466 = vector.extract_strided_slice %464 {offsets = [0, 0], sizes = [16, 11], strides = [1, 1]} : vector<16x16xf32> to vector<16x11xf32>
    %467 = tpu.concatenate %465, %466 in 1 : vector<16x5xf32>, vector<16x11xf32> -> vector<16x16xf32>
    %468 = vector.extract_strided_slice %463 {offsets = [48, 0], sizes = [16, 16], strides = [1, 1]} : vector<144x16xf32> to vector<16x16xf32>
    %cst_134 = arith.constant 0.000000e+00 : f32
    %469 = vector.broadcast %cst_134 : f32 to vector<16x1xf32>
    %470 = vector.extract_strided_slice %468 {offsets = [0, 0], sizes = [16, 15], strides = [1, 1]} : vector<16x16xf32> to vector<16x15xf32>
    %471 = tpu.concatenate %469, %470 in 1 : vector<16x1xf32>, vector<16x15xf32> -> vector<16x16xf32>
    %472 = arith.addf %467, %471 : vector<16x16xf32>
    %473 = vector.extract_strided_slice %463 {offsets = [96, 0], sizes = [16, 16], strides = [1, 1]} : vector<144x16xf32> to vector<16x16xf32>
    %cst_135 = arith.constant 0.000000e+00 : f32
    %474 = vector.broadcast %cst_135 : f32 to vector<16x3xf32>
    %475 = vector.extract_strided_slice %473 {offsets = [0, 3], sizes = [16, 13], strides = [1, 1]} : vector<16x16xf32> to vector<16x13xf32>
    %476 = tpu.concatenate %475, %474 in 1 : vector<16x13xf32>, vector<16x3xf32> -> vector<16x16xf32>
    %477 = arith.addf %472, %476 : vector<16x16xf32>
    %478 = vector.broadcast %385 : vector<1x16xf32> to vector<16x16xf32>
    %479 = arith.mulf %477, %478 : vector<16x16xf32>
    %480 = vector.extract_strided_slice %463 {offsets = [16, 0], sizes = [16, 16], strides = [1, 1]} : vector<144x16xf32> to vector<16x16xf32>
    %cst_136 = arith.constant 0.000000e+00 : f32
    %481 = vector.broadcast %cst_136 : f32 to vector<16x4xf32>
    %482 = vector.extract_strided_slice %480 {offsets = [0, 0], sizes = [16, 12], strides = [1, 1]} : vector<16x16xf32> to vector<16x12xf32>
    %483 = tpu.concatenate %481, %482 in 1 : vector<16x4xf32>, vector<16x12xf32> -> vector<16x16xf32>
    %484 = vector.extract_strided_slice %463 {offsets = [64, 0], sizes = [16, 16], strides = [1, 1]} : vector<144x16xf32> to vector<16x16xf32>
    %485 = arith.addf %483, %484 : vector<16x16xf32>
    %486 = vector.extract_strided_slice %463 {offsets = [112, 0], sizes = [16, 16], strides = [1, 1]} : vector<144x16xf32> to vector<16x16xf32>
    %cst_137 = arith.constant 0.000000e+00 : f32
    %487 = vector.broadcast %cst_137 : f32 to vector<16x4xf32>
    %488 = vector.extract_strided_slice %486 {offsets = [0, 4], sizes = [16, 12], strides = [1, 1]} : vector<16x16xf32> to vector<16x12xf32>
    %489 = tpu.concatenate %488, %487 in 1 : vector<16x12xf32>, vector<16x4xf32> -> vector<16x16xf32>
    %490 = arith.addf %485, %489 : vector<16x16xf32>
    %491 = arith.addf %479, %490 : vector<16x16xf32>
    %492 = vector.extract_strided_slice %463 {offsets = [32, 0], sizes = [16, 16], strides = [1, 1]} : vector<144x16xf32> to vector<16x16xf32>
    %cst_138 = arith.constant 0.000000e+00 : f32
    %493 = vector.broadcast %cst_138 : f32 to vector<16x3xf32>
    %494 = vector.extract_strided_slice %492 {offsets = [0, 0], sizes = [16, 13], strides = [1, 1]} : vector<16x16xf32> to vector<16x13xf32>
    %495 = tpu.concatenate %493, %494 in 1 : vector<16x3xf32>, vector<16x13xf32> -> vector<16x16xf32>
    %496 = vector.extract_strided_slice %463 {offsets = [80, 0], sizes = [16, 16], strides = [1, 1]} : vector<144x16xf32> to vector<16x16xf32>
    %cst_139 = arith.constant 0.000000e+00 : f32
    %497 = vector.broadcast %cst_139 : f32 to vector<16x1xf32>
    %498 = vector.extract_strided_slice %496 {offsets = [0, 1], sizes = [16, 15], strides = [1, 1]} : vector<16x16xf32> to vector<16x15xf32>
    %499 = tpu.concatenate %498, %497 in 1 : vector<16x15xf32>, vector<16x1xf32> -> vector<16x16xf32>
    %500 = arith.addf %495, %499 : vector<16x16xf32>
    %501 = vector.extract_strided_slice %463 {offsets = [128, 0], sizes = [16, 16], strides = [1, 1]} : vector<144x16xf32> to vector<16x16xf32>
    %cst_140 = arith.constant 0.000000e+00 : f32
    %502 = vector.broadcast %cst_140 : f32 to vector<16x5xf32>
    %503 = vector.extract_strided_slice %501 {offsets = [0, 5], sizes = [16, 11], strides = [1, 1]} : vector<16x16xf32> to vector<16x11xf32>
    %504 = tpu.concatenate %503, %502 in 1 : vector<16x11xf32>, vector<16x5xf32> -> vector<16x16xf32>
    %505 = arith.addf %500, %504 : vector<16x16xf32>
    %506 = vector.broadcast %390 : vector<1x16xf32> to vector<16x16xf32>
    %507 = arith.mulf %505, %506 : vector<16x16xf32>
    %508 = arith.addf %491, %507 : vector<16x16xf32>
    %cst_141 = arith.constant dense<0.000000e+00> : vector<16xf32>
    %509 = vector.multi_reduction <add>, %508, %cst_141 [1] : vector<16x16xf32> to vector<16xf32>
    %510 = vector.shape_cast %509 : vector<16xf32> to vector<16x1xf32>
    %cst_142 = arith.constant 6.250000e-02 : f32
    %511 = vector.broadcast %cst_142 : f32 to vector<16x1xf32>
    %512 = arith.mulf %510, %511 : vector<16x1xf32>
    %513 = arith.mulf %508, %508 : vector<16x16xf32>
    %cst_143 = arith.constant dense<0.000000e+00> : vector<16xf32>
    %514 = vector.multi_reduction <add>, %513, %cst_143 [1] : vector<16x16xf32> to vector<16xf32>
    %515 = vector.shape_cast %514 : vector<16xf32> to vector<16x1xf32>
    %cst_144 = arith.constant 6.250000e-02 : f32
    %516 = vector.broadcast %cst_144 : f32 to vector<16x1xf32>
    %517 = arith.mulf %515, %516 : vector<16x1xf32>
    %518 = arith.mulf %512, %512 : vector<16x1xf32>
    %519 = arith.subf %517, %518 : vector<16x1xf32>
    %cst_145 = arith.constant 0.000000e+00 : f32
    %520 = vector.broadcast %cst_145 : f32 to vector<16x1xf32>
    %521 = arith.maximumf %519, %520 : vector<16x1xf32>
    %522 = vector.broadcast %512 : vector<16x1xf32> to vector<16x16xf32>
    %523 = arith.subf %508, %522 : vector<16x16xf32>
    %cst_146 = arith.constant 9.99999974E-6 : f32
    %524 = vector.broadcast %cst_146 : f32 to vector<16x1xf32>
    %525 = arith.addf %521, %524 : vector<16x1xf32>
    %526 = math.rsqrt %525 : vector<16x1xf32>
    %527 = vector.broadcast %526 : vector<16x1xf32> to vector<16x16xf32>
    %528 = arith.mulf %523, %527 : vector<16x16xf32>
    %cst_147 = arith.constant 0.000000e+00 : f32
    %529 = vector.broadcast %cst_147 : f32 to vector<16x16xf32>
    %530 = arith.maximumf %528, %529 : vector<16x16xf32>
    %531 = arith.truncf %530 : vector<16x16xf32> to vector<16x16xbf16>
    %c0_148 = arith.constant 0 : index
    %c0_149 = arith.constant 0 : index
    %532 = vector.load %arg12[%c0_148, %c0_149] : memref<16x64xbf16, #tpu.memory_space<vmem>>, vector<16x64xbf16>
    %cst_150 = arith.constant dense<0.000000e+00> : vector<16x64xf32>
    %533 = tpu.matmul %531, %532, %cst_150 {dimension_numbers = #tpu.dot_dimension_numbers<[1], [0], [0], [1], [0, 0, 1, 1], [], []>} : vector<16x16xbf16>, vector<16x64xbf16>, vector<16x64xf32> -> vector<16x64xf32>
    %534 = tpu.concatenate %533, %342 in 0 : vector<16x64xf32>, vector<16x64xf32> -> vector<32x64xf32>
    %c0_151 = arith.constant 0 : index
    %c0_152 = arith.constant 0 : index
    %535 = vector.load %arg8[%c0_151, %c0_152] : memref<72x32xbf16, #tpu.memory_space<vmem>>, vector<72x32xbf16>
    %536 = arith.truncf %534 : vector<32x64xf32> to vector<32x64xbf16>
    %cst_153 = arith.constant dense<0.000000e+00> : vector<72x64xf32>
    %537 = tpu.matmul %535, %536, %cst_153 {dimension_numbers = #tpu.dot_dimension_numbers<[1], [0], [0], [1], [0, 0, 1, 1], [], []>} : vector<72x32xbf16>, vector<32x64xbf16>, vector<72x64xf32> -> vector<72x64xf32>
    %538 = vector.extract_strided_slice %537 {offsets = [0, 0], sizes = [8, 64], strides = [1, 1]} : vector<72x64xf32> to vector<8x64xf32>
    %cst_154 = arith.constant 0.000000e+00 : f32
    %539 = vector.broadcast %cst_154 : f32 to vector<8x9xf32>
    %540 = vector.extract_strided_slice %538 {offsets = [0, 0], sizes = [8, 55], strides = [1, 1]} : vector<8x64xf32> to vector<8x55xf32>
    %541 = tpu.concatenate %539, %540 in 1 : vector<8x9xf32>, vector<8x55xf32> -> vector<8x64xf32>
    %542 = vector.extract_strided_slice %537 {offsets = [24, 0], sizes = [8, 64], strides = [1, 1]} : vector<72x64xf32> to vector<8x64xf32>
    %cst_155 = arith.constant 0.000000e+00 : f32
    %543 = vector.broadcast %cst_155 : f32 to vector<8x1xf32>
    %544 = vector.extract_strided_slice %542 {offsets = [0, 0], sizes = [8, 63], strides = [1, 1]} : vector<8x64xf32> to vector<8x63xf32>
    %545 = tpu.concatenate %543, %544 in 1 : vector<8x1xf32>, vector<8x63xf32> -> vector<8x64xf32>
    %546 = arith.addf %541, %545 : vector<8x64xf32>
    %547 = vector.extract_strided_slice %537 {offsets = [48, 0], sizes = [8, 64], strides = [1, 1]} : vector<72x64xf32> to vector<8x64xf32>
    %cst_156 = arith.constant 0.000000e+00 : f32
    %548 = vector.broadcast %cst_156 : f32 to vector<8x7xf32>
    %549 = vector.extract_strided_slice %547 {offsets = [0, 7], sizes = [8, 57], strides = [1, 1]} : vector<8x64xf32> to vector<8x57xf32>
    %550 = tpu.concatenate %549, %548 in 1 : vector<8x57xf32>, vector<8x7xf32> -> vector<8x64xf32>
    %551 = arith.addf %546, %550 : vector<8x64xf32>
    %552 = vector.broadcast %197 : vector<1x64xf32> to vector<8x64xf32>
    %553 = arith.mulf %551, %552 : vector<8x64xf32>
    %554 = vector.extract_strided_slice %537 {offsets = [8, 0], sizes = [8, 64], strides = [1, 1]} : vector<72x64xf32> to vector<8x64xf32>
    %cst_157 = arith.constant 0.000000e+00 : f32
    %555 = vector.broadcast %cst_157 : f32 to vector<8x8xf32>
    %556 = vector.extract_strided_slice %554 {offsets = [0, 0], sizes = [8, 56], strides = [1, 1]} : vector<8x64xf32> to vector<8x56xf32>
    %557 = tpu.concatenate %555, %556 in 1 : vector<8x8xf32>, vector<8x56xf32> -> vector<8x64xf32>
    %558 = vector.extract_strided_slice %537 {offsets = [32, 0], sizes = [8, 64], strides = [1, 1]} : vector<72x64xf32> to vector<8x64xf32>
    %559 = arith.addf %557, %558 : vector<8x64xf32>
    %560 = vector.extract_strided_slice %537 {offsets = [56, 0], sizes = [8, 64], strides = [1, 1]} : vector<72x64xf32> to vector<8x64xf32>
    %cst_158 = arith.constant 0.000000e+00 : f32
    %561 = vector.broadcast %cst_158 : f32 to vector<8x8xf32>
    %562 = vector.extract_strided_slice %560 {offsets = [0, 8], sizes = [8, 56], strides = [1, 1]} : vector<8x64xf32> to vector<8x56xf32>
    %563 = tpu.concatenate %562, %561 in 1 : vector<8x56xf32>, vector<8x8xf32> -> vector<8x64xf32>
    %564 = arith.addf %559, %563 : vector<8x64xf32>
    %565 = arith.addf %553, %564 : vector<8x64xf32>
    %566 = vector.extract_strided_slice %537 {offsets = [16, 0], sizes = [8, 64], strides = [1, 1]} : vector<72x64xf32> to vector<8x64xf32>
    %cst_159 = arith.constant 0.000000e+00 : f32
    %567 = vector.broadcast %cst_159 : f32 to vector<8x7xf32>
    %568 = vector.extract_strided_slice %566 {offsets = [0, 0], sizes = [8, 57], strides = [1, 1]} : vector<8x64xf32> to vector<8x57xf32>
    %569 = tpu.concatenate %567, %568 in 1 : vector<8x7xf32>, vector<8x57xf32> -> vector<8x64xf32>
    %570 = vector.extract_strided_slice %537 {offsets = [40, 0], sizes = [8, 64], strides = [1, 1]} : vector<72x64xf32> to vector<8x64xf32>
    %cst_160 = arith.constant 0.000000e+00 : f32
    %571 = vector.broadcast %cst_160 : f32 to vector<8x1xf32>
    %572 = vector.extract_strided_slice %570 {offsets = [0, 1], sizes = [8, 63], strides = [1, 1]} : vector<8x64xf32> to vector<8x63xf32>
    %573 = tpu.concatenate %572, %571 in 1 : vector<8x63xf32>, vector<8x1xf32> -> vector<8x64xf32>
    %574 = arith.addf %569, %573 : vector<8x64xf32>
    %575 = vector.extract_strided_slice %537 {offsets = [64, 0], sizes = [8, 64], strides = [1, 1]} : vector<72x64xf32> to vector<8x64xf32>
    %cst_161 = arith.constant 0.000000e+00 : f32
    %576 = vector.broadcast %cst_161 : f32 to vector<8x9xf32>
    %577 = vector.extract_strided_slice %575 {offsets = [0, 9], sizes = [8, 55], strides = [1, 1]} : vector<8x64xf32> to vector<8x55xf32>
    %578 = tpu.concatenate %577, %576 in 1 : vector<8x55xf32>, vector<8x9xf32> -> vector<8x64xf32>
    %579 = arith.addf %574, %578 : vector<8x64xf32>
    %580 = vector.broadcast %202 : vector<1x64xf32> to vector<8x64xf32>
    %581 = arith.mulf %579, %580 : vector<8x64xf32>
    %582 = arith.addf %565, %581 : vector<8x64xf32>
    %cst_162 = arith.constant dense<0.000000e+00> : vector<8xf32>
    %583 = vector.multi_reduction <add>, %582, %cst_162 [1] : vector<8x64xf32> to vector<8xf32>
    %584 = vector.shape_cast %583 : vector<8xf32> to vector<8x1xf32>
    %cst_163 = arith.constant 1.562500e-02 : f32
    %585 = vector.broadcast %cst_163 : f32 to vector<8x1xf32>
    %586 = arith.mulf %584, %585 : vector<8x1xf32>
    %587 = arith.mulf %582, %582 : vector<8x64xf32>
    %cst_164 = arith.constant dense<0.000000e+00> : vector<8xf32>
    %588 = vector.multi_reduction <add>, %587, %cst_164 [1] : vector<8x64xf32> to vector<8xf32>
    %589 = vector.shape_cast %588 : vector<8xf32> to vector<8x1xf32>
    %cst_165 = arith.constant 1.562500e-02 : f32
    %590 = vector.broadcast %cst_165 : f32 to vector<8x1xf32>
    %591 = arith.mulf %589, %590 : vector<8x1xf32>
    %592 = arith.mulf %586, %586 : vector<8x1xf32>
    %593 = arith.subf %591, %592 : vector<8x1xf32>
    %cst_166 = arith.constant 0.000000e+00 : f32
    %594 = vector.broadcast %cst_166 : f32 to vector<8x1xf32>
    %595 = arith.maximumf %593, %594 : vector<8x1xf32>
    %596 = vector.broadcast %586 : vector<8x1xf32> to vector<8x64xf32>
    %597 = arith.subf %582, %596 : vector<8x64xf32>
    %cst_167 = arith.constant 9.99999974E-6 : f32
    %598 = vector.broadcast %cst_167 : f32 to vector<8x1xf32>
    %599 = arith.addf %595, %598 : vector<8x1xf32>
    %600 = math.rsqrt %599 : vector<8x1xf32>
    %601 = vector.broadcast %600 : vector<8x1xf32> to vector<8x64xf32>
    %602 = arith.mulf %597, %601 : vector<8x64xf32>
    %cst_168 = arith.constant 0.000000e+00 : f32
    %603 = vector.broadcast %cst_168 : f32 to vector<8x64xf32>
    %604 = arith.maximumf %602, %603 : vector<8x64xf32>
    %c0_169 = arith.constant 0 : index
    %c0_170 = arith.constant 0 : index
    %605 = vector.load %arg9[%c0_169, %c0_170] : memref<72x8xbf16, #tpu.memory_space<vmem>>, vector<72x8xbf16>
    %606 = arith.truncf %604 : vector<8x64xf32> to vector<8x64xbf16>
    %cst_171 = arith.constant dense<0.000000e+00> : vector<72x64xf32>
    %607 = tpu.matmul %605, %606, %cst_171 {dimension_numbers = #tpu.dot_dimension_numbers<[1], [0], [0], [1], [0, 0, 1, 1], [], []>} : vector<72x8xbf16>, vector<8x64xbf16>, vector<72x64xf32> -> vector<72x64xf32>
    %608 = vector.extract_strided_slice %607 {offsets = [0, 0], sizes = [8, 64], strides = [1, 1]} : vector<72x64xf32> to vector<8x64xf32>
    %cst_172 = arith.constant 0.000000e+00 : f32
    %609 = vector.broadcast %cst_172 : f32 to vector<8x9xf32>
    %610 = vector.extract_strided_slice %608 {offsets = [0, 0], sizes = [8, 55], strides = [1, 1]} : vector<8x64xf32> to vector<8x55xf32>
    %611 = tpu.concatenate %609, %610 in 1 : vector<8x9xf32>, vector<8x55xf32> -> vector<8x64xf32>
    %612 = vector.extract_strided_slice %607 {offsets = [24, 0], sizes = [8, 64], strides = [1, 1]} : vector<72x64xf32> to vector<8x64xf32>
    %cst_173 = arith.constant 0.000000e+00 : f32
    %613 = vector.broadcast %cst_173 : f32 to vector<8x1xf32>
    %614 = vector.extract_strided_slice %612 {offsets = [0, 0], sizes = [8, 63], strides = [1, 1]} : vector<8x64xf32> to vector<8x63xf32>
    %615 = tpu.concatenate %613, %614 in 1 : vector<8x1xf32>, vector<8x63xf32> -> vector<8x64xf32>
    %616 = arith.addf %611, %615 : vector<8x64xf32>
    %617 = vector.extract_strided_slice %607 {offsets = [48, 0], sizes = [8, 64], strides = [1, 1]} : vector<72x64xf32> to vector<8x64xf32>
    %cst_174 = arith.constant 0.000000e+00 : f32
    %618 = vector.broadcast %cst_174 : f32 to vector<8x7xf32>
    %619 = vector.extract_strided_slice %617 {offsets = [0, 7], sizes = [8, 57], strides = [1, 1]} : vector<8x64xf32> to vector<8x57xf32>
    %620 = tpu.concatenate %619, %618 in 1 : vector<8x57xf32>, vector<8x7xf32> -> vector<8x64xf32>
    %621 = arith.addf %616, %620 : vector<8x64xf32>
    %622 = vector.broadcast %197 : vector<1x64xf32> to vector<8x64xf32>
    %623 = arith.mulf %621, %622 : vector<8x64xf32>
    %624 = vector.extract_strided_slice %607 {offsets = [8, 0], sizes = [8, 64], strides = [1, 1]} : vector<72x64xf32> to vector<8x64xf32>
    %cst_175 = arith.constant 0.000000e+00 : f32
    %625 = vector.broadcast %cst_175 : f32 to vector<8x8xf32>
    %626 = vector.extract_strided_slice %624 {offsets = [0, 0], sizes = [8, 56], strides = [1, 1]} : vector<8x64xf32> to vector<8x56xf32>
    %627 = tpu.concatenate %625, %626 in 1 : vector<8x8xf32>, vector<8x56xf32> -> vector<8x64xf32>
    %628 = vector.extract_strided_slice %607 {offsets = [32, 0], sizes = [8, 64], strides = [1, 1]} : vector<72x64xf32> to vector<8x64xf32>
    %629 = arith.addf %627, %628 : vector<8x64xf32>
    %630 = vector.extract_strided_slice %607 {offsets = [56, 0], sizes = [8, 64], strides = [1, 1]} : vector<72x64xf32> to vector<8x64xf32>
    %cst_176 = arith.constant 0.000000e+00 : f32
    %631 = vector.broadcast %cst_176 : f32 to vector<8x8xf32>
    %632 = vector.extract_strided_slice %630 {offsets = [0, 8], sizes = [8, 56], strides = [1, 1]} : vector<8x64xf32> to vector<8x56xf32>
    %633 = tpu.concatenate %632, %631 in 1 : vector<8x56xf32>, vector<8x8xf32> -> vector<8x64xf32>
    %634 = arith.addf %629, %633 : vector<8x64xf32>
    %635 = arith.addf %623, %634 : vector<8x64xf32>
    %636 = vector.extract_strided_slice %607 {offsets = [16, 0], sizes = [8, 64], strides = [1, 1]} : vector<72x64xf32> to vector<8x64xf32>
    %cst_177 = arith.constant 0.000000e+00 : f32
    %637 = vector.broadcast %cst_177 : f32 to vector<8x7xf32>
    %638 = vector.extract_strided_slice %636 {offsets = [0, 0], sizes = [8, 57], strides = [1, 1]} : vector<8x64xf32> to vector<8x57xf32>
    %639 = tpu.concatenate %637, %638 in 1 : vector<8x7xf32>, vector<8x57xf32> -> vector<8x64xf32>
    %640 = vector.extract_strided_slice %607 {offsets = [40, 0], sizes = [8, 64], strides = [1, 1]} : vector<72x64xf32> to vector<8x64xf32>
    %cst_178 = arith.constant 0.000000e+00 : f32
    %641 = vector.broadcast %cst_178 : f32 to vector<8x1xf32>
    %642 = vector.extract_strided_slice %640 {offsets = [0, 1], sizes = [8, 63], strides = [1, 1]} : vector<8x64xf32> to vector<8x63xf32>
    %643 = tpu.concatenate %642, %641 in 1 : vector<8x63xf32>, vector<8x1xf32> -> vector<8x64xf32>
    %644 = arith.addf %639, %643 : vector<8x64xf32>
    %645 = vector.extract_strided_slice %607 {offsets = [64, 0], sizes = [8, 64], strides = [1, 1]} : vector<72x64xf32> to vector<8x64xf32>
    %cst_179 = arith.constant 0.000000e+00 : f32
    %646 = vector.broadcast %cst_179 : f32 to vector<8x9xf32>
    %647 = vector.extract_strided_slice %645 {offsets = [0, 9], sizes = [8, 55], strides = [1, 1]} : vector<8x64xf32> to vector<8x55xf32>
    %648 = tpu.concatenate %647, %646 in 1 : vector<8x55xf32>, vector<8x9xf32> -> vector<8x64xf32>
    %649 = arith.addf %644, %648 : vector<8x64xf32>
    %650 = vector.broadcast %202 : vector<1x64xf32> to vector<8x64xf32>
    %651 = arith.mulf %649, %650 : vector<8x64xf32>
    %652 = arith.addf %635, %651 : vector<8x64xf32>
    %cst_180 = arith.constant dense<0.000000e+00> : vector<8xf32>
    %653 = vector.multi_reduction <add>, %652, %cst_180 [1] : vector<8x64xf32> to vector<8xf32>
    %654 = vector.shape_cast %653 : vector<8xf32> to vector<8x1xf32>
    %cst_181 = arith.constant 1.562500e-02 : f32
    %655 = vector.broadcast %cst_181 : f32 to vector<8x1xf32>
    %656 = arith.mulf %654, %655 : vector<8x1xf32>
    %657 = arith.mulf %652, %652 : vector<8x64xf32>
    %cst_182 = arith.constant dense<0.000000e+00> : vector<8xf32>
    %658 = vector.multi_reduction <add>, %657, %cst_182 [1] : vector<8x64xf32> to vector<8xf32>
    %659 = vector.shape_cast %658 : vector<8xf32> to vector<8x1xf32>
    %cst_183 = arith.constant 1.562500e-02 : f32
    %660 = vector.broadcast %cst_183 : f32 to vector<8x1xf32>
    %661 = arith.mulf %659, %660 : vector<8x1xf32>
    %662 = arith.mulf %656, %656 : vector<8x1xf32>
    %663 = arith.subf %661, %662 : vector<8x1xf32>
    %cst_184 = arith.constant 0.000000e+00 : f32
    %664 = vector.broadcast %cst_184 : f32 to vector<8x1xf32>
    %665 = arith.maximumf %663, %664 : vector<8x1xf32>
    %666 = vector.broadcast %656 : vector<8x1xf32> to vector<8x64xf32>
    %667 = arith.subf %652, %666 : vector<8x64xf32>
    %cst_185 = arith.constant 9.99999974E-6 : f32
    %668 = vector.broadcast %cst_185 : f32 to vector<8x1xf32>
    %669 = arith.addf %665, %668 : vector<8x1xf32>
    %670 = math.rsqrt %669 : vector<8x1xf32>
    %671 = vector.broadcast %670 : vector<8x1xf32> to vector<8x64xf32>
    %672 = arith.mulf %667, %671 : vector<8x64xf32>
    %cst_186 = arith.constant 0.000000e+00 : f32
    %673 = vector.broadcast %cst_186 : f32 to vector<8x64xf32>
    %674 = arith.maximumf %672, %673 : vector<8x64xf32>
    %675 = arith.truncf %674 : vector<8x64xf32> to vector<8x64xbf16>
    %c0_187 = arith.constant 0 : index
    %c0_188 = arith.constant 0 : index
    %676 = vector.load %arg13[%c0_187, %c0_188] : memref<64x256xbf16, #tpu.memory_space<vmem>>, vector<64x256xbf16>
    %cst_189 = arith.constant dense<0.000000e+00> : vector<8x256xf32>
    %677 = tpu.matmul %675, %676, %cst_189 {dimension_numbers = #tpu.dot_dimension_numbers<[1], [0], [0], [1], [0, 0, 1, 1], [], []>} : vector<8x64xbf16>, vector<64x256xbf16>, vector<8x256xf32> -> vector<8x256xf32>
    %678 = tpu.concatenate %677, %154 in 0 : vector<8x256xf32>, vector<8x256xf32> -> vector<16x256xf32>
    %c0_190 = arith.constant 0 : index
    %c0_191 = arith.constant 0 : index
    %679 = vector.load %arg10[%c0_190, %c0_191] : memref<72x16xbf16, #tpu.memory_space<vmem>>, vector<72x16xbf16>
    %680 = arith.truncf %678 : vector<16x256xf32> to vector<16x256xbf16>
    %cst_192 = arith.constant dense<0.000000e+00> : vector<72x256xf32>
    %681 = tpu.matmul %679, %680, %cst_192 {dimension_numbers = #tpu.dot_dimension_numbers<[1], [0], [0], [1], [0, 0, 1, 1], [], []>} : vector<72x16xbf16>, vector<16x256xbf16>, vector<72x256xf32> -> vector<72x256xf32>
    %682 = vector.extract_strided_slice %681 {offsets = [0, 0], sizes = [8, 256], strides = [1, 1]} : vector<72x256xf32> to vector<8x256xf32>
    %cst_193 = arith.constant 0.000000e+00 : f32
    %683 = vector.broadcast %cst_193 : f32 to vector<8x17xf32>
    %684 = vector.extract_strided_slice %682 {offsets = [0, 0], sizes = [8, 239], strides = [1, 1]} : vector<8x256xf32> to vector<8x239xf32>
    %685 = tpu.concatenate %683, %684 in 1 : vector<8x17xf32>, vector<8x239xf32> -> vector<8x256xf32>
    %686 = vector.extract_strided_slice %681 {offsets = [24, 0], sizes = [8, 256], strides = [1, 1]} : vector<72x256xf32> to vector<8x256xf32>
    %cst_194 = arith.constant 0.000000e+00 : f32
    %687 = vector.broadcast %cst_194 : f32 to vector<8x1xf32>
    %688 = vector.extract_strided_slice %686 {offsets = [0, 0], sizes = [8, 255], strides = [1, 1]} : vector<8x256xf32> to vector<8x255xf32>
    %689 = tpu.concatenate %687, %688 in 1 : vector<8x1xf32>, vector<8x255xf32> -> vector<8x256xf32>
    %690 = arith.addf %685, %689 : vector<8x256xf32>
    %691 = vector.extract_strided_slice %681 {offsets = [48, 0], sizes = [8, 256], strides = [1, 1]} : vector<72x256xf32> to vector<8x256xf32>
    %cst_195 = arith.constant 0.000000e+00 : f32
    %692 = vector.broadcast %cst_195 : f32 to vector<8x15xf32>
    %693 = vector.extract_strided_slice %691 {offsets = [0, 15], sizes = [8, 241], strides = [1, 1]} : vector<8x256xf32> to vector<8x241xf32>
    %694 = tpu.concatenate %693, %692 in 1 : vector<8x241xf32>, vector<8x15xf32> -> vector<8x256xf32>
    %695 = arith.addf %690, %694 : vector<8x256xf32>
    %696 = vector.broadcast %9 : vector<1x256xf32> to vector<8x256xf32>
    %697 = arith.mulf %695, %696 : vector<8x256xf32>
    %698 = vector.extract_strided_slice %681 {offsets = [8, 0], sizes = [8, 256], strides = [1, 1]} : vector<72x256xf32> to vector<8x256xf32>
    %cst_196 = arith.constant 0.000000e+00 : f32
    %699 = vector.broadcast %cst_196 : f32 to vector<8x16xf32>
    %700 = vector.extract_strided_slice %698 {offsets = [0, 0], sizes = [8, 240], strides = [1, 1]} : vector<8x256xf32> to vector<8x240xf32>
    %701 = tpu.concatenate %699, %700 in 1 : vector<8x16xf32>, vector<8x240xf32> -> vector<8x256xf32>
    %702 = vector.extract_strided_slice %681 {offsets = [32, 0], sizes = [8, 256], strides = [1, 1]} : vector<72x256xf32> to vector<8x256xf32>
    %703 = arith.addf %701, %702 : vector<8x256xf32>
    %704 = vector.extract_strided_slice %681 {offsets = [56, 0], sizes = [8, 256], strides = [1, 1]} : vector<72x256xf32> to vector<8x256xf32>
    %cst_197 = arith.constant 0.000000e+00 : f32
    %705 = vector.broadcast %cst_197 : f32 to vector<8x16xf32>
    %706 = vector.extract_strided_slice %704 {offsets = [0, 16], sizes = [8, 240], strides = [1, 1]} : vector<8x256xf32> to vector<8x240xf32>
    %707 = tpu.concatenate %706, %705 in 1 : vector<8x240xf32>, vector<8x16xf32> -> vector<8x256xf32>
    %708 = arith.addf %703, %707 : vector<8x256xf32>
    %709 = arith.addf %697, %708 : vector<8x256xf32>
    %710 = vector.extract_strided_slice %681 {offsets = [16, 0], sizes = [8, 256], strides = [1, 1]} : vector<72x256xf32> to vector<8x256xf32>
    %cst_198 = arith.constant 0.000000e+00 : f32
    %711 = vector.broadcast %cst_198 : f32 to vector<8x15xf32>
    %712 = vector.extract_strided_slice %710 {offsets = [0, 0], sizes = [8, 241], strides = [1, 1]} : vector<8x256xf32> to vector<8x241xf32>
    %713 = tpu.concatenate %711, %712 in 1 : vector<8x15xf32>, vector<8x241xf32> -> vector<8x256xf32>
    %714 = vector.extract_strided_slice %681 {offsets = [40, 0], sizes = [8, 256], strides = [1, 1]} : vector<72x256xf32> to vector<8x256xf32>
    %cst_199 = arith.constant 0.000000e+00 : f32
    %715 = vector.broadcast %cst_199 : f32 to vector<8x1xf32>
    %716 = vector.extract_strided_slice %714 {offsets = [0, 1], sizes = [8, 255], strides = [1, 1]} : vector<8x256xf32> to vector<8x255xf32>
    %717 = tpu.concatenate %716, %715 in 1 : vector<8x255xf32>, vector<8x1xf32> -> vector<8x256xf32>
    %718 = arith.addf %713, %717 : vector<8x256xf32>
    %719 = vector.extract_strided_slice %681 {offsets = [64, 0], sizes = [8, 256], strides = [1, 1]} : vector<72x256xf32> to vector<8x256xf32>
    %cst_200 = arith.constant 0.000000e+00 : f32
    %720 = vector.broadcast %cst_200 : f32 to vector<8x17xf32>
    %721 = vector.extract_strided_slice %719 {offsets = [0, 17], sizes = [8, 239], strides = [1, 1]} : vector<8x256xf32> to vector<8x239xf32>
    %722 = tpu.concatenate %721, %720 in 1 : vector<8x239xf32>, vector<8x17xf32> -> vector<8x256xf32>
    %723 = arith.addf %718, %722 : vector<8x256xf32>
    %724 = vector.broadcast %14 : vector<1x256xf32> to vector<8x256xf32>
    %725 = arith.mulf %723, %724 : vector<8x256xf32>
    %726 = arith.addf %709, %725 : vector<8x256xf32>
    %cst_201 = arith.constant dense<0.000000e+00> : vector<8xf32>
    %727 = vector.multi_reduction <add>, %726, %cst_201 [1] : vector<8x256xf32> to vector<8xf32>
    %728 = vector.shape_cast %727 : vector<8xf32> to vector<8x1xf32>
    %cst_202 = arith.constant 3.906250e-03 : f32
    %729 = vector.broadcast %cst_202 : f32 to vector<8x1xf32>
    %730 = arith.mulf %728, %729 : vector<8x1xf32>
    %731 = arith.mulf %726, %726 : vector<8x256xf32>
    %cst_203 = arith.constant dense<0.000000e+00> : vector<8xf32>
    %732 = vector.multi_reduction <add>, %731, %cst_203 [1] : vector<8x256xf32> to vector<8xf32>
    %733 = vector.shape_cast %732 : vector<8xf32> to vector<8x1xf32>
    %cst_204 = arith.constant 3.906250e-03 : f32
    %734 = vector.broadcast %cst_204 : f32 to vector<8x1xf32>
    %735 = arith.mulf %733, %734 : vector<8x1xf32>
    %736 = arith.mulf %730, %730 : vector<8x1xf32>
    %737 = arith.subf %735, %736 : vector<8x1xf32>
    %cst_205 = arith.constant 0.000000e+00 : f32
    %738 = vector.broadcast %cst_205 : f32 to vector<8x1xf32>
    %739 = arith.maximumf %737, %738 : vector<8x1xf32>
    %740 = vector.broadcast %730 : vector<8x1xf32> to vector<8x256xf32>
    %741 = arith.subf %726, %740 : vector<8x256xf32>
    %cst_206 = arith.constant 9.99999974E-6 : f32
    %742 = vector.broadcast %cst_206 : f32 to vector<8x1xf32>
    %743 = arith.addf %739, %742 : vector<8x1xf32>
    %744 = math.rsqrt %743 : vector<8x1xf32>
    %745 = vector.broadcast %744 : vector<8x1xf32> to vector<8x256xf32>
    %746 = arith.mulf %741, %745 : vector<8x256xf32>
    %cst_207 = arith.constant 0.000000e+00 : f32
    %747 = vector.broadcast %cst_207 : f32 to vector<8x256xf32>
    %748 = arith.maximumf %746, %747 : vector<8x256xf32>
    %c0_208 = arith.constant 0 : index
    %c0_209 = arith.constant 0 : index
    %749 = vector.load %arg11[%c0_208, %c0_209] : memref<72x8xbf16, #tpu.memory_space<vmem>>, vector<72x8xbf16>
    %750 = arith.truncf %748 : vector<8x256xf32> to vector<8x256xbf16>
    %cst_210 = arith.constant dense<0.000000e+00> : vector<72x256xf32>
    %751 = tpu.matmul %749, %750, %cst_210 {dimension_numbers = #tpu.dot_dimension_numbers<[1], [0], [0], [1], [0, 0, 1, 1], [], []>} : vector<72x8xbf16>, vector<8x256xbf16>, vector<72x256xf32> -> vector<72x256xf32>
    %752 = vector.extract_strided_slice %751 {offsets = [0, 0], sizes = [8, 256], strides = [1, 1]} : vector<72x256xf32> to vector<8x256xf32>
    %cst_211 = arith.constant 0.000000e+00 : f32
    %753 = vector.broadcast %cst_211 : f32 to vector<8x17xf32>
    %754 = vector.extract_strided_slice %752 {offsets = [0, 0], sizes = [8, 239], strides = [1, 1]} : vector<8x256xf32> to vector<8x239xf32>
    %755 = tpu.concatenate %753, %754 in 1 : vector<8x17xf32>, vector<8x239xf32> -> vector<8x256xf32>
    %756 = vector.extract_strided_slice %751 {offsets = [24, 0], sizes = [8, 256], strides = [1, 1]} : vector<72x256xf32> to vector<8x256xf32>
    %cst_212 = arith.constant 0.000000e+00 : f32
    %757 = vector.broadcast %cst_212 : f32 to vector<8x1xf32>
    %758 = vector.extract_strided_slice %756 {offsets = [0, 0], sizes = [8, 255], strides = [1, 1]} : vector<8x256xf32> to vector<8x255xf32>
    %759 = tpu.concatenate %757, %758 in 1 : vector<8x1xf32>, vector<8x255xf32> -> vector<8x256xf32>
    %760 = arith.addf %755, %759 : vector<8x256xf32>
    %761 = vector.extract_strided_slice %751 {offsets = [48, 0], sizes = [8, 256], strides = [1, 1]} : vector<72x256xf32> to vector<8x256xf32>
    %cst_213 = arith.constant 0.000000e+00 : f32
    %762 = vector.broadcast %cst_213 : f32 to vector<8x15xf32>
    %763 = vector.extract_strided_slice %761 {offsets = [0, 15], sizes = [8, 241], strides = [1, 1]} : vector<8x256xf32> to vector<8x241xf32>
    %764 = tpu.concatenate %763, %762 in 1 : vector<8x241xf32>, vector<8x15xf32> -> vector<8x256xf32>
    %765 = arith.addf %760, %764 : vector<8x256xf32>
    %766 = vector.broadcast %9 : vector<1x256xf32> to vector<8x256xf32>
    %767 = arith.mulf %765, %766 : vector<8x256xf32>
    %768 = vector.extract_strided_slice %751 {offsets = [8, 0], sizes = [8, 256], strides = [1, 1]} : vector<72x256xf32> to vector<8x256xf32>
    %cst_214 = arith.constant 0.000000e+00 : f32
    %769 = vector.broadcast %cst_214 : f32 to vector<8x16xf32>
    %770 = vector.extract_strided_slice %768 {offsets = [0, 0], sizes = [8, 240], strides = [1, 1]} : vector<8x256xf32> to vector<8x240xf32>
    %771 = tpu.concatenate %769, %770 in 1 : vector<8x16xf32>, vector<8x240xf32> -> vector<8x256xf32>
    %772 = vector.extract_strided_slice %751 {offsets = [32, 0], sizes = [8, 256], strides = [1, 1]} : vector<72x256xf32> to vector<8x256xf32>
    %773 = arith.addf %771, %772 : vector<8x256xf32>
    %774 = vector.extract_strided_slice %751 {offsets = [56, 0], sizes = [8, 256], strides = [1, 1]} : vector<72x256xf32> to vector<8x256xf32>
    %cst_215 = arith.constant 0.000000e+00 : f32
    %775 = vector.broadcast %cst_215 : f32 to vector<8x16xf32>
    %776 = vector.extract_strided_slice %774 {offsets = [0, 16], sizes = [8, 240], strides = [1, 1]} : vector<8x256xf32> to vector<8x240xf32>
    %777 = tpu.concatenate %776, %775 in 1 : vector<8x240xf32>, vector<8x16xf32> -> vector<8x256xf32>
    %778 = arith.addf %773, %777 : vector<8x256xf32>
    %779 = arith.addf %767, %778 : vector<8x256xf32>
    %780 = vector.extract_strided_slice %751 {offsets = [16, 0], sizes = [8, 256], strides = [1, 1]} : vector<72x256xf32> to vector<8x256xf32>
    %cst_216 = arith.constant 0.000000e+00 : f32
    %781 = vector.broadcast %cst_216 : f32 to vector<8x15xf32>
    %782 = vector.extract_strided_slice %780 {offsets = [0, 0], sizes = [8, 241], strides = [1, 1]} : vector<8x256xf32> to vector<8x241xf32>
    %783 = tpu.concatenate %781, %782 in 1 : vector<8x15xf32>, vector<8x241xf32> -> vector<8x256xf32>
    %784 = vector.extract_strided_slice %751 {offsets = [40, 0], sizes = [8, 256], strides = [1, 1]} : vector<72x256xf32> to vector<8x256xf32>
    %cst_217 = arith.constant 0.000000e+00 : f32
    %785 = vector.broadcast %cst_217 : f32 to vector<8x1xf32>
    %786 = vector.extract_strided_slice %784 {offsets = [0, 1], sizes = [8, 255], strides = [1, 1]} : vector<8x256xf32> to vector<8x255xf32>
    %787 = tpu.concatenate %786, %785 in 1 : vector<8x255xf32>, vector<8x1xf32> -> vector<8x256xf32>
    %788 = arith.addf %783, %787 : vector<8x256xf32>
    %789 = vector.extract_strided_slice %751 {offsets = [64, 0], sizes = [8, 256], strides = [1, 1]} : vector<72x256xf32> to vector<8x256xf32>
    %cst_218 = arith.constant 0.000000e+00 : f32
    %790 = vector.broadcast %cst_218 : f32 to vector<8x17xf32>
    %791 = vector.extract_strided_slice %789 {offsets = [0, 17], sizes = [8, 239], strides = [1, 1]} : vector<8x256xf32> to vector<8x239xf32>
    %792 = tpu.concatenate %791, %790 in 1 : vector<8x239xf32>, vector<8x17xf32> -> vector<8x256xf32>
    %793 = arith.addf %788, %792 : vector<8x256xf32>
    %794 = vector.broadcast %14 : vector<1x256xf32> to vector<8x256xf32>
    %795 = arith.mulf %793, %794 : vector<8x256xf32>
    %796 = arith.addf %779, %795 : vector<8x256xf32>
    %cst_219 = arith.constant dense<0.000000e+00> : vector<8xf32>
    %797 = vector.multi_reduction <add>, %796, %cst_219 [1] : vector<8x256xf32> to vector<8xf32>
    %798 = vector.shape_cast %797 : vector<8xf32> to vector<8x1xf32>
    %cst_220 = arith.constant 3.906250e-03 : f32
    %799 = vector.broadcast %cst_220 : f32 to vector<8x1xf32>
    %800 = arith.mulf %798, %799 : vector<8x1xf32>
    %801 = arith.mulf %796, %796 : vector<8x256xf32>
    %cst_221 = arith.constant dense<0.000000e+00> : vector<8xf32>
    %802 = vector.multi_reduction <add>, %801, %cst_221 [1] : vector<8x256xf32> to vector<8xf32>
    %803 = vector.shape_cast %802 : vector<8xf32> to vector<8x1xf32>
    %cst_222 = arith.constant 3.906250e-03 : f32
    %804 = vector.broadcast %cst_222 : f32 to vector<8x1xf32>
    %805 = arith.mulf %803, %804 : vector<8x1xf32>
    %806 = arith.mulf %800, %800 : vector<8x1xf32>
    %807 = arith.subf %805, %806 : vector<8x1xf32>
    %cst_223 = arith.constant 0.000000e+00 : f32
    %808 = vector.broadcast %cst_223 : f32 to vector<8x1xf32>
    %809 = arith.maximumf %807, %808 : vector<8x1xf32>
    %810 = vector.broadcast %800 : vector<8x1xf32> to vector<8x256xf32>
    %811 = arith.subf %796, %810 : vector<8x256xf32>
    %cst_224 = arith.constant 9.99999974E-6 : f32
    %812 = vector.broadcast %cst_224 : f32 to vector<8x1xf32>
    %813 = arith.addf %809, %812 : vector<8x1xf32>
    %814 = math.rsqrt %813 : vector<8x1xf32>
    %815 = vector.broadcast %814 : vector<8x1xf32> to vector<8x256xf32>
    %816 = arith.mulf %811, %815 : vector<8x256xf32>
    %cst_225 = arith.constant 0.000000e+00 : f32
    %817 = vector.broadcast %cst_225 : f32 to vector<8x256xf32>
    %818 = arith.maximumf %816, %817 : vector<8x256xf32>
    %c0_226 = arith.constant 0 : index
    %c0_227 = arith.constant 0 : index
    %819 = vector.load %arg14[%c0_226, %c0_227] : memref<4x8xbf16, #tpu.memory_space<vmem>>, vector<4x8xbf16>
    %820 = arith.truncf %818 : vector<8x256xf32> to vector<8x256xbf16>
    %cst_228 = arith.constant dense<0.000000e+00> : vector<4x256xf32>
    %821 = tpu.matmul %819, %820, %cst_228 {dimension_numbers = #tpu.dot_dimension_numbers<[1], [0], [0], [1], [0, 0, 1, 1], [], []>} : vector<4x8xbf16>, vector<8x256xbf16>, vector<4x256xf32> -> vector<4x256xf32>
    %c0_229 = arith.constant 0 : index
    %c0_230 = arith.constant 0 : index
    %822 = vector.load %arg15[%c0_229, %c0_230] : memref<4x1xf32, #tpu.memory_space<vmem>>, vector<4x1xf32>
    %823 = vector.broadcast %822 : vector<4x1xf32> to vector<4x256xf32>
    %824 = arith.addf %821, %823 : vector<4x256xf32>
    %825 = vector.shape_cast %824 : vector<4x256xf32> to vector<1x4x256xf32>
    %c0_231 = arith.constant 0 : index
    %c0_232 = arith.constant 0 : index
    %c0_233 = arith.constant 0 : index
    %826 = vector.load %arg16[%c0_231, %c0_232, %c0_233] : memref<1x4x256xf32, #tpu.memory_space<vmem>>, vector<1x4x256xf32>
    tpu.vector_store %arg16[%c0_231, %c0_232, %c0_233], %825 {strides = array<i32>} : memref<1x4x256xf32, #tpu.memory_space<vmem>>, vector<1x4x256xf32>,
    return
  }
  func.func @transform_0(%arg0: i32) -> (i32, i32, i32) {
    %c0_i32 = arith.constant 0 : i32
    %c0_i32_0 = arith.constant 0 : i32
    %c0_i32_1 = arith.constant 0 : i32
    return %arg0, %c0_i32, %c0_i32_0 : i32, i32, i32
  }
  func.func @transform_1(%arg0: i32) -> (i32, i32) {
    %c0_i32 = arith.constant 0 : i32
    %c0_i32_0 = arith.constant 0 : i32
    %c0_i32_1 = arith.constant 0 : i32
    return %c0_i32, %c0_i32_0 : i32, i32
  }
  func.func @transform_2(%arg0: i32) -> (i32, i32) {
    %c0_i32 = arith.constant 0 : i32
    %c0_i32_0 = arith.constant 0 : i32
    %c0_i32_1 = arith.constant 0 : i32
    return %c0_i32, %c0_i32_0 : i32, i32
  }
  func.func @transform_3(%arg0: i32) -> (i32, i32) {
    %c0_i32 = arith.constant 0 : i32
    %c0_i32_0 = arith.constant 0 : i32
    %c0_i32_1 = arith.constant 0 : i32
    return %c0_i32, %c0_i32_0 : i32, i32
  }
  func.func @transform_4(%arg0: i32) -> (i32, i32) {
    %c0_i32 = arith.constant 0 : i32
    %c0_i32_0 = arith.constant 0 : i32
    %c0_i32_1 = arith.constant 0 : i32
    return %c0_i32, %c0_i32_0 : i32, i32
  }
  func.func @transform_5(%arg0: i32) -> (i32, i32) {
    %c0_i32 = arith.constant 0 : i32
    %c0_i32_0 = arith.constant 0 : i32
    %c0_i32_1 = arith.constant 0 : i32
    return %c0_i32, %c0_i32_0 : i32, i32
  }
  func.func @transform_6(%arg0: i32) -> (i32, i32) {
    %c0_i32 = arith.constant 0 : i32
    %c0_i32_0 = arith.constant 0 : i32
    %c0_i32_1 = arith.constant 0 : i32
    return %c0_i32, %c0_i32_0 : i32, i32
  }
  func.func @transform_7(%arg0: i32) -> (i32, i32) {
    %c0_i32 = arith.constant 0 : i32
    %c0_i32_0 = arith.constant 0 : i32
    %c0_i32_1 = arith.constant 0 : i32
    return %c0_i32, %c0_i32_0 : i32, i32
  }
  func.func @transform_8(%arg0: i32) -> (i32, i32) {
    %c0_i32 = arith.constant 0 : i32
    %c0_i32_0 = arith.constant 0 : i32
    %c0_i32_1 = arith.constant 0 : i32
    return %c0_i32, %c0_i32_0 : i32, i32
  }
  func.func @transform_9(%arg0: i32) -> (i32, i32) {
    %c0_i32 = arith.constant 0 : i32
    %c0_i32_0 = arith.constant 0 : i32
    %c0_i32_1 = arith.constant 0 : i32
    return %c0_i32, %c0_i32_0 : i32, i32
  }
  func.func @transform_10(%arg0: i32) -> (i32, i32) {
    %c0_i32 = arith.constant 0 : i32
    %c0_i32_0 = arith.constant 0 : i32
    %c0_i32_1 = arith.constant 0 : i32
    return %c0_i32, %c0_i32_0 : i32, i32
  }
  func.func @transform_11(%arg0: i32) -> (i32, i32) {
    %c0_i32 = arith.constant 0 : i32
    %c0_i32_0 = arith.constant 0 : i32
    %c0_i32_1 = arith.constant 0 : i32
    return %c0_i32, %c0_i32_0 : i32, i32
  }
  func.func @transform_12(%arg0: i32) -> (i32, i32) {
    %c0_i32 = arith.constant 0 : i32
    %c0_i32_0 = arith.constant 0 : i32
    %c0_i32_1 = arith.constant 0 : i32
    return %c0_i32, %c0_i32_0 : i32, i32
  }
  func.func @transform_13(%arg0: i32) -> (i32, i32) {
    %c0_i32 = arith.constant 0 : i32
    %c0_i32_0 = arith.constant 0 : i32
    %c0_i32_1 = arith.constant 0 : i32
    return %c0_i32, %c0_i32_0 : i32, i32
  }
  func.func @transform_14(%arg0: i32) -> (i32, i32) {
    %c0_i32 = arith.constant 0 : i32
    %c0_i32_0 = arith.constant 0 : i32
    %c0_i32_1 = arith.constant 0 : i32
    return %c0_i32, %c0_i32_0 : i32, i32
  }
  func.func @transform_15(%arg0: i32) -> (i32, i32, i32) {
    %c0_i32 = arith.constant 0 : i32
    %c0_i32_0 = arith.constant 0 : i32
    %c0_i32_1 = arith.constant 0 : i32
    return %arg0, %c0_i32, %c0_i32_0 : i32, i32, i32
  }
}

</mosaic_0001>

<bundles_post_ra>
// kernel: unet_forward.1
= control target key start
LH: loop header
LB: loop body
LE: loop exit
PB: predicated region body
PF: predicated region fallthrough
CT: control target
= control target key end

     0   :  { %s4769_s18 = smov 0   ;;  %s6201_s0 = inlined_call_operand.vmem [shape: f32[2,4,256], index: 0, kind: input, shape index: {}]   ;;  %s6202_s1 = inlined_call_operand.vmem [shape: bf16[72,4], index: 1, kind: input, shape index: {}]   ;;  %s6203_s2 = inlined_call_operand.vmem [shape: bf16[72,8], index: 2, kind: input, shape index: {}]   ;;  %s6204_s3 = inlined_call_operand.vmem [shape: bf16[144,8], index: 3, kind: input, shape index: {}]   ;;  %s6205_s4 = inlined_call_operand.vmem [shape: bf16[144,16], index: 4, kind: input, shape index: {}]   ;;  %s6206_s5 = inlined_call_operand.vmem [shape: bf16[144,16], index: 5, kind: input, shape index: {}]   ;;  %s6207_s6 = inlined_call_operand.vmem [shape: bf16[144,16], index: 6, kind: input, shape index: {}]   ;;  %s6208_s7 = inlined_call_operand.vmem [shape: bf16[72,32], index: 7, kind: input, shape index: {}]   ;;  %s6209_s8 = inlined_call_operand.vmem [shape: bf16[72,8], index: 8, kind: input, shape index: {}]   ;;  %s6210_s9 = inlined_call_operand.vmem [shape: bf16[72,16], index: 9, kind: input, shape index: {}]   ;;  %s6211_s10 = inlined_call_operand.vmem [shape: bf16[72,8], index: 10, kind: input, shape index: {}]   ;;  %s6212_s11 = inlined_call_operand.vmem [shape: bf16[16,64], index: 11, kind: input, shape index: {}]   ;;  %s6213_s12 = inlined_call_operand.vmem [shape: bf16[64,256], index: 12, kind: input, shape index: {}]   ;;  %s6214_s13 = inlined_call_operand.vmem [shape: bf16[4,8], index: 13, kind: input, shape index: {}]   ;;  %s6215_s14 = inlined_call_operand.vmem [shape: f32[4,1], index: 14, kind: input, shape index: {}]   ;;  %s6216_s15 = inlined_call_operand.vmem [shape: f32[2,4,256], index: 15, kind: output, shape index: {}]  }
   0x1   :  { %6265 = sst [smem:[#allocation2_spill]] %s6201_s0 }
   0x2 LB: > { %s3986_s19 = sadd.s32 4294967295, %s4663_s18   ;;  %p3990_p0 = scmp.ge.s32.totalorder %s4663_s18, 1  ;;  %s4663_s18 = sphi %s4769_s18, %s25_s18  }
   0x3   : > { %p437_p1 = scmp.lt.s32.totalorder %s4663_s18, 3 }
   0x5   : > { %p438_p2 = pnand %p3990_p0, %p437_p1 }
   0x6   : > { %p485_p3 = scmp.lt.s32.totalorder (!%p438_p2), %s3986_s19, 1  ;;  %v4665_v0 = vmov (!%p438_p2), 0   ;;  %vm563_vm0 = vcmask (!%p438_p2), 1041408   ;;  %s6266_s0 = sld [smem:[#allocation2_spill]] (!%p438_p2)  ;;  %vm6223_vm1 = vcmask (!%p438_p2), 31744   ;;  %v4550_v6 = vld [vmem:[%s6202_s1] sm:$0xff] (!%p438_p2)   ;;  %v497_v36 = vlaneseq (!%p438_p2) }
   0x7   : > { %441 = sbr.rel (%p438_p2) target bundleno = 6917 (0x1b05), region = 80  ;;  %602 = vmatprep.mubr.bf16.mxu0 (!%p438_p2), %v4665_v0  ;;  %869 = vmatprep.mubr.bf16.mxu1 (!%p438_p2), %v4665_v0  ;;  %v4551_v7 = vld [vmem:[%s6202_s1 + $0x8] sm:$0xff] (!%p438_p2)   ;;  %v4552_v8 = vld [vmem:[%s6202_s1 + $0x10] sm:$0xff] (!%p438_p2)   ;;  %v4553_v9 = vld [vmem:[%s6202_s1 + $0x18] sm:$0xff] (!%p438_p2)   ;;  %s6237_s22 = smov (!%p438_p2), 17   ;;  %vm6225_vm2 = vcmask (!%p438_p2), 7168  }
   0x8   : > { %4548 = vset.pattern.permute.xlu0 (!%p438_p2), %v4665_v0  ;;  %v4554_v10 = vld [vmem:[%s6202_s1 + $0x20] ss:$0 sps:$4 sm:$0xff] (!%p438_p2)   ;;  %s6233_s24 = smov (!%p438_p2), 15   ;;  %s6263_s25 = smov (!%p438_p2), 1   ;;  %v4833_v38 = vand.u32 (!%p438_p2), 127, %v497_v36  ;;  %vm6221_vm3 = vcmask (!%p438_p2), 138240  }
   0x9   : > { %s6261_s26 = smov (!%p438_p2), 127   ;;  %s6231_s27 = smov (!%p438_p2), 113   ;;  %vm6224_vm4 = vcmask (!%p438_p2), 130048   ;;  %vm6222_vm5 = vcmask (!%p438_p2), 121856   ;;  %vm6244_vm6 = vcmask (!%p438_p2), 1039360   ;;  %vm6220_vm7 = vcmask (!%p438_p2), 924672  }
   0xa   : > { %s6229_s28 = smov (!%p438_p2), 112   ;;  %s6218_s29 = smov (!%p438_p2), 111   ;;  %v499_v41 = vadd.s32 (!%p438_p2), 128, %v4833_v38  ;;  %v500_v44 = vand.u32 (!%p438_p2), 15, %v4833_v38  ;;  %vm6243_vm10 = vcmask (!%p438_p2), 916480   ;;  %vm6228_vm13 = vcmask (!%p438_p2), 908288  }
   0xb   : > { %vm6227_vm14 = vcmask (!%p438_p2), 1043456   ;;  %vm6226_vm15 = vcmask (!%p438_p2), 64512   ;;  %s6251_s30 = smov (!%p438_p2), 8   ;;  %s6249_s16 = smov (!%p438_p2), 7  }
   0xc   : > { %v501_v45 = vand.u32 (!%p438_p2), 15, %v499_v41  ;;  %vm4839_vm8 = vcmp.ne.s32.totalorder (!%p438_p2), %v500_v44, 0  ;;  %vm4849_vm11 = vcmp.ne.s32.totalorder (!%p438_p2), %v500_v44, 15  ;;  %s6247_s17 = smov (!%p438_p2), 121   ;;  %s6241_s21 = smov (!%p438_p2), 120  }
   0xe   : > { %s6514_s19 = smov (!%p485_p3, %s3986_s19), 1  ;;  %vm4843_vm9 = vcmp.ne.s32.totalorder %v501_v45, 0  ;;  %vm4857_vm12 = vcmp.ne.s32.totalorder %v501_v45, 15 }
   0xf   : > { %s6217_s20 = sshll.u32 %s6514_s19, 3 }
  0x10   : > { %s489_s23 = scalar_lea.vmem %s6266_s0, %s6217_s20  ;;  %s6275_s20 = smov 111  }
  0x11   : > { %v496_v1 = vld [vmem:[%s489_s23] sm:$0xff]  ;;  %s6235_s23 = smov 16   ;;  %s6456_s0 = smov 1  }
  0x12   : > { %v520_v2 = vcombine.high %v496_v1, %v496_v1  ;;  %v522_v3 = vpack.c.bf16 %v496_v1, %v496_v1 }
  0x14   : > { %v523_v4 = vpack.c.bf16 %v520_v2, %v520_v2  ;;  %v565_v5 = vsel %vm563_vm0, %v522_v3, 0 }
  0x16   : > { %4000 = vmatprep.subr.msk.bf16.mxu0 %vm563_vm0, %v523_v4 }
  0x17   : > { %571 = vmatpush1.bf16.msra.mxu0 %v565_v5 }
  0x1a   : > { %4001 = vmatmul.mubr.msk.bf16.vlgmr.msra.gmra.mrb[0].mxu0 %vm6223_vm1, %v4550_v6 }
  0x1b   : > { %612 = vmatprep.mubr.bf16.mxu0 %v4665_v0 }
  0x22   : > { %4002 = vmatmul.mubr.msk.bf16.gmra.mrb[4].mxu0 %vm6223_vm1, %v4551_v7 }
  0x23   : > { %622 = vmatprep.mubr.bf16.mxu0 %v4665_v0 }
  0x2a   : > { %4003 = vmatmul.mubr.msk.bf16.gmra.mrb[8].mxu0 %vm6223_vm1, %v4552_v8 }
  0x2b   : > { %632 = vmatprep.mubr.bf16.mxu0 %v4665_v0 }
  0x32   : > { %4004 = vmatmul.mubr.msk.bf16.gmra.mrb[12].mxu0 %vm6223_vm1, %v4553_v9 }
  0x33   : > { %642 = vmatprep.mubr.bf16.mxu0 %v4665_v0 }
  0x3a   : > { %4005 = vmatmul.mubr.msk.bf16.gmra.mrb[16].mxu0 %vm6223_vm1, %v4554_v10 }
  0xed   : > { %v604_v11 = vpop.f32.mrb[0].mxu0 }
  0xee   : > { %653 = vrot.lane.b32.xlu0 %v604_v11, %s6237_s22  ;;  %v606_v12 = vpop.f32.mrb[1].mxu0  ;;  %v4674_v11 = vmov 0.0  }
  0xef   : > { %v608_v13 = vpop.f32.mrb[2].mxu0 }
  0xf0   : > { %v610_v14 = vpop.f32.mrb[3].mxu0 }
  0xf1   : > { %694 = vrot.lane.b32.xlu1 %v610_v14, %s6235_s23 }
  0xf2   : > { %655 = vrot.lane.b32.xlu0 %v606_v12, %s6237_s22  ;;  %v4872_v12 = vsel %vm4839_vm8, 1.0, %v4674_v11 }
  0xf5   : > { %v614_v15 = vpop.f32.mrb[4].mxu0 }
  0xf6   : > { %692 = vrot.lane.b32.xlu0 %v608_v13, %s6235_s23  ;;  %v616_v16 = vpop.f32.mrb[5].mxu0  ;;  %v4877_v13 = vsel %vm4843_vm9, 1.0, %v4674_v11 }
  0xf7   : > { %722 = vrot.lane.b32.xlu1 %v616_v16, %s6233_s24  ;;  %v618_v17 = vpop.f32.mrb[6].mxu0 }
  0xf8   : > { %v620_v18 = vpop.f32.mrb[7].mxu0 }
  0xfa   : > { %720 = vrot.lane.b32.xlu0 %v614_v15, %s6233_s24 }
  0xfb   : > { %664 = vrot.lane.b32.xlu1 %v618_v17, %s6263_s25 }
  0xfd   : > { %v4819_v19 = vpop.f32.mrb[8].mxu0 }
  0xfe   : > { %v4821_v20 = vpop.f32.mrb[9].mxu0 }
  0xff   : > { %666 = vrot.lane.b32.xlu1 %v620_v18, %s6263_s25  ;;  %v628_v21 = vpop.f32.mrb[10].mxu0 }
 0x100   : > { %731 = vrot.lane.b32.xlu0 %v628_v21, %s6261_s26  ;;  %v630_v22 = vpop.f32.mrb[11].mxu0  ;;  %v4887_v21 = vsel %vm4857_vm12, 1.0, %v4674_v11 }
 0x103   : > { %733 = vrot.lane.b32.xlu1 %v630_v22, %s6261_s26 }
 0x105   : > { %v634_v23 = vpop.f32.mrb[12].mxu0 }
 0x106   : > { %677 = vrot.lane.b32.xlu0 %v634_v23, %s6231_s27  ;;  %v636_v24 = vpop.f32.mrb[13].mxu0 }
 0x107   : > { %679 = vrot.lane.b32.xlu1 %v636_v24, %s6231_s27  ;;  %v638_v25 = vpop.f32.mrb[14].mxu0 }
 0x108   : > { %v640_v26 = vpop.f32.mrb[15].mxu0 }
 0x10a   : > { %705 = vrot.lane.b32.xlu0 %v638_v25, %s6229_s28 }
 0x10b   : > { %707 = vrot.lane.b32.xlu1 %v640_v26, %s6229_s28 }
 0x10d   : > { %v644_v27 = vpop.f32.mrb[16].mxu0 }
 0x10e   : > { %744 = vrot.lane.b32.xlu0 %v644_v27, %s6218_s29  ;;  %v646_v28 = vpop.f32.mrb[17].mxu0 }
 0x10f   : > { %746 = vrot.lane.b32.xlu1 %v646_v28, %s6218_s29  ;;  %v648_v29 = vpop.f32.mrb[18].mxu0  ;;  %s6239_s29 = smov 119  }
 0x110   : > { %v649_v30 = vpop.f32.mrb[19].mxu0 }
 0x160   : > { %v654_v31 = vpop.permute.xlu0 %653 }
 0x161   : > { %v661_v52 = vsel %vm6221_vm3, 0.0, %v654_v31 }
 0x163   : > { %v695_v33 = vpop.permute.xlu1 %694 }
 0x164   : > { %v656_v32 = vpop.permute.xlu0 %655 }
 0x165   : > { %v658_v53 = vsel %vm6221_vm3, %v654_v31, %v656_v32 }
 0x168   : > { %v693_v35 = vpop.permute.xlu0 %692 }
 0x169   : > { %v723_v34 = vpop.permute.xlu1 %722  ;;  %v697_v55 = vsel %vm6224_vm4, %v693_v35, %v695_v33  ;;  %v700_v56 = vsel %vm6224_vm4, 0.0, %v693_v35 }
 0x16a   : > { %v701_v5 = vadd.f32 %v700_v56, %v4819_v19  ;;  %v702_v6 = vadd.f32 %v697_v55, %v4821_v20  ;;  %v4882_v20 = vsel %vm4849_vm11, 1.0, %v4674_v11 }
 0x16c   : > { %v721_v39 = vpop.permute.xlu0 %720 }
 0x16d   : > { %v665_v37 = vpop.permute.xlu1 %664  ;;  %v725_v9 = vsel %vm6222_vm5, %v721_v39, %v723_v34  ;;  %v728_v10 = vsel %vm6222_vm5, 0.0, %v721_v39 }
 0x16e   : > { %v672_v48 = vsel %vm6225_vm2, 0.0, %v665_v37 }
 0x16f   : > { %v673_v60 = vadd.f32 %v672_v48, %v661_v52 }
 0x171   : > { %v667_v40 = vpop.permute.xlu1 %666 }
 0x172   : > { %v732_v42 = vpop.permute.xlu0 %731  ;;  %v669_v49 = vsel %vm6225_vm2, %v665_v37, %v667_v40 }
 0x173   : > { %v674_v61 = vadd.f32 %v669_v49, %v658_v53 }
 0x175   : > { %v734_v43 = vpop.permute.xlu1 %733 }
 0x176   : > { %v736_v1 = vsel %vm6244_vm6, %v732_v42, %v734_v43  ;;  %v739_v2 = vsel %vm6244_vm6, %v734_v43, 0.0 }
 0x177   : > { %v740_v15 = vadd.f32 %v736_v1, %v728_v10  ;;  %v741_v16 = vadd.f32 %v739_v2, %v725_v9 }
 0x178   : > { %v678_v46 = vpop.permute.xlu0 %677 }
 0x179   : > { %v680_v47 = vpop.permute.xlu1 %679 }
 0x17a   : > { %v682_v57 = vsel %vm6220_vm7, %v678_v46, %v680_v47  ;;  %v685_v58 = vsel %vm6220_vm7, %v680_v47, 0.0 }
 0x17b   : > { %v686_v7 = vadd.f32 %v682_v57, %v673_v60  ;;  %v687_v8 = vadd.f32 %v685_v58, %v674_v61  ;;  %v4555_v58 = vld [vmem:[%s6203_s2] sm:$0xff]   ;;  %v4557_v60 = vld [vmem:[%s6203_s2 + $0x10] sm:$0xff]   ;;  %v4558_v61 = vld [vmem:[%s6203_s2 + $0x18] sm:$0xff]  }
 0x17c   : > { %v706_v59 = vpop.permute.xlu0 %705 }
 0x17d   : > { %v708_v62 = vpop.permute.xlu1 %707  ;;  %v688_v24 = vmul.f32 %v686_v7, %v4872_v12  ;;  %v689_v25 = vmul.f32 %v687_v8, %v4877_v13 }
 0x17e   : > { %v710_v3 = vsel %vm6243_vm10, %v706_v59, %v708_v62  ;;  %v713_v4 = vsel %vm6243_vm10, %v708_v62, 0.0  ;;  %v4556_v59 = vld [vmem:[%s6203_s2 + $0x8] sm:$0xff]   ;;  %v4559_v62 = vld [vmem:[%s6203_s2 + $0x20] ss:$0 sps:$4 sm:$0xff]  }
 0x17f   : > { %v714_v17 = vadd.f32 %v710_v3, %v701_v5  ;;  %v715_v18 = vadd.f32 %v713_v4, %v702_v6 }
 0x180   : > { %v745_v14 = vpop.permute.xlu0 %744 }
 0x181   : > { %v747_v19 = vpop.permute.xlu1 %746  ;;  %v716_v28 = vadd.f32 %v714_v17, %v688_v24  ;;  %v717_v29 = vadd.f32 %v715_v18, %v689_v25 }
 0x182   : > { %v749_v22 = vsel %vm6228_vm13, %v745_v14, %v747_v19  ;;  %v752_v23 = vsel %vm6228_vm13, %v747_v19, 0.0 }
 0x183   : > { %v753_v26 = vadd.f32 %v749_v22, %v740_v15  ;;  %v754_v27 = vadd.f32 %v752_v23, %v741_v16 }
 0x185   : > { %v755_v30 = vmul.f32 %v753_v26, %v4882_v20  ;;  %v756_v31 = vmul.f32 %v754_v27, %v4887_v21 }
 0x187   : > { %v757_v32 = vadd.f32 %v755_v30, %v716_v28  ;;  %v758_v33 = vadd.f32 %v756_v31, %v717_v29 }
 0x189   : > { %v759_v34 = vadd.f32 %v758_v33, %v757_v32  ;;  %v763_v35 = vmul.f32 %v757_v32, %v757_v32  ;;  %v764_v37 = vmul.f32 %v758_v33, %v758_v33 }
 0x18b   : > { %760 = vadd.xlane.f32.xlu0 %v759_v34  ;;  %v765_v39 = vadd.f32 %v764_v37, %v763_v35 }
 0x18d   : > { %766 = vadd.xlane.f32.xlu1 %v765_v39 }
 0x218   : > { %v761_v40 = vpop.xlane.xlu0 %760 }
 0x219   : > { %v762_v41 = vmul.f32 0.00390625, %v761_v40 }
 0x21a   : > { %v767_v42 = vpop.xlane.xlu1 %766 }
 0x21b   : > { %v768_v43 = vmul.f32 0.00390625, %v767_v42  ;;  %v769_v44 = vmul.f32 %v762_v41, %v762_v41  ;;  %v773_v48 = vsub.f32 %v758_v33, %v762_v41  ;;  %v772_v49 = vsub.f32 %v757_v32, %v762_v41 }
 0x21d   : > { %v770_v45 = vsub.f32 %v768_v43, %v769_v44 }
 0x21f   : > { %v771_v46 = vmax.f32 %v770_v45, 0.0 }
 0x221   : > { %v774_v47 = vadd.f32 1e-05, %v771_v46 }
 0x223   : > { %4629 = vrsqrt.f32 %v774_v47 }
 0x22d   : > { %v4630_v50 = vpop.eup %4629 }
 0x22e   : > { %v777_v51 = vmul.f32 %v4630_v50, %v773_v48  ;;  %v776_v52 = vmul.f32 %v4630_v50, %v772_v49 }
 0x230   : > { %v779_v53 = vmax.f32 %v777_v51, 0.0  ;;  %v778_v54 = vmax.f32 %v776_v52, 0.0 }
 0x232   : > { %v790_v55 = vpack.c.bf16 %v779_v53, %v779_v53  ;;  %v789_v56 = vpack.c.bf16 %v778_v54, %v778_v54 }
 0x234   : > { %4011 = vmatprep.subr.msk.bf16.mxu1 %vm6227_vm14, %v790_v55  ;;  %v832_v57 = vsel %vm6227_vm14, %v789_v56, 0 }
 0x235   : > { %838 = vmatpush1.bf16.msra.mxu1 %v832_v57 }
 0x236   : > { %4270 = vmatprep.subr.bf16.mxu1 %v4674_v11 }
 0x238   : > { %4012 = vmatmul.mubr.msk.bf16.vlgmr.msra.gmra.mrb[0].mxu1 %vm6226_vm15, %v4555_v58 }
 0x239   : > { %879 = vmatprep.mubr.bf16.mxu1 %v4665_v0 }
 0x240   : > { %4013 = vmatmul.mubr.msk.bf16.gmra.mrb[4].mxu1 %vm6226_vm15, %v4556_v59 }
 0x241   : > { %889 = vmatprep.mubr.bf16.mxu1 %v4665_v0 }
 0x248   : > { %4014 = vmatmul.mubr.msk.bf16.gmra.mrb[8].mxu1 %vm6226_vm15, %v4557_v60 }
 0x249   : > { %899 = vmatprep.mubr.bf16.mxu1 %v4665_v0 }
 0x250   : > { %4015 = vmatmul.mubr.msk.bf16.gmra.mrb[12].mxu1 %vm6226_vm15, %v4558_v61 }
 0x251   : > { %909 = vmatprep.mubr.bf16.mxu1 %v4665_v0 }
 0x258   : > { %4016 = vmatmul.mubr.msk.bf16.gmra.mrb[16].mxu1 %vm6226_vm15, %v4559_v62 }
 0x30b   : > { %v871_v63 = vpop.f32.mrb[0].mxu1 }
 0x30c   : > { %920 = vrot.lane.b32.xlu0 %v871_v63, %s6237_s22  ;;  %v873_v1 = vpop.f32.mrb[1].mxu1 }
 0x30d   : > { %922 = vrot.lane.b32.xlu1 %v873_v1, %s6237_s22  ;;  %v875_v2 = vpop.f32.mrb[2].mxu1  ;;  %s6255_s22 = smov 123  }
 0x30e   : > { %v877_v3 = vpop.f32.mrb[3].mxu1 }
 0x310   : > { %956 = vrot.lane.b32.xlu0 %v875_v2, %s6235_s23 }
 0x311   : > { %958 = vrot.lane.b32.xlu1 %v877_v3, %s6235_s23  ;;  %s4684_s23 = smov 4  }
 0x313   : > { %v881_v4 = vpop.f32.mrb[4].mxu1 }
 0x314   : > { %982 = vrot.lane.b32.xlu0 %v881_v4, %s6233_s24  ;;  %v883_v5 = vpop.f32.mrb[5].mxu1 }
 0x315   : > { %984 = vrot.lane.b32.xlu1 %v883_v5, %s6233_s24  ;;  %v885_v6 = vpop.f32.mrb[6].mxu1  ;;  %s6259_s24 = smov 125  }
 0x316   : > { %v887_v7 = vpop.f32.mrb[7].mxu1 }
 0x318   : > { %930 = vrot.lane.b32.xlu0 %v885_v6, %s6263_s25 }
 0x319   : > { %932 = vrot.lane.b32.xlu1 %v887_v7, %s6263_s25 }
 0x31b   : > { %v891_v8 = vpop.f32.mrb[8].mxu1 }
 0x31c   : > { %v893_v9 = vpop.f32.mrb[9].mxu1 }
 0x31d   : > { %v895_v10 = vpop.f32.mrb[10].mxu1 }
 0x31e   : > { %992 = vrot.lane.b32.xlu0 %v895_v10, %s6261_s26  ;;  %v897_v14 = vpop.f32.mrb[11].mxu1 }
 0x31f   : > { %994 = vrot.lane.b32.xlu1 %v897_v14, %s6261_s26 }
 0x323   : > { %v901_v15 = vpop.f32.mrb[12].mxu1 }
 0x324   : > { %942 = vrot.lane.b32.xlu0 %v901_v15, %s6231_s27  ;;  %v903_v16 = vpop.f32.mrb[13].mxu1 }
 0x325   : > { %944 = vrot.lane.b32.xlu1 %v903_v16, %s6231_s27  ;;  %v905_v17 = vpop.f32.mrb[14].mxu1  ;;  %s6394_s27 = smov 119  }
 0x326   : > { %v907_v18 = vpop.f32.mrb[15].mxu1 }
 0x328   : > { %968 = vrot.lane.b32.xlu0 %v905_v17, %s6229_s28 }
 0x329   : > { %970 = vrot.lane.b32.xlu1 %v907_v18, %s6229_s28 }
 0x32b   : > { %v911_v19 = vpop.f32.mrb[16].mxu1 }
 0x32c   : > { %1004 = vrot.lane.b32.xlu0 %v911_v19, %s6275_s20  ;;  %v913_v22 = vpop.f32.mrb[17].mxu1 }
 0x32d   : > { %1006 = vrot.lane.b32.xlu1 %v913_v22, %s6275_s20  ;;  %v915_v23 = vpop.f32.mrb[18].mxu1 }
 0x32e   : > { %v916_v24 = vpop.f32.mrb[19].mxu1 }
 0x37e   : > { %v921_v25 = vpop.permute.xlu0 %920 }
 0x37f   : > { %v923_v26 = vpop.permute.xlu1 %922  ;;  %v927_v41 = vsel %vm6221_vm3, 0.0, %v921_v25 }
 0x380   : > { %v924_v42 = vsel %vm6221_vm3, %v921_v25, %v923_v26  ;;  %v1168_v25 = vshra.s32 %v4833_v38, 3  ;;  %v4970_v26 = vand.u32 7, %v4833_v38 }
 0x382   : > { %v957_v27 = vpop.permute.xlu0 %956 }
 0x383   : > { %v959_v28 = vpop.permute.xlu1 %958  ;;  %v963_v43 = vsel %vm6224_vm4, 0.0, %v957_v27 }
 0x384   : > { %v960_v44 = vsel %vm6224_vm4, %v957_v27, %v959_v28  ;;  %v964_v55 = vadd.f32 %v963_v43, %v891_v8  ;;  %v4973_v27 = vshrl.u32 %v497_v36, 7  ;;  %v4975_v28 = vmul.u32 2, %v1168_v25 }
 0x385   : > { %v965_v56 = vadd.f32 %v960_v44, %v893_v9 }
 0x386   : > { %v983_v29 = vpop.permute.xlu0 %982  ;;  %v1091_v36 = vadd.s32 152, %v4973_v27  ;;  %v1094_v25 = vadd.s32 176, %v4973_v27 }
 0x387   : > { %v985_v30 = vpop.permute.xlu1 %984  ;;  %v989_v59 = vsel %vm6222_vm5, 0.0, %v983_v29 }
 0x388   : > { %v986_v60 = vsel %vm6222_vm5, %v983_v29, %v985_v30  ;;  %v4978_v29 = vmul.u32 2, %v4970_v26  ;;  %v1088_v30 = vadd.s32 128, %v4973_v27 }
 0x38a   : > { %v931_v31 = vpop.permute.xlu0 %930 }
 0x38b   : > { %v933_v32 = vpop.permute.xlu1 %932  ;;  %v937_v39 = vsel %vm6225_vm2, 0.0, %v931_v31 }
 0x38c   : > { %v934_v40 = vsel %vm6225_vm2, %v931_v31, %v933_v32  ;;  %v938_v48 = vadd.f32 %v937_v39, %v927_v41  ;;  %v1089_v31 = vadd.s32 136, %v4973_v27  ;;  %v4983_v32 = vadd.s32 8, %v4973_v27 }
 0x38d   : > { %v939_v49 = vadd.f32 %v934_v40, %v924_v42  ;;  %v1152_v40 = vand.u32 15, %v1088_v30 }
 0x38e   : > { %v1121_v39 = vshra.s32 %v1089_v31, 4  ;;  %v1153_v41 = vand.u32 15, %v1089_v31  ;;  %v1105_v42 = vshra.s32 %v4983_v32, 4  ;;  %v1137_v43 = vand.u32 15, %v4983_v32 }
 0x38f   : > { %vm1220_vm12 = vcmp.eq.s32.totalorder %v1152_v40, %v4978_v29  ;;  %v5136_v31 = vadd.s32 48, %v4973_v27  ;;  %v5147_v40 = vadd.s32 56, %v4973_v27 }
 0x390   : > { %v993_v33 = vpop.permute.xlu0 %992  ;;  %vm5007_vm11 = vcmp.eq.s32.totalorder %v1121_v39, %v4975_v28  ;;  %vm5020_vm1 = vcmp.eq.s32.totalorder %v1105_v42, %v4975_v28  ;;  %vm5025_vm4 = vcmp.eq.s32.totalorder %v1137_v43, %v4978_v29  ;;  %v1158_v39 = vand.u32 15, %v1094_v25 }
 0x391   : > { %v995_v34 = vpop.permute.xlu1 %994 }
 0x392   : > { %v996_v51 = vsel %vm6244_vm6, %v993_v33, %v995_v34  ;;  %v999_v52 = vsel %vm6244_vm6, %v995_v34, 0.0  ;;  %v1104_v33 = vshra.s32 %v4973_v27, 4  ;;  %v1136_v34 = vand.u32 15, %v4973_v27 }
 0x393   : > { %v1000_v62 = vadd.f32 %v996_v51, %v989_v59  ;;  %v1001_v63 = vadd.f32 %v999_v52, %v986_v60  ;;  %v1123_v51 = vshra.s32 %v1091_v36, 4  ;;  %v1093_v59 = vadd.s32 168, %v4973_v27 }
 0x394   : > { %vm4992_vm0 = vcmp.eq.s32.totalorder %v1104_v33, %v4975_v28  ;;  %vm4997_vm8 = vcmp.eq.s32.totalorder %v1136_v34, %v4978_v29  ;;  %v4675_v60 = vmov 1.0|1.0  }
 0x395   : > { %vm1236_vm3 = vmand %vm4992_vm0, %vm4997_vm8  ;;  %vm5043_vm15 = vcmp.eq.s32.totalorder %v1123_v51, %v4975_v28  ;;  %v1111_v51 = vshra.s32 %v5147_v40, 4 }
 0x396   : > { %v943_v35 = vpop.permute.xlu0 %942 }
 0x397   : > { %v945_v37 = vpop.permute.xlu1 %944 }
 0x398   : > { %v946_v45 = vsel %vm6220_vm7, %v943_v35, %v945_v37  ;;  %v949_v46 = vsel %vm6220_vm7, %v945_v37, 0.0  ;;  %v1090_v35 = vadd.s32 144, %v4973_v27  ;;  %v1120_v37 = vshra.s32 %v1088_v30, 4 }
 0x399   : > { %v950_v57 = vadd.f32 %v946_v45, %v938_v48  ;;  %v951_v58 = vadd.f32 %v949_v46, %v939_v49  ;;  %vm1221_vm7 = vcmp.eq.s32.totalorder %v1153_v41, %v4978_v29  ;;  %v1095_v30 = vadd.s32 184, %v4973_v27 }
 0x39a   : > { %v969_v47 = vpop.permute.xlu0 %968  ;;  %vm5002_vm9 = vcmp.eq.s32.totalorder %v1120_v37, %v4975_v28  ;;  %vm1253_vm2 = vmand %vm5007_vm11, %vm1221_vm7  ;;  %v1154_v52 = vand.u32 15, %v1090_v35  ;;  %v1126_v37 = vshra.s32 %v1094_v25, 4  ;;  %v1110_v49 = vshra.s32 %v5136_v31, 4 }
 0x39b   : > { %v971_v50 = vpop.permute.xlu1 %970  ;;  %v952_v6 = vmul.f32 %v950_v57, %v4872_v12  ;;  %v953_v7 = vmul.f32 %v951_v58, %v4877_v13  ;;  %vm1252_vm5 = vmand %vm5002_vm9, %vm1220_vm12  ;;  %v1092_v58 = vadd.s32 160, %v4973_v27  ;;  %v1127_v43 = vshra.s32 %v1095_v30, 4 }
 0x39c   : > { %v972_v53 = vsel %vm6243_vm10, %v969_v47, %v971_v50  ;;  %v975_v54 = vsel %vm6243_vm10, %v971_v50, 0.0  ;;  %v1122_v50 = vshra.s32 %v1090_v35, 4  ;;  %vm4033_vm9 = vmpackc.low %vm1253_vm2, %vm1252_vm5  ;;  %vm5055_vm5 = vcmp.eq.s32.totalorder %v1154_v52, %v4978_v29 }
 0x39d   : > { %v976_v1 = vadd.f32 %v972_v53, %v964_v55  ;;  %v977_v2 = vadd.f32 %v975_v54, %v965_v56  ;;  %v1155_v53 = vand.u32 15, %v1091_v36  ;;  %v5032_v54 = vadd.s32 16, %v4973_v27  ;;  %4188 = vmatprep.subr.msk.bf16.mxu0 %vm4033_vm9, %v4675_v60  ;;  %vm1237_vm2 = vmand %vm5020_vm1, %vm5025_vm4 }
 0x39e   : > { %v1005_v61 = vpop.permute.xlu0 %1004  ;;  %v5035_v55 = vadd.s32 24, %v4973_v27  ;;  %vm5038_vm12 = vcmp.eq.s32.totalorder %v1122_v50, %v4975_v28  ;;  %vm4017_vm1 = vmpackc.low %vm1237_vm2, %vm1236_vm3  ;;  %v1159_v44 = vand.u32 15, %v1095_v30  ;;  %v1142_v50 = vand.u32 15, %v5136_v31 }
 0x39f   : > { %v1007_v3 = vpop.permute.xlu1 %1006  ;;  %v978_v10 = vadd.f32 %v976_v1, %v952_v6  ;;  %v979_v14 = vadd.f32 %v977_v2, %v953_v7  ;;  %vm5060_vm7 = vcmp.eq.s32.totalorder %v1155_v53, %v4978_v29  ;;  %v1138_v2 = vand.u32 15, %v5032_v54  ;;  %4189 = vmatpush3.bf16.msk.msra.mxu0 %vm4017_vm1, %v4675_v60  ;;  %vm1254_vm4 = vmand %vm5038_vm12, %vm5055_vm5 }
 0x3a0   : > { %v1008_v4 = vsel %vm6228_vm13, %v1005_v61, %v1007_v3  ;;  %v1011_v5 = vsel %vm6228_vm13, %v1007_v3, 0.0  ;;  %v1107_v1 = vshra.s32 %v5035_v55, 4  ;;  %v1139_v3 = vand.u32 15, %v5035_v55  ;;  %vm1255_vm3 = vmand %vm5043_vm15, %vm5060_vm7 }
 0x3a1   : > { %v1012_v8 = vadd.f32 %v1008_v4, %v1000_v62  ;;  %v1013_v9 = vadd.f32 %v1011_v5, %v1001_v63  ;;  %v1106_v63 = vshra.s32 %v5032_v54, 4  ;;  %v1124_v4 = vshra.s32 %v1092_v58, 4  ;;  %vm4035_vm15 = vmpackc.low %vm1255_vm3, %vm1254_vm4 }
 0x3a2   : > { %v1125_v5 = vshra.s32 %v1093_v59, 4  ;;  %v1156_v7 = vand.u32 15, %v1092_v58  ;;  %vm5088_vm0 = vcmp.eq.s32.totalorder %v1107_v1, %v4975_v28  ;;  %vm5093_vm8 = vcmp.eq.s32.totalorder %v1138_v2, %v4978_v29  ;;  %4190 = vmatprep.subr.msk.bf16.mxu0 %vm4035_vm15, %v4675_v60 }
 0x3a3   : > { %v1014_v15 = vmul.f32 %v1012_v8, %v4882_v20  ;;  %v1015_v16 = vmul.f32 %v1013_v9, %v4887_v21  ;;  %vm5079_vm11 = vcmp.eq.s32.totalorder %v1106_v63, %v4975_v28  ;;  %v1157_v8 = vand.u32 15, %v1093_v59 }
 0x3a4   : > { %vm5098_vm9 = vcmp.eq.s32.totalorder %v1139_v3, %v4978_v29  ;;  %vm5103_vm12 = vcmp.eq.s32.totalorder %v1124_v4, %v4975_v28  ;;  %vm5108_vm2 = vcmp.eq.s32.totalorder %v1125_v5, %v4975_v28  ;;  %vm5113_vm5 = vcmp.eq.s32.totalorder %v1156_v7, %v4978_v29  ;;  %vm1238_vm7 = vmand %vm5079_vm11, %vm5093_vm8 }
 0x3a5   : > { %v4958_v17 = vadd.f32 %v1014_v15, %v978_v10  ;;  %v4960_v18 = vadd.f32 %v1015_v16, %v979_v14  ;;  %vm5129_vm1 = vcmp.eq.s32.totalorder %v1157_v8, %v4978_v29  ;;  %vm1239_vm4 = vmand %vm5088_vm0, %vm5098_vm9  ;;  %v1143_v52 = vand.u32 15, %v5147_v40 }
 0x3a6   : > { %vm4019_vm11 = vmpackc.low %vm1239_vm4, %vm1238_vm7  ;;  %vm5179_vm7 = vcmp.eq.s32.totalorder %v1126_v37, %v4975_v28  ;;  %vm5184_vm4 = vcmp.eq.s32.totalorder %v1158_v39, %v4978_v29  ;;  %v1096_v53 = vadd.s32 192, %v4973_v27  ;;  %v1097_v56 = vadd.s32 200, %v4973_v27 }
 0x3a7   : > { %v1018_v19 = vadd.f32 %v4960_v18, %v4958_v17  ;;  %v1022_v22 = vmul.f32 %v4958_v17, %v4958_v17  ;;  %v1023_v23 = vmul.f32 %v4960_v18, %v4960_v18  ;;  %4191 = vmatpush3.bf16.msk.msra.mxu0 %vm4019_vm11, %v4675_v60  ;;  %vm1256_vm3 = vmand %vm5103_vm12, %vm5113_vm5  ;;  %vm5204_vm11 = vcmp.eq.s32.totalorder %v1127_v43, %v4975_v28 }
 0x3a8   : > { %vm1257_vm9 = vmand %vm5108_vm2, %vm5129_vm1  ;;  %v1080_v59 = vadd.s32 64, %v4973_v27  ;;  %v1128_v61 = vshra.s32 %v1096_v53, 4  ;;  %v1160_v62 = vand.u32 15, %v1096_v53  ;;  %v1081_v63 = vadd.s32 72, %v4973_v27 }
 0x3a9   : > { %1019 = vadd.xlane.f32.xlu0 %v1018_v19  ;;  %v1024_v24 = vadd.f32 %v1023_v23, %v1022_v22  ;;  %v5118_v22 = vadd.s32 32, %v4973_v27  ;;  %v5121_v23 = vadd.s32 40, %v4973_v27  ;;  %vm4037_vm5 = vmpackc.low %vm1257_vm9, %vm1256_vm3  ;;  %vm5209_vm3 = vcmp.eq.s32.totalorder %v1159_v44, %v4978_v29 }
 0x3aa   : > { %4192 = vmatprep.subr.msk.bf16.mxu0 %vm4037_vm5, %v4675_v60  ;;  %vm5221_vm9 = vcmp.eq.s32.totalorder %v1110_v49, %v4975_v28  ;;  %v1129_v3 = vshra.s32 %v1097_v56, 4  ;;  %v1161_v4 = vand.u32 15, %v1097_v56  ;;  %vm5235_vm5 = vcmp.eq.s32.totalorder %v1111_v51, %v4975_v28 }
 0x3ab   : > { %1025 = vadd.xlane.f32.xlu1 %v1024_v24  ;;  %v1108_v33 = vshra.s32 %v5118_v22, 4  ;;  %v1109_v34 = vshra.s32 %v5121_v23, 4  ;;  %v1140_v35 = vand.u32 15, %v5118_v22  ;;  %v1141_v36 = vand.u32 15, %v5121_v23 }
 0x3ac   : > { %v1112_v6 = vshra.s32 %v1080_v59, 4  ;;  %v1144_v7 = vand.u32 15, %v1080_v59  ;;  %v1113_v10 = vshra.s32 %v1081_v63, 4  ;;  %v1145_v14 = vand.u32 15, %v1081_v63 }
 0x3ad   : > { %vm5155_vm0 = vcmp.eq.s32.totalorder %v1108_v33, %v4975_v28  ;;  %vm5160_vm8 = vcmp.eq.s32.totalorder %v1140_v35, %v4978_v29  ;;  %vm5169_vm15 = vcmp.eq.s32.totalorder %v1109_v34, %v4975_v28  ;;  %vm5174_vm12 = vcmp.eq.s32.totalorder %v1141_v36, %v4978_v29 }
 0x3ae   : > { %vm1240_vm2 = vmand %vm5155_vm0, %vm5160_vm8  ;;  %vm1180_vm13 = vcmp.eq.s32.totalorder %v1113_v10, %v4975_v28  ;;  %v1098_v34 = vadd.s32 208, %v4973_v27  ;;  %v1099_v35 = vadd.s32 216, %v4973_v27  ;;  %v1082_v37 = vadd.s32 80, %v4973_v27 }
 0x3af   : > { %vm1241_vm1 = vmand %vm5169_vm15, %vm5174_vm12  ;;  %vm5226_vm15 = vcmp.eq.s32.totalorder %v1142_v50, %v4978_v29  ;;  %v1083_v39 = vadd.s32 88, %v4973_v27  ;;  %v1100_v57 = vadd.s32 224, %v4973_v27  ;;  %v1101_v58 = vadd.s32 232, %v4973_v27 }
 0x3b0   : > { %vm4021_vm0 = vmpackc.low %vm1241_vm1, %vm1240_vm2  ;;  %vm5246_vm1 = vcmp.eq.s32.totalorder %v1128_v61, %v4975_v28  ;;  %v1130_v41 = vshra.s32 %v1098_v34, 4  ;;  %v1131_v42 = vshra.s32 %v1099_v35, 4  ;;  %v1162_v43 = vand.u32 15, %v1098_v34 }
 0x3b1   : > { %4193 = vmatpush3.bf16.msk.msra.mxu0 %vm4021_vm0, %v4675_v60  ;;  %vm1258_vm8 = vmand %vm5179_vm7, %vm5184_vm4  ;;  %vm1211_vm7 = vcmp.eq.s32.totalorder %v1143_v52, %v4978_v29  ;;  %vm1196_vm0 = vcmp.eq.s32.totalorder %v1129_v3, %v4975_v28  ;;  %v1163_v44 = vand.u32 15, %v1099_v35  ;;  %v1114_v45 = vshra.s32 %v1082_v37, 4 }
 0x3b2   : > { %vm1259_vm12 = vmand %vm5204_vm11, %vm5209_vm3  ;;  %vm5251_vm11 = vcmp.eq.s32.totalorder %v1160_v62, %v4978_v29  ;;  %v1115_v46 = vshra.s32 %v1083_v39, 4  ;;  %v1146_v47 = vand.u32 15, %v1082_v37  ;;  %v1147_v51 = vand.u32 15, %v1083_v39 }
 0x3b3   : > { %vm4039_vm4 = vmpackc.low %vm1259_vm12, %vm1258_vm8  ;;  %vm1229_vm8 = vcmp.eq.s32.totalorder %v1161_v4, %v4978_v29  ;;  %vm1179_vm12 = vcmp.eq.s32.totalorder %v1112_v6, %v4975_v28  ;;  %v1084_v59 = vadd.s32 96, %v4973_v27  ;;  %v1085_v61 = vadd.s32 104, %v4973_v27 }
 0x3b4   : > { %4194 = vmatprep.subr.msk.bf16.mxu0 %vm4039_vm4, %v4675_v60  ;;  %vm1242_vm2 = vmand %vm5221_vm9, %vm5226_vm15  ;;  %vm1212_vm4 = vcmp.eq.s32.totalorder %v1144_v7, %v4978_v29  ;;  %v1132_v1 = vshra.s32 %v1100_v57, 4  ;;  %v1133_v2 = vshra.s32 %v1101_v58, 4  ;;  %v1164_v3 = vand.u32 15, %v1100_v57 }
 0x3b5   : > { %vm1243_vm3 = vmand %vm5235_vm5, %vm1211_vm7  ;;  %vm1213_vm5 = vcmp.eq.s32.totalorder %v1145_v14, %v4978_v29  ;;  %v1165_v4 = vand.u32 15, %v1101_v58  ;;  %v1117_v5 = vshra.s32 %v1085_v61, 4  ;;  %v1149_v6 = vand.u32 15, %v1085_v61 }
 0x3b6   : > { %vm4023_vm9 = vmpackc.low %vm1243_vm3, %vm1242_vm2 }
 0x3b7   : > { %4195 = vmatpush3.bf16.msk.msra.mxu0 %vm4023_vm9, %v4675_v60  ;;  %vm1260_vm15 = vmand %vm5246_vm1, %vm5251_vm11  ;;  %vm5289_vm1 = vcmp.eq.s32.totalorder %v1162_v43, %v4978_v29  ;;  %vm1231_vm11 = vcmp.eq.s32.totalorder %v1163_v44, %v4978_v29 }
 0x3b8   : > { %vm1261_vm14 = vmand %vm1196_vm0, %vm1229_vm8  ;;  %vm5299_vm8 = vcmp.eq.s32.totalorder %v1114_v45, %v4975_v28 }
 0x3b9   : > { %vm4041_vm7 = vmpackc.low %vm1261_vm14, %vm1260_vm15  ;;  %vm5284_vm14 = vcmp.eq.s32.totalorder %v1131_v42, %v4975_v28  ;;  %vm5304_vm15 = vcmp.eq.s32.totalorder %v1115_v46, %v4975_v28 }
 0x3ba   : > { %4196 = vmatprep.subr.msk.bf16.mxu0 %vm4041_vm7, %v4675_v60  ;;  %vm1244_vm2 = vmand %vm1179_vm12, %vm1212_vm4  ;;  %vm5309_vm12 = vcmp.eq.s32.totalorder %v1146_v47, %v4978_v29  ;;  %vm1215_vm7 = vcmp.eq.s32.totalorder %v1147_v51, %v4978_v29 }
 0x3bb   : > { %vm1245_vm3 = vmand %vm1180_vm13, %vm1213_vm5  ;;  %vm5279_vm13 = vcmp.eq.s32.totalorder %v1130_v41, %v4975_v28 }
 0x3bc   : > { %vm4025_vm9 = vmpackc.low %vm1245_vm3, %vm1244_vm2 }
 0x3bd   : > { %4197 = vmatpush3.bf16.msk.msra.mxu0 %vm4025_vm9, %v4675_v60  ;;  %vm1262_vm0 = vmand %vm5279_vm13, %vm5289_vm1  ;;  %vm5332_vm13 = vcmp.eq.s32.totalorder %v1132_v1, %v4975_v28  ;;  %vm5342_vm1 = vcmp.eq.s32.totalorder %v1164_v3, %v4978_v29 }
 0x3be   : > { %vm1263_vm4 = vmand %vm5284_vm14, %vm1231_vm11  ;;  %vm5337_vm14 = vcmp.eq.s32.totalorder %v1133_v2, %v4975_v28  ;;  %vm1233_vm11 = vcmp.eq.s32.totalorder %v1165_v4, %v4978_v29 }
 0x3bf   : > { %vm4043_vm5 = vmpackc.low %vm1263_vm4, %vm1262_vm0  ;;  %vm5368_vm4 = vcmp.eq.s32.totalorder %v1149_v6, %v4978_v29 }
 0x3c0   : > { %4198 = vmatprep.subr.msk.bf16.mxu0 %vm4043_vm5, %v4675_v60  ;;  %vm1246_vm2 = vmand %vm5299_vm8, %vm5309_vm12 }
 0x3c1   : > { %vm1247_vm3 = vmand %vm5304_vm15, %vm1215_vm7  ;;  %vm5358_vm15 = vcmp.eq.s32.totalorder %v1117_v5, %v4975_v28 }
 0x3c2   : > { %vm4027_vm9 = vmpackc.low %vm1247_vm3, %vm1246_vm2 }
 0x3c3   : > { %4199 = vmatpush3.bf16.msk.msra.mxu0 %vm4027_vm9, %v4675_v60  ;;  %vm1264_vm0 = vmand %vm5332_vm13, %vm5342_vm1 }
 0x3c4   : > { %vm1265_vm5 = vmand %vm5337_vm14, %vm1233_vm11 }
 0x3c5   : > { %vm4045_vm7 = vmpackc.low %vm1265_vm5, %vm1264_vm0 }
 0x3c6   : > { %4200 = vmatprep.subr.msk.bf16.mxu0 %vm4045_vm7, %v4675_v60  ;;  %vm1249_vm3 = vmand %vm5358_vm15, %vm5368_vm4 }
 0x436   : > { %v1020_v15 = vpop.xlane.xlu0 %1019 }
 0x437   : > { %v5270_v16 = vmul.f32 0.00390625, %v1020_v15 }
 0x438   : > { %v1026_v19 = vpop.xlane.xlu1 %1025 }
 0x439   : > { %v1027_v24 = vmul.f32 0.00390625, %v1026_v19  ;;  %v1028_v25 = vmul.f32 %v5270_v16, %v5270_v16  ;;  %v1031_v62 = vsub.f32 %v4958_v17, %v5270_v16  ;;  %v1032_v63 = vsub.f32 %v4960_v18, %v5270_v16 }
 0x43a   : > { %v1116_v17 = vshra.s32 %v1084_v59, 4  ;;  %v1148_v18 = vand.u32 15, %v1084_v59  ;;  %v1102_v19 = vadd.s32 240, %v4973_v27 }
 0x43b   : > { %v1029_v30 = vsub.f32 %v1027_v24, %v1028_v25  ;;  %v1103_v24 = vadd.s32 248, %v4973_v27  ;;  %v1086_v25 = vadd.s32 112, %v4973_v27 }
 0x43c   : > { %vm5353_vm8 = vcmp.eq.s32.totalorder %v1116_v17, %v4975_v28  ;;  %vm5363_vm12 = vcmp.eq.s32.totalorder %v1148_v18, %v4978_v29  ;;  %v1166_v39 = vand.u32 15, %v1102_v19 }
 0x43d   : > { %v1030_v33 = vmax.f32 %v1029_v30, 0.0  ;;  %v1087_v30 = vadd.s32 120, %v4973_v27  ;;  %vm1248_vm2 = vmand %vm5353_vm8, %vm5363_vm12  ;;  %v1135_v37 = vshra.s32 %v1103_v24, 4  ;;  %v1167_v41 = vand.u32 15, %v1103_v24 }
 0x43e   : > { %v1118_v42 = vshra.s32 %v1086_v25, 4  ;;  %vm4029_vm9 = vmpackc.low %vm1249_vm3, %vm1248_vm2  ;;  %vm1234_vm1 = vcmp.eq.s32.totalorder %v1166_v39, %v4978_v29  ;;  %v1150_v48 = vand.u32 15, %v1086_v25  ;;  %v4566_v39 = vld [vmem:[%s6204_s3 + $0x30] sm:$0xff]  }
 0x43f   : > { %v1033_v36 = vadd.f32 1e-05, %v1030_v33  ;;  %v1119_v43 = vshra.s32 %v1087_v30, 4  ;;  %vm5397_vm14 = vcmp.eq.s32.totalorder %v1135_v37, %v4975_v28  ;;  %4201 = vmatpush3.bf16.msk.msra.mxu0 %vm4029_vm9, %v4675_v60  ;;  %vm1235_vm11 = vcmp.eq.s32.totalorder %v1167_v41, %v4978_v29  ;;  %v4565_v37 = vld [vmem:[%s6204_s3 + $0x28] sm:$0xff]   ;;  %v4567_v41 = vld [vmem:[%s6204_s3 + $0x38] sm:$0xff]  }
 0x440   : > { %v1151_v49 = vand.u32 15, %v1087_v30  ;;  %vm1185_vm8 = vcmp.eq.s32.totalorder %v1118_v42, %v4975_v28  ;;  %vm1267_vm15 = vmand %vm5397_vm14, %vm1235_vm11  ;;  %vm1218_vm4 = vcmp.eq.s32.totalorder %v1150_v48, %v4978_v29  ;;  %vm6370_vm11 = vcmask 1043456   ;;  %v4560_v30 = vld [vmem:[%s6204_s3] sm:$0xff]  }
 0x441   : > { %4631 = vrsqrt.f32 %v1033_v36  ;;  %v1134_v36 = vshra.s32 %v1102_v19, 4  ;;  %vm1186_vm12 = vcmp.eq.s32.totalorder %v1119_v43, %v4975_v28  ;;  %vm1250_vm2 = vmand %vm1185_vm8, %vm1218_vm4  ;;  %v4568_v42 = vld [vmem:[%s6204_s3 + $0x40] sm:$0xff]  }
 0x442   : > { %vm1219_vm5 = vcmp.eq.s32.totalorder %v1151_v49, %v4978_v29 }
 0x443   : > { %vm5392_vm13 = vcmp.eq.s32.totalorder %v1134_v36, %v4975_v28  ;;  %vm1251_vm3 = vmand %vm1186_vm12, %vm1219_vm5  ;;  %v4564_v36 = vld [vmem:[%s6204_s3 + $0x20] sm:$0xff]  }
 0x444   : > { %vm1266_vm0 = vmand %vm5392_vm13, %vm1234_vm1  ;;  %vm6368_vm13 = vcmask 908288   ;;  %vm4676_vm1 = vmmov 0  }
 0x445   : > { %vm4047_vm7 = vmpackc.low %vm1267_vm15, %vm1266_vm0  ;;  %4272 = vmatprep.mubr.msk.bf16.mxu1 %vm4676_vm1, %v4674_v11  ;;  %vm6371_vm0 = vcmask 64512  }
 0x446   : > { %4202 = vmatprep.subr.msk.bf16.mxu0 %vm4047_vm7, %v4675_v60  ;;  %vm4031_vm9 = vmpackc.low %vm1251_vm3, %vm1250_vm2 }
 0x447   : > { %4203 = vmatpush3.bf16.msk.msra.mxu0 %vm4031_vm9, %v4675_v60  ;;  %vm6369_vm14 = vmmov %vm6368_vm13  ;;  %vm1569_vm9 = vcmask 72704  }
 0x448   : > { %4308 = vmatprep.subr.bf16.mxu0 %v4674_v11  ;;  %vm6372_vm8 = vmmov %vm6371_vm0 }
 0x449   : > { %vm6373_vm15 = vmmov %vm6371_vm0 }
 0x44a   : > { %vm6374_vm12 = vmmov %vm6371_vm0 }
 0x44b   : > { %v4632_v33 = vpop.eup %4631  ;;  %vm6375_vm4 = vmmov %vm6371_vm0 }
 0x44c   : > { %v1035_v34 = vmul.f32 %v4632_v33, %v1031_v62  ;;  %v1036_v35 = vmul.f32 %v4632_v33, %v1032_v63  ;;  %v4561_v33 = vld [vmem:[%s6204_s3 + $0x8] sm:$0xff]   ;;  %vm6376_vm5 = vmmov %vm6371_vm0 }
 0x44d   : > { %vm6377_vm7 = vmmov %vm6371_vm0 }
 0x44e   : > { %v5387_v44 = vmax.f32 %v1035_v34, 0.0  ;;  %v5389_v45 = vmax.f32 %v1036_v35, 0.0  ;;  %v4562_v34 = vld [vmem:[%s6204_s3 + $0x10] sm:$0xff]   ;;  %v4563_v35 = vld [vmem:[%s6204_s3 + $0x18] sm:$0xff]   ;;  %vm6378_vm2 = vmmov %vm6371_vm0 }
 0x44f   : > { %vm6379_vm3 = vmmov %vm6371_vm0 }
 0x450   : > { %v4523_v50 = vpack.i.bf16 %v5387_v44, %v5389_v45 }
 0x452   : > { %4524 = vrot.lane.b32.xlu1 %v4523_v50, %s6229_s28  ;;  %4519 = vrot.lane.b32.xlu0 %v4523_v50, %s6261_s26  ;;  %s6253_s28 = smov 9  }
 0x456   : > { %4529 = vrot.lane.b32.xlu0 %v4523_v50, %s6275_s20 }
 0x4c4   : > { %v4525_v28 = vpop.permute.xlu1 %4524  ;;  %v4520_v51 = vpop.permute.xlu0 %4519 }
 0x4c5   : > { %v4527_v52 = vunpack.i.h.bf16 %v4525_v28  ;;  %v4526_v29 = vunpack.i.l.bf16 %v4525_v28  ;;  %v4522_v53 = vunpack.i.h.bf16 %v4520_v51  ;;  %v4521_v56 = vunpack.i.l.bf16 %v4520_v51 }
 0x4c7   : > { %v1045_v57 = vsel %vm6244_vm6, %v4522_v53, %v4521_v56  ;;  %v1048_v58 = vsel %vm6244_vm6, %v4521_v56, 0.0  ;;  %v1055_v63 = vsel %vm6243_vm10, %v4527_v52, %v4526_v29  ;;  %v1058_v1 = vsel %vm6243_vm10, %v4526_v29, 0.0 }
 0x4c8   : > { %v1049_v59 = vmax.f32 %v5387_v44, %v1045_v57  ;;  %v1050_v61 = vmax.f32 %v5389_v45, %v1048_v58  ;;  %v4530_v62 = vpop.permute.xlu0 %4529 }
 0x4c9   : > { %v4532_v2 = vunpack.i.h.bf16 %v4530_v62  ;;  %v4531_v3 = vunpack.i.l.bf16 %v4530_v62 }
 0x4ca   : > { %v1059_v4 = vmax.f32 %v1049_v59, %v1055_v63  ;;  %v1060_v17 = vmax.f32 %v1050_v61, %v1058_v1 }
 0x4cb   : > { %v1065_v5 = vsel %vm6368_vm13, %v4532_v2, %v4531_v3  ;;  %v1068_v18 = vsel %vm6369_vm14, %v4531_v3, 0.0  ;;  %vm6246_vm13 = vcmask 465920   ;;  %vm6380_vm14 = vcmask 7168  }
 0x4cc   : > { %v1069_v6 = vmax.f32 %v1059_v4, %v1065_v5  ;;  %v1070_v7 = vmax.f32 %v1060_v17, %v1068_v18 }
 0x4ce   : > { %v1316_v8 = vpack.c.bf16 %v1069_v6, %v1069_v6  ;;  %v1317_v9 = vpack.c.bf16 %v1070_v7, %v1070_v7 }
 0x4d0   : > { %1350 = vmatprep.mubr.bf16.mxu0 %v1317_v9 }
 0x4d1   : > { %1351 = vmatmul.mubr.bf16.vlgmr.msra.gmra.mrb[20].mxu0 %v1316_v8 }
 0x4d2   : > { %4310 = vmatprep.mubr.msk.bf16.mxu0 %vm4676_vm1, %v4674_v11 }
 0x5a4   : > { %v4204_v10 = vpop.f32.mrb[20].mxu0 }
 0x5a5   : > { %v4205_v14 = vpop.f32.mrb[21].mxu0 }
 0x5a6   : > { %v4206_v15 = vadd.f32 %v4205_v14, %v4204_v10  ;;  %v4207_v16 = vpop.f32.mrb[22].mxu0 }
 0x5a7   : > { %v4208_v19 = vpop.f32.mrb[23].mxu0 }
 0x5a8   : > { %v1380_v24 = vpack.c.bf16 %v4206_v15, %v4206_v15 }
 0x5aa   : > { %v1454_v25 = vsel %vm6370_vm11, %v1380_v24, 0  ;;  %vm6245_vm11 = vcmask 56320  }
 0x5ab   : > { %4271 = vmatpush3.bf16.msra.mxu1 %v1454_v25 }
 0x5ac   : > { %4346 = vmatprep.subr.bf16.mxu1 %v4674_v11 }
 0x5ae   : > { %4273 = vmatmul.mubr.msk.bf16.vlgmr.msra.gmra.mrb[20].mxu1 %vm6371_vm0, %v4560_v30  ;;  %vm1645_vm0 = vcmask 515072  }
 0x5af   : > { %4276 = vmatprep.mubr.msk.bf16.mxu1 %vm4676_vm1, %v4674_v11 }
 0x5b6   : > { %4277 = vmatmul.mubr.msk.bf16.gmra.mrb[24].mxu1 %vm6372_vm8, %v4561_v33  ;;  %vm1619_vm8 = vcmask 457728  }
 0x5b7   : > { %4280 = vmatprep.mubr.msk.bf16.mxu1 %vm4676_vm1, %v4674_v11 }
 0x5be   : > { %4281 = vmatmul.mubr.msk.bf16.gmra.mrb[28].mxu1 %vm6373_vm15, %v4562_v34  ;;  %vm6381_vm15 = vmmov %vm6378_vm2 }
 0x5bf   : > { %4284 = vmatprep.mubr.msk.bf16.mxu1 %vm4676_vm1, %v4674_v11 }
 0x5c6   : > { %4285 = vmatmul.mubr.msk.bf16.gmra.mrb[32].mxu1 %vm6374_vm12, %v4563_v35  ;;  %vm6382_vm12 = vmmov %vm6380_vm14 }
 0x5c7   : > { %4288 = vmatprep.mubr.msk.bf16.mxu1 %vm4676_vm1, %v4674_v11 }
 0x5ce   : > { %4289 = vmatmul.mubr.msk.bf16.gmra.mrb[36].mxu1 %vm6375_vm4, %v4564_v36  ;;  %vm1358_vm4 = vcmp.ne.s32.totalorder %v4970_v26, 0 }
 0x5cf   : > { %4292 = vmatprep.mubr.msk.bf16.mxu1 %vm4676_vm1, %v4674_v11 }
 0x5d6   : > { %4293 = vmatmul.mubr.msk.bf16.gmra.mrb[40].mxu1 %vm6376_vm5, %v4565_v37  ;;  %vm1360_vm5 = vcmp.ne.s32.totalorder %v4970_v26, 7 }
 0x5d7   : > { %4296 = vmatprep.mubr.msk.bf16.mxu1 %vm4676_vm1, %v4674_v11 }
 0x5de   : > { %4297 = vmatmul.mubr.msk.bf16.gmra.mrb[44].mxu1 %vm6377_vm7, %v4566_v39  ;;  %vm6383_vm7 = vmmov %vm6378_vm2 }
 0x5df   : > { %4300 = vmatprep.mubr.msk.bf16.mxu1 %vm4676_vm1, %v4674_v11 }
 0x5e6   : > { %4301 = vmatmul.mubr.msk.bf16.gmra.mrb[48].mxu1 %vm6378_vm2, %v4567_v41  ;;  %vm1658_vm2 = vcmask 449536  }
 0x5e7   : > { %4304 = vmatprep.mubr.msk.bf16.mxu1 %vm4676_vm1, %v4674_v11 }
 0x5ee   : > { %4305 = vmatmul.mubr.msk.bf16.gmra.mrb[52].mxu1 %vm6379_vm3, %v4568_v42  ;;  %vm1667_vm3 = vcmask 523264  }
 0x5ef   : > { %4354 = vmatprep.mubr.msk.bf16.mxu1 %vm4676_vm1, %v4674_v11 }
 0x681   : > { %v1490_v43 = vpop.f32.mrb[20].mxu1 }
 0x682   : > { %1563 = vrot.lane.b32.xlu1 %v1490_v43, %s6253_s28  ;;  %v4274_v46 = vpop.f32.mrb[21].mxu1 }
 0x683   : > { %v1493_v47 = vpop.f32.mrb[22].mxu1 }
 0x684   : > { %1565 = vrot.lane.b32.xlu0 %v1493_v47, %s6253_s28  ;;  %v4275_v48 = vpop.f32.mrb[23].mxu1 }
 0x689   : > { %v1498_v49 = vpop.f32.mrb[24].mxu1 }
 0x68a   : > { %1601 = vrot.lane.b32.xlu1 %v1498_v49, %s6251_s30  ;;  %v4278_v50 = vpop.f32.mrb[25].mxu1 }
 0x68b   : > { %v1501_v28 = vpop.f32.mrb[26].mxu1 }
 0x68c   : > { %1603 = vrot.lane.b32.xlu0 %v1501_v28, %s6251_s30  ;;  %v4279_v51 = vpop.f32.mrb[27].mxu1 }
 0x691   : > { %v1506_v52 = vpop.f32.mrb[28].mxu1 }
 0x692   : > { %1628 = vrot.lane.b32.xlu1 %v1506_v52, %s6249_s16  ;;  %v4282_v29 = vpop.f32.mrb[29].mxu1 }
 0x693   : > { %v1509_v53 = vpop.f32.mrb[30].mxu1 }
 0x694   : > { %1630 = vrot.lane.b32.xlu0 %v1509_v53, %s6249_s16  ;;  %v4283_v56 = vpop.f32.mrb[31].mxu1 }
 0x699   : > { %v1514_v57 = vpop.f32.mrb[32].mxu1 }
 0x69a   : > { %1574 = vrot.lane.b32.xlu1 %v1514_v57, %s6263_s25  ;;  %v4286_v58 = vpop.f32.mrb[33].mxu1 }
 0x69b   : > { %v1517_v59 = vpop.f32.mrb[34].mxu1 }
 0x69c   : > { %1576 = vrot.lane.b32.xlu0 %v1517_v59, %s6263_s25  ;;  %v4287_v61 = vpop.f32.mrb[35].mxu1 }
 0x6a1   : > { %v5496_v62 = vpop.f32.mrb[36].mxu1 }
 0x6a2   : > { %v4290_v63 = vpop.f32.mrb[37].mxu1 }
 0x6a3   : > { %v5498_v1 = vpop.f32.mrb[38].mxu1 }
 0x6a4   : > { %v4291_v2 = vpop.f32.mrb[39].mxu1 }
 0x6a9   : > { %v1530_v3 = vpop.f32.mrb[40].mxu1 }
 0x6aa   : > { %1639 = vrot.lane.b32.xlu1 %v1530_v3, %s6261_s26  ;;  %v4294_v4 = vpop.f32.mrb[41].mxu1 }
 0x6ab   : > { %v1533_v17 = vpop.f32.mrb[42].mxu1 }
 0x6ac   : > { %1641 = vrot.lane.b32.xlu0 %v1533_v17, %s6261_s26  ;;  %v4295_v5 = vpop.f32.mrb[43].mxu1 }
 0x6ad   : > { %v5524_v5 = vsel %vm1358_vm4, 1.0, %v4674_v11 }
 0x6b1   : > { %v1538_v18 = vpop.f32.mrb[44].mxu1 }
 0x6b2   : > { %1586 = vrot.lane.b32.xlu1 %v1538_v18, %s6247_s17  ;;  %v4298_v6 = vpop.f32.mrb[45].mxu1 }
 0x6b3   : > { %v1541_v7 = vpop.f32.mrb[46].mxu1 }
 0x6b4   : > { %1588 = vrot.lane.b32.xlu0 %v1541_v7, %s6247_s17  ;;  %v4299_v8 = vpop.f32.mrb[47].mxu1 }
 0x6b9   : > { %v1546_v9 = vpop.f32.mrb[48].mxu1 }
 0x6ba   : > { %1613 = vrot.lane.b32.xlu1 %v1546_v9, %s6241_s21  ;;  %v4302_v10 = vpop.f32.mrb[49].mxu1 }
 0x6bb   : > { %v1549_v14 = vpop.f32.mrb[50].mxu1 }
 0x6bc   : > { %1615 = vrot.lane.b32.xlu0 %v1549_v14, %s6241_s21  ;;  %v4303_v15 = vpop.f32.mrb[51].mxu1  ;;  %v5532_v14 = vsel %vm1360_vm5, 1.0, %v4674_v11  ;;  %s6393_s21 = smov 120  }
 0x6c1   : > { %v1554_v16 = vpop.f32.mrb[52].mxu1 }
 0x6c2   : > { %1652 = vrot.lane.b32.xlu1 %v1554_v16, %s6239_s29  ;;  %v4306_v19 = vpop.f32.mrb[53].mxu1 }
 0x6c3   : > { %v1557_v24 = vpop.f32.mrb[54].mxu1 }
 0x6c4   : > { %1654 = vrot.lane.b32.xlu0 %v1557_v24, %s6239_s29  ;;  %v4307_v25 = vpop.f32.mrb[55].mxu1  ;;  %s4685_s29 = smov 3  }
 0x6f4   : > { %v1564_v30 = vpop.permute.xlu1 %1563 }
 0x6f5   : > { %v1570_v50 = vsel %vm1569_vm9, 0.0, %v1564_v30 }
 0x6f6   : > { %v1566_v33 = vpop.permute.xlu0 %1565 }
 0x6f7   : > { %v1571_v29 = vsel %vm1569_vm9, 0.0, %v1566_v33 }
 0x6fc   : > { %v1602_v34 = vpop.permute.xlu1 %1601 }
 0x6fd   : > { %v1607_v28 = vsel %vm6381_vm15, 0.0, %v1602_v34 }
 0x6fe   : > { %v1604_v35 = vpop.permute.xlu0 %1603  ;;  %v1609_v63 = vadd.f32 %v1607_v28, %v5496_v62 }
 0x6ff   : > { %v1608_v57 = vsel %vm6383_vm7, 0.0, %v1604_v35 }
 0x700   : > { %v1610_v6 = vadd.f32 %v1608_v57, %v5498_v1 }
 0x704   : > { %v1629_v36 = vpop.permute.xlu1 %1628 }
 0x705   : > { %v1635_v4 = vsel %vm6245_vm11, 0.0, %v1629_v36 }
 0x706   : > { %v1631_v37 = vpop.permute.xlu0 %1630 }
 0x707   : > { %v1636_v62 = vsel %vm6245_vm11, 0.0, %v1631_v37 }
 0x70c   : > { %v1575_v39 = vpop.permute.xlu1 %1574 }
 0x70d   : > { %v1580_v48 = vsel %vm6380_vm14, 0.0, %v1575_v39  ;;  %vm6384_vm14 = vcmask 130048  }
 0x70e   : > { %v1577_v41 = vpop.permute.xlu0 %1576  ;;  %v1582_v53 = vadd.f32 %v1580_v48, %v1570_v50  ;;  %vm6385_vm15 = vmmov %vm6384_vm14 }
 0x70f   : > { %v1581_v51 = vsel %vm6382_vm12, 0.0, %v1577_v41  ;;  %vm6386_vm12 = vmmov %vm6384_vm14 }
 0x710   : > { %v1583_v2 = vadd.f32 %v1581_v51, %v1571_v29  ;;  %vm6387_vm4 = vmmov %vm6386_vm12 }
 0x711   : > { %vm6388_vm5 = vmmov %vm6387_vm4 }
 0x712   : > { %vm6389_vm7 = vmmov %vm6387_vm4 }
 0x71c   : > { %v1640_v42 = vpop.permute.xlu1 %1639 }
 0x71d   : > { %v1646_v58 = vsel %vm1645_vm0, %v1640_v42, 0.0 }
 0x71e   : > { %v1642_v43 = vpop.permute.xlu0 %1641  ;;  %v1648_v7 = vadd.f32 %v1646_v58, %v1635_v4 }
 0x71f   : > { %v1647_v17 = vsel %vm1645_vm0, %v1642_v43, 0.0 }
 0x720   : > { %v1649_v16 = vadd.f32 %v1647_v17, %v1636_v62 }
 0x724   : > { %v1587_v46 = vpop.permute.xlu1 %1586 }
 0x725   : > { %v1593_v52 = vsel %vm6246_vm13, %v1587_v46, 0.0 }
 0x726   : > { %v1589_v47 = vpop.permute.xlu0 %1588  ;;  %v1595_v3 = vadd.f32 %v1593_v52, %v1582_v53 }
 0x727   : > { %v1594_v59 = vsel %vm6246_vm13, %v1589_v47, 0.0 }
 0x728   : > { %v1596_v8 = vadd.f32 %v1594_v59, %v1583_v2  ;;  %v1597_v19 = vmul.f32 %v1595_v3, %v5524_v5 }
 0x72a   : > { %v1598_v33 = vmul.f32 %v1596_v8, %v5524_v5 }
 0x72c   : > { %v1614_v49 = vpop.permute.xlu1 %1613 }
 0x72d   : > { %v1620_v61 = vsel %vm1619_vm8, %v1614_v49, 0.0 }
 0x72e   : > { %v1616_v56 = vpop.permute.xlu0 %1615  ;;  %v1622_v9 = vadd.f32 %v1620_v61, %v1609_v63 }
 0x72f   : > { %v1621_v18 = vsel %vm1619_vm8, %v1616_v56, 0.0 }
 0x730   : > { %v1623_v24 = vadd.f32 %v1621_v18, %v1610_v6  ;;  %v1624_v34 = vadd.f32 %v1622_v9, %v1597_v19  ;;  %v4569_v19 = vld [vmem:[%s6205_s4] sm:$0xff]  }
 0x732   : > { %v1625_v26 = vadd.f32 %v1623_v24, %v1598_v33  ;;  %v4570_v24 = vld [vmem:[%s6205_s4 + $0x8] sm:$0xff]  }
 0x733   : > { %v4574_v33 = vld [vmem:[%s6205_s4 + $0x28] sm:$0xff]  }
 0x734   : > { %v1653_v10 = vpop.permute.xlu1 %1652 }
 0x735   : > { %v1659_v15 = vsel %vm1658_vm2, %v1653_v10, 0.0 }
 0x736   : > { %v1661_v25 = vadd.f32 %v1659_v15, %v1648_v7  ;;  %v1655_v30 = vpop.permute.xlu0 %1654 }
 0x737   : > { %v1660_v1 = vsel %vm1658_vm2, %v1655_v30, 0.0  ;;  %v4572_v30 = vld [vmem:[%s6205_s4 + $0x18] sm:$0xff]  }
 0x738   : > { %v1663_v35 = vmul.f32 %v1661_v25, %v5532_v14  ;;  %v1662_v36 = vadd.f32 %v1660_v1, %v1649_v16  ;;  %v4571_v25 = vld [vmem:[%s6205_s4 + $0x10] sm:$0xff]   ;;  %v4573_v1 = vld [vmem:[%s6205_s4 + $0x20] sm:$0xff]  }
 0x73a   : > { %v1664_v37 = vmul.f32 %v1662_v36, %v5532_v14  ;;  %v1665_v39 = vadd.f32 %v1663_v35, %v1624_v34  ;;  %v4575_v34 = vld [vmem:[%s6205_s4 + $0x30] sm:$0xff]   ;;  %v4576_v35 = vld [vmem:[%s6205_s4 + $0x38] sm:$0xff]   ;;  %v4577_v36 = vld [vmem:[%s6205_s4 + $0x40] sm:$0xff]  }
 0x73c   : > { %v1668_v41 = vsel %vm1667_vm3, %v1665_v39, 0.0  ;;  %v1666_v42 = vadd.f32 %v1664_v37, %v1625_v26  ;;  %v1676_v47 = vmul.f32 %v1665_v39, %v1665_v39 }
 0x73d   : > { %1669 = vadd.xlane.f32.xlu1 %v1668_v41 }
 0x73e   : > { %v1671_v43 = vsel %vm1667_vm3, %v1666_v42, 0.0  ;;  %v1677_v46 = vmul.f32 %v1666_v42, %v1666_v42  ;;  %v1678_v49 = vsel %vm1667_vm3, %v1676_v47, 0.0 }
 0x73f   : > { %1672 = vadd.xlane.f32.xlu0 %v1671_v43 }
 0x740   : > { %v1681_v48 = vsel %vm1667_vm3, %v1677_v46, 0.0 }
 0x741   : > { %1682 = vadd.xlane.f32.xlu1 %v1681_v48 }
 0x743   : > { %1679 = vadd.xlane.f32.xlu0 %v1678_v49 }
 0x7ca   : > { %v1670_v50 = vpop.xlane.xlu1 %1669 }
 0x7cb   : > { %v1674_v51 = vmul.f32 0.015625, %v1670_v50 }
 0x7cc   : > { %v1673_v28 = vpop.xlane.xlu0 %1672 }
 0x7cd   : > { %v1675_v52 = vmul.f32 0.015625, %v1673_v28  ;;  %v1686_v58 = vmul.f32 %v1674_v51, %v1674_v51  ;;  %v1692_v7 = vsub.f32 %v1665_v39, %v1674_v51 }
 0x7ce   : > { %v1683_v29 = vpop.xlane.xlu1 %1682 }
 0x7cf   : > { %v1687_v53 = vmul.f32 %v1675_v52, %v1675_v52  ;;  %v1685_v56 = vmul.f32 0.015625, %v1683_v29  ;;  %v1693_v18 = vsub.f32 %v1666_v42, %v1675_v52 }
 0x7d0   : > { %v1680_v57 = vpop.xlane.xlu0 %1679 }
 0x7d1   : > { %v1689_v59 = vsub.f32 %v1685_v56, %v1687_v53  ;;  %v1684_v61 = vmul.f32 0.015625, %v1680_v57 }
 0x7d3   : > { %v1691_v63 = vmax.f32 %v1689_v59, 0.0  ;;  %v1688_v2 = vsub.f32 %v1684_v61, %v1686_v58 }
 0x7d5   : > { %v1695_v3 = vadd.f32 1e-05, %v1691_v63  ;;  %v1690_v4 = vmax.f32 %v1688_v2, 0.0 }
 0x7d7   : > { %4633 = vrsqrt.f32 %v1695_v3  ;;  %v1694_v17 = vadd.f32 1e-05, %v1690_v4 }
 0x7d9   : > { %4635 = vrsqrt.f32 %v1694_v17 }
 0x7e1   : > { %v4634_v6 = vpop.eup %4633 }
 0x7e2   : > { %v1699_v8 = vmul.f32 %v4634_v6, %v1693_v18 }
 0x7e3   : > { %v4636_v9 = vpop.eup %4635 }
 0x7e4   : > { %v1698_v10 = vmul.f32 %v4636_v9, %v1692_v7  ;;  %v1701_v15 = vmax.f32 %v1699_v8, 0.0 }
 0x7e6   : > { %v1700_v62 = vmax.f32 %v1698_v10, 0.0 }
 0x7e8   : > { %v1720_v16 = vpack.c.bf16 %v1701_v15, %v1700_v62 }
 0x7ea   : > { %4309 = vmatpush3.bf16.msra.mxu0 %v1720_v16 }
 0x7eb   : > { %4358 = vmatprep.subr.bf16.mxu0 %v4674_v11 }
 0x7ed   : > { %4311 = vmatmul.mubr.msk.bf16.vlgmr.msra.gmra.mrb[24].mxu0 %vm6384_vm14, %v4569_v19  ;;  %vm6390_vm14 = vmmov %vm6387_vm4 }
 0x7ee   : > { %4314 = vmatprep.mubr.msk.bf16.mxu0 %vm4676_vm1, %v4674_v11 }
 0x7f5   : > { %4315 = vmatmul.mubr.msk.bf16.gmra.mrb[28].mxu0 %vm6385_vm15, %v4570_v24  ;;  %vm6391_vm15 = vmmov %vm6387_vm4 }
 0x7f6   : > { %4318 = vmatprep.mubr.msk.bf16.mxu0 %vm4676_vm1, %v4674_v11 }
 0x7fd   : > { %4319 = vmatmul.mubr.msk.bf16.gmra.mrb[32].mxu0 %vm6386_vm12, %v4571_v25  ;;  %vm6392_vm12 = vmmov %vm6387_vm4 }
 0x7fe   : > { %4322 = vmatprep.mubr.msk.bf16.mxu0 %vm4676_vm1, %v4674_v11 }
 0x805   : > { %4323 = vmatmul.mubr.msk.bf16.gmra.mrb[36].mxu0 %vm6387_vm4, %v4572_v30  ;;  %vm6395_vm4 = vcmask 7168  }
 0x806   : > { %4326 = vmatprep.mubr.msk.bf16.mxu0 %vm4676_vm1, %v4674_v11 }
 0x80d   : > { %4327 = vmatmul.mubr.msk.bf16.gmra.mrb[40].mxu0 %vm6388_vm5, %v4573_v1  ;;  %vm6396_vm5 = vcmask 64512  }
 0x80e   : > { %4330 = vmatprep.mubr.msk.bf16.mxu0 %vm4676_vm1, %v4674_v11 }
 0x815   : > { %4331 = vmatmul.mubr.msk.bf16.gmra.mrb[44].mxu0 %vm6389_vm7, %v4574_v33  ;;  %vm6397_vm7 = vmmov %vm6395_vm4 }
 0x816   : > { %4334 = vmatprep.mubr.msk.bf16.mxu0 %vm4676_vm1, %v4674_v11 }
 0x81d   : > { %4335 = vmatmul.mubr.msk.bf16.gmra.mrb[48].mxu0 %vm6390_vm14, %v4575_v34  ;;  %vm6398_vm14 = vmmov %vm6396_vm5 }
 0x81e   : > { %4338 = vmatprep.mubr.msk.bf16.mxu0 %vm4676_vm1, %v4674_v11 }
 0x825   : > { %4339 = vmatmul.mubr.msk.bf16.gmra.mrb[52].mxu0 %vm6391_vm15, %v4576_v35 }
 0x826   : > { %4342 = vmatprep.mubr.msk.bf16.mxu0 %vm4676_vm1, %v4674_v11 }
 0x82d   : > { %4343 = vmatmul.mubr.msk.bf16.gmra.mrb[56].mxu0 %vm6392_vm12, %v4577_v36 }
 0x82e   : > { %4360 = vmatprep.mubr.msk.bf16.mxu0 %vm4676_vm1, %v4674_v11 }
 0x8c0   : > { %v1827_v26 = vpop.f32.mrb[24].mxu0 }
 0x8c1   : > { %1900 = vrot.lane.b32.xlu0 %v1827_v26, %s6253_s28  ;;  %v4312_v37 = vpop.f32.mrb[25].mxu0 }
 0x8c2   : > { %v1830_v39 = vpop.f32.mrb[26].mxu0 }
 0x8c3   : > { %1902 = vrot.lane.b32.xlu1 %v1830_v39, %s6253_s28  ;;  %v4313_v41 = vpop.f32.mrb[27].mxu0  ;;  %s6443_s28 = smov 9  }
 0x8c8   : > { %v1835_v42 = vpop.f32.mrb[28].mxu0 }
 0x8c9   : > { %1936 = vrot.lane.b32.xlu1 %v1835_v42, %s6251_s30  ;;  %v4316_v43 = vpop.f32.mrb[29].mxu0 }
 0x8ca   : > { %v1838_v46 = vpop.f32.mrb[30].mxu0 }
 0x8cb   : > { %1938 = vrot.lane.b32.xlu0 %v1838_v46, %s6251_s30  ;;  %v4317_v47 = vpop.f32.mrb[31].mxu0  ;;  %s6468_s30 = smov 113  }
 0x8d0   : > { %v1843_v48 = vpop.f32.mrb[32].mxu0 }
 0x8d1   : > { %1962 = vrot.lane.b32.xlu1 %v1843_v48, %s6249_s16  ;;  %v4320_v49 = vpop.f32.mrb[33].mxu0 }
 0x8d2   : > { %v1846_v50 = vpop.f32.mrb[34].mxu0 }
 0x8d3   : > { %1964 = vrot.lane.b32.xlu0 %v1846_v50, %s6249_s16  ;;  %v4321_v28 = vpop.f32.mrb[35].mxu0  ;;  %s4683_s16 = smov 5  }
 0x8d8   : > { %v1851_v51 = vpop.f32.mrb[36].mxu0 }
 0x8d9   : > { %1910 = vrot.lane.b32.xlu1 %v1851_v51, %s6263_s25  ;;  %v4324_v52 = vpop.f32.mrb[37].mxu0 }
 0x8da   : > { %v1854_v29 = vpop.f32.mrb[38].mxu0 }
 0x8db   : > { %1912 = vrot.lane.b32.xlu0 %v1854_v29, %s6263_s25  ;;  %v4325_v53 = vpop.f32.mrb[39].mxu0 }
 0x8e0   : > { %v1859_v56 = vpop.f32.mrb[40].mxu0 }
 0x8e1   : > { %v4328_v57 = vpop.f32.mrb[41].mxu0 }
 0x8e2   : > { %v1862_v58 = vpop.f32.mrb[42].mxu0 }
 0x8e3   : > { %v4329_v59 = vpop.f32.mrb[43].mxu0 }
 0x8e8   : > { %v1867_v61 = vpop.f32.mrb[44].mxu0 }
 0x8e9   : > { %1972 = vrot.lane.b32.xlu1 %v1867_v61, %s6261_s26  ;;  %v4332_v63 = vpop.f32.mrb[45].mxu0 }
 0x8ea   : > { %v1870_v2 = vpop.f32.mrb[46].mxu0 }
 0x8eb   : > { %1974 = vrot.lane.b32.xlu0 %v1870_v2, %s6261_s26  ;;  %v4333_v3 = vpop.f32.mrb[47].mxu0 }
 0x8f0   : > { %v1875_v4 = vpop.f32.mrb[48].mxu0 }
 0x8f1   : > { %1922 = vrot.lane.b32.xlu1 %v1875_v4, %s6247_s17  ;;  %v4336_v17 = vpop.f32.mrb[49].mxu0 }
 0x8f2   : > { %v1878_v18 = vpop.f32.mrb[50].mxu0 }
 0x8f3   : > { %1924 = vrot.lane.b32.xlu0 %v1878_v18, %s6247_s17  ;;  %v4337_v6 = vpop.f32.mrb[51].mxu0  ;;  %s6257_s17 = smov 124  }
 0x8f8   : > { %v1883_v7 = vpop.f32.mrb[52].mxu0 }
 0x8f9   : > { %1948 = vrot.lane.b32.xlu1 %v1883_v7, %s6393_s21  ;;  %v4340_v8 = vpop.f32.mrb[53].mxu0 }
 0x8fa   : > { %v1886_v9 = vpop.f32.mrb[54].mxu0 }
 0x8fb   : > { %1950 = vrot.lane.b32.xlu0 %v1886_v9, %s6393_s21  ;;  %v4341_v10 = vpop.f32.mrb[55].mxu0 }
 0x900   : > { %v1891_v62 = vpop.f32.mrb[56].mxu0 }
 0x901   : > { %1984 = vrot.lane.b32.xlu1 %v1891_v62, %s6394_s27  ;;  %v4344_v15 = vpop.f32.mrb[57].mxu0 }
 0x902   : > { %v1894_v16 = vpop.f32.mrb[58].mxu0 }
 0x903   : > { %1986 = vrot.lane.b32.xlu0 %v1894_v16, %s6394_s27  ;;  %v4345_v19 = vpop.f32.mrb[59].mxu0 }
 0x933   : > { %v1901_v25 = vpop.permute.xlu0 %1900 }
 0x934   : > { %v1906_v46 = vsel %vm1569_vm9, 0.0, %v1901_v25 }
 0x935   : > { %v1903_v24 = vpop.permute.xlu1 %1902 }
 0x936   : > { %v1907_v50 = vsel %vm1569_vm9, 0.0, %v1903_v24 }
 0x93b   : > { %v1937_v30 = vpop.permute.xlu1 %1936 }
 0x93c   : > { %v1942_v47 = vsel %vm6396_vm5, 0.0, %v1937_v30 }
 0x93d   : > { %v1939_v1 = vpop.permute.xlu0 %1938  ;;  %v1944_v59 = vadd.f32 %v1942_v47, %v1859_v56  ;;  %v2065_v47 = vshra.s32 %v4983_v32, 3 }
 0x93e   : > { %v1943_v52 = vsel %vm6398_vm14, 0.0, %v1939_v1 }
 0x93f   : > { %v1945_v17 = vadd.f32 %v1943_v52, %v1862_v58 }
 0x943   : > { %v1963_v33 = vpop.permute.xlu1 %1962 }
 0x944   : > { %v1968_v2 = vsel %vm6245_vm11, 0.0, %v1963_v33 }
 0x945   : > { %v1965_v34 = vpop.permute.xlu0 %1964 }
 0x946   : > { %v1969_v9 = vsel %vm6245_vm11, 0.0, %v1965_v34 }
 0x94b   : > { %v1911_v35 = vpop.permute.xlu1 %1910 }
 0x94c   : > { %v1916_v42 = vsel %vm6395_vm4, 0.0, %v1911_v35 }
 0x94d   : > { %v1913_v36 = vpop.permute.xlu0 %1912  ;;  %v1918_v28 = vadd.f32 %v1916_v42, %v1906_v46  ;;  %v2064_v46 = vshra.s32 %v4973_v27, 3 }
 0x94e   : > { %v1917_v48 = vsel %vm6397_vm7, 0.0, %v1913_v36 }
 0x94f   : > { %v1919_v61 = vadd.f32 %v1917_v48, %v1907_v50  ;;  %v2072_v48 = vand.u32 7, %v4973_v27  ;;  %v2080_v50 = vshra.s32 %v4833_v38, 2 }
 0x95b   : > { %v1973_v26 = vpop.permute.xlu1 %1972 }
 0x95c   : > { %v1978_v29 = vsel %vm1645_vm0, %v1973_v26, 0.0 }
 0x95d   : > { %v1975_v37 = vpop.permute.xlu0 %1974  ;;  %v1980_v18 = vadd.f32 %v1978_v29, %v1968_v2 }
 0x95e   : > { %v1979_v3 = vsel %vm1645_vm0, %v1975_v37, 0.0 }
 0x95f   : > { %v1981_v62 = vadd.f32 %v1979_v3, %v1969_v9  ;;  %v2067_v9 = vshra.s32 %v5035_v55, 3 }
 0x963   : > { %v1923_v39 = vpop.permute.xlu1 %1922 }
 0x964   : > { %v1928_v49 = vsel %vm6246_vm13, %v1923_v39, 0.0 }
 0x965   : > { %v1925_v41 = vpop.permute.xlu0 %1924  ;;  %v1930_v63 = vadd.f32 %v1928_v49, %v1918_v28  ;;  %v2073_v49 = vand.u32 7, %v4983_v32  ;;  %v5655_v28 = vand.u32 3, %v4833_v38 }
 0x966   : > { %v1929_v53 = vsel %vm6246_vm13, %v1925_v41, 0.0 }
 0x967   : > { %v1931_v6 = vadd.f32 %v1929_v53, %v1919_v61  ;;  %v1932_v56 = vmul.f32 %v1930_v63, %v5524_v5  ;;  %v5660_v52 = vmul.u32 2, %v5655_v28 }
 0x969   : > { %v1933_v25 = vmul.f32 %v1931_v6, %v5524_v5  ;;  %vm2092_vm4 = vcmp.eq.s32.totalorder %v2072_v48, %v5660_v52  ;;  %vm2093_vm5 = vcmp.eq.s32.totalorder %v2073_v49, %v5660_v52 }
 0x96b   : > { %v1949_v43 = vpop.permute.xlu1 %1948 }
 0x96c   : > { %v1954_v57 = vsel %vm1619_vm8, %v1949_v43, 0.0 }
 0x96d   : > { %v1951_v51 = vpop.permute.xlu0 %1950  ;;  %v1956_v7 = vadd.f32 %v1954_v57, %v1944_v59 }
 0x96e   : > { %v1955_v4 = vsel %vm1619_vm8, %v1951_v51, 0.0  ;;  %v5657_v51 = vmul.u32 2, %v2080_v50 }
 0x96f   : > { %v1957_v15 = vadd.f32 %v1955_v4, %v1945_v17  ;;  %v1958_v30 = vadd.f32 %v1956_v7, %v1932_v56  ;;  %v2068_v56 = vshra.s32 %v5118_v22, 3 }
 0x970   : > { %vm2083_vm15 = vcmp.eq.s32.totalorder %v2064_v46, %v5657_v51  ;;  %vm2084_vm12 = vcmp.eq.s32.totalorder %v2065_v47, %v5657_v51 }
 0x971   : > { %v1959_v33 = vadd.f32 %v1957_v15, %v1933_v25  ;;  %vm2100_vm7 = vmand %vm2083_vm15, %vm2092_vm4  ;;  %vm2086_vm15 = vcmp.eq.s32.totalorder %v2067_v9, %v5657_v51  ;;  %v2069_v15 = vshra.s32 %v5121_v23, 3  ;;  %vm5682_vm6 = vcmp.eq.s32.totalorder %v2068_v56, %v5657_v51  ;;  %v4583_v9 = vld [vmem:[%s6206_s5 + $0x28] sm:$0xff]   ;;  %v4586_v56 = vld [vmem:[%s6206_s5 + $0x40] sm:$0xff]  }
 0x972   : > { %vm2101_vm14 = vmand %vm2084_vm12, %vm2093_vm5  ;;  %v2079_v25 = vand.u32 7, %v5147_v40 }
 0x973   : > { %v1985_v8 = vpop.permute.xlu1 %1984  ;;  %vm4085_vm10 = vmpackc.low %vm2101_vm14, %vm2100_vm7  ;;  %vm2088_vm11 = vcmp.eq.s32.totalorder %v2069_v15, %v5657_v51 }
 0x974   : > { %v1990_v10 = vsel %vm1658_vm2, %v1985_v8, 0.0  ;;  %4347 = vmatpush3.bf16.msk.msra.mxu1 %vm4085_vm10, %v4675_v60  ;;  %v2066_v8 = vshra.s32 %v5032_v54, 3 }
 0x975   : > { %v1992_v16 = vadd.f32 %v1990_v10, %v1980_v18  ;;  %v1987_v19 = vpop.permute.xlu0 %1986  ;;  %4348 = vmatprep.subr.bf16.mxu1 %v4674_v11  ;;  %v2074_v10 = vand.u32 7, %v5032_v54  ;;  %v2077_v54 = vand.u32 7, %v5121_v23  ;;  %v2071_v23 = vshra.s32 %v5147_v40, 3 }
 0x976   : > { %v1991_v24 = vsel %vm1658_vm2, %v1987_v19, 0.0  ;;  %vm2085_vm10 = vcmp.eq.s32.totalorder %v2066_v8, %v5657_v51  ;;  %v4582_v8 = vld [vmem:[%s6206_s5 + $0x20] sm:$0xff]  }
 0x977   : > { %v1994_v58 = vmul.f32 %v1992_v16, %v5532_v14  ;;  %v1993_v1 = vadd.f32 %v1991_v24, %v1981_v62  ;;  %v2075_v62 = vand.u32 7, %v5035_v55  ;;  %vm2094_vm12 = vcmp.eq.s32.totalorder %v2074_v10, %v5660_v52  ;;  %v4584_v10 = vld [vmem:[%s6206_s5 + $0x30] sm:$0xff]  }
 0x978   : > { %vm2102_vm5 = vmand %vm2085_vm10, %vm2094_vm12  ;;  %v2076_v16 = vand.u32 7, %v5118_v22  ;;  %v2070_v22 = vshra.s32 %v5136_v31, 3  ;;  %v2078_v24 = vand.u32 7, %v5136_v31 }
 0x979   : > { %v1995_v35 = vmul.f32 %v1993_v1, %v5532_v14  ;;  %v5635_v34 = vadd.f32 %v1994_v58, %v1958_v30  ;;  %vm2095_vm4 = vcmp.eq.s32.totalorder %v2075_v62, %v5660_v52  ;;  %v4585_v62 = vld [vmem:[%s6206_s5 + $0x38] sm:$0xff]  }
 0x97a   : > { %vm2103_vm7 = vmand %vm2086_vm15, %vm2095_vm4  ;;  %vm2096_vm10 = vcmp.eq.s32.totalorder %v2076_v16, %v5660_v52  ;;  %vm2097_vm15 = vcmp.eq.s32.totalorder %v2077_v54, %v5660_v52 }
 0x97b   : > { %v1998_v36 = vsel %vm1667_vm3, %v5635_v34, 0.0  ;;  %v5639_v26 = vadd.f32 %v1995_v35, %v1959_v33  ;;  %v2006_v41 = vmul.f32 %v5635_v34, %v5635_v34  ;;  %vm4087_vm14 = vmpackc.low %vm2103_vm7, %vm2102_vm5  ;;  %vm2089_vm7 = vcmp.eq.s32.totalorder %v2070_v22, %v5657_v51 }
 0x97c   : > { %1999 = vadd.xlane.f32.xlu1 %v1998_v36  ;;  %4349 = vmatpush3.bf16.msk.msra.mxu1 %vm4087_vm14, %v4675_v60  ;;  %vm2104_vm12 = vmand %vm5682_vm6, %vm2096_vm10  ;;  %vm2090_vm6 = vcmp.eq.s32.totalorder %v2071_v23, %v5657_v51  ;;  %vm2099_vm14 = vcmp.eq.s32.totalorder %v2079_v25, %v5660_v52 }
 0x97d   : > { %v2001_v37 = vsel %vm1667_vm3, %v5639_v26, 0.0  ;;  %v2007_v39 = vmul.f32 %v5639_v26, %v5639_v26  ;;  %v2008_v43 = vsel %vm1667_vm3, %v2006_v41, 0.0  ;;  %4350 = vmatprep.subr.bf16.mxu1 %v4674_v11  ;;  %vm2105_vm4 = vmand %vm2088_vm11, %vm2097_vm15  ;;  %vm2098_vm11 = vcmp.eq.s32.totalorder %v2078_v24, %v5660_v52 }
 0x97e   : > { %2002 = vadd.xlane.f32.xlu0 %v2001_v37  ;;  %vm4089_vm5 = vmpackc.low %vm2105_vm4, %vm2104_vm12 }
 0x97f   : > { %v2011_v42 = vsel %vm1667_vm3, %v2007_v39, 0.0  ;;  %vm2106_vm10 = vmand %vm2089_vm7, %vm2098_vm11 }
 0x980   : > { %2012 = vadd.xlane.f32.xlu1 %v2011_v42  ;;  %4351 = vmatpush3.bf16.msk.msra.mxu1 %vm4089_vm5, %v4675_v60  ;;  %vm2107_vm15 = vmand %vm2090_vm6, %vm2099_vm14 }
 0x981   : > { %4352 = vmatprep.subr.bf16.mxu1 %v4674_v11  ;;  %vm4091_vm13 = vmpackc.low %vm2107_vm15, %vm2106_vm10  ;;  %vm2373_vm15 = vcmask 39936  }
 0x982   : > { %2009 = vadd.xlane.f32.xlu0 %v2008_v43 }
 0x984   : > { %4353 = vmatpush3.bf16.msk.msra.mxu1 %vm4091_vm13, %v4675_v60  ;;  %vm6401_vm13 = vcmask 130048  }
 0x985   : > { %4396 = vmatprep.subr.bf16.mxu1 %v4674_v11  ;;  %vm6402_vm12 = vmmov %vm6401_vm13 }
 0x986   : > { %vm6403_vm4 = vmmov %vm6402_vm12 }
 0x987   : > { %vm6404_vm5 = vmmov %vm6403_vm4 }
 0x988   : > { %vm6405_vm7 = vmmov %vm6403_vm4 }
 0x989   : > { %vm6406_vm6 = vmmov %vm6403_vm4 }
 0x98a   : > { %vm6407_vm11 = vmmov %vm6403_vm4 }
 0x98b   : > { %vm6408_vm14 = vmmov %vm6403_vm4 }
 0x98c   : > { %vm6409_vm10 = vmmov %vm6403_vm4 }
 0xa09   : > { %v2000_v38 = vpop.xlane.xlu1 %1999 }
 0xa0a   : > { %v2004_v32 = vmul.f32 0.015625, %v2000_v38 }
 0xa0b   : > { %v2003_v27 = vpop.xlane.xlu0 %2002 }
 0xa0c   : > { %v2005_v29 = vmul.f32 0.015625, %v2003_v27  ;;  %v2016_v63 = vmul.f32 %v2004_v32, %v2004_v32  ;;  %v2022_v58 = vsub.f32 %v5635_v34, %v2004_v32 }
 0xa0d   : > { %v2013_v53 = vpop.xlane.xlu1 %2012 }
 0xa0e   : > { %v2017_v57 = vmul.f32 %v2005_v29, %v2005_v29  ;;  %v2015_v59 = vmul.f32 0.015625, %v2013_v53  ;;  %v2023_v19 = vsub.f32 %v5639_v26, %v2005_v29 }
 0xa0f   : > { %v2010_v61 = vpop.xlane.xlu0 %2009 }
 0xa10   : > { %v2019_v2 = vsub.f32 %v2015_v59, %v2017_v57  ;;  %v2014_v3 = vmul.f32 0.015625, %v2010_v61 }
 0xa12   : > { %v2021_v4 = vmax.f32 %v2019_v2, 0.0  ;;  %v2018_v17 = vsub.f32 %v2014_v3, %v2016_v63 }
 0xa14   : > { %v2025_v18 = vadd.f32 1e-05, %v2021_v4  ;;  %v2020_v6 = vmax.f32 %v2018_v17, 0.0  ;;  %v4578_v17 = vld [vmem:[%s6206_s5] sm:$0xff]  }
 0xa16   : > { %4637 = vrsqrt.f32 %v2025_v18  ;;  %v2024_v7 = vadd.f32 1e-05, %v2020_v6  ;;  %v4579_v18 = vld [vmem:[%s6206_s5 + $0x8] sm:$0xff]   ;;  %v4580_v6 = vld [vmem:[%s6206_s5 + $0x10] sm:$0xff]  }
 0xa18   : > { %4639 = vrsqrt.f32 %v2024_v7  ;;  %v4581_v7 = vld [vmem:[%s6206_s5 + $0x18] sm:$0xff]  }
 0xa20   : > { %v4638_v30 = vpop.eup %4637 }
 0xa21   : > { %v2029_v1 = vmul.f32 %v4638_v30, %v2023_v19 }
 0xa22   : > { %v4640_v33 = vpop.eup %4639 }
 0xa23   : > { %v2028_v31 = vmul.f32 %v4640_v33, %v2022_v58  ;;  %v5706_v35 = vmax.f32 %v2029_v1, 0.0 }
 0xa25   : > { %v5704_v40 = vmax.f32 %v2028_v31, 0.0 }
 0xa27   : > { %v4538_v34 = vpack.i.bf16 %v5706_v35, %v5704_v40 }
 0xa29   : > { %4539 = vrot.lane.b32.xlu1 %v4538_v34, %s6393_s21  ;;  %4534 = vrot.lane.b32.xlu0 %v4538_v34, %s6261_s26 }
 0xa2d   : > { %4544 = vrot.lane.b32.xlu1 %v4538_v34, %s6394_s27 }
 0xa9b   : > { %v4540_v36 = vpop.permute.xlu1 %4539  ;;  %v4535_v26 = vpop.permute.xlu0 %4534 }
 0xa9c   : > { %v4542_v37 = vunpack.i.h.bf16 %v4540_v36  ;;  %v4541_v39 = vunpack.i.l.bf16 %v4540_v36  ;;  %v4537_v41 = vunpack.i.h.bf16 %v4535_v26  ;;  %v4536_v42 = vunpack.i.l.bf16 %v4535_v26 }
 0xa9e   : > { %v2041_v43 = vsel %vm1645_vm0, %v4537_v41, 0.0  ;;  %v2040_v60 = vsel %vm1645_vm0, %v4536_v42, 0.0  ;;  %v2051_v49 = vsel %vm1619_vm8, %v4542_v37, 0.0  ;;  %v2050_v50 = vsel %vm1619_vm8, %v4541_v39, 0.0 }
 0xa9f   : > { %v2043_v46 = vmax.f32 %v5706_v35, %v2041_v43  ;;  %v2042_v47 = vmax.f32 %v5704_v40, %v2040_v60  ;;  %v4545_v48 = vpop.permute.xlu1 %4544 }
 0xaa0   : > { %v4547_v51 = vunpack.i.h.bf16 %v4545_v48  ;;  %v4546_v52 = vunpack.i.l.bf16 %v4545_v48 }
 0xaa1   : > { %v2052_v38 = vmax.f32 %v2042_v47, %v2050_v50  ;;  %v2053_v27 = vmax.f32 %v2043_v46, %v2051_v49 }
 0xaa2   : > { %v2061_v32 = vsel %vm1658_vm2, %v4547_v51, 0.0  ;;  %v2060_v29 = vsel %vm1658_vm2, %v4546_v52, 0.0 }
 0xaa3   : > { %v2062_v53 = vmax.f32 %v2052_v38, %v2060_v29  ;;  %v2063_v57 = vmax.f32 %v2053_v27, %v2061_v32 }
 0xaa5   : > { %v2120_v59 = vpack.c.bf16 %v2063_v57, %v2062_v53 }
 0xaa7   : > { %4355 = vmatmul.mubr.msk.bf16.vlgmr.msra.gmra.mrb[56].mxu1 %vm1667_vm3, %v2120_v59 }
 0xaa8   : > { %4398 = vmatprep.mubr.msk.bf16.mxu1 %vm4676_vm1, %v4674_v11 }
 0xb7a   : > { %v2158_v61 = vpop.f32.mrb[56].mxu1 }
 0xb7b   : > { %v4356_v63 = vpop.f32.mrb[57].mxu1 }
 0xb7c   : > { %v2161_v2 = vpop.f32.mrb[58].mxu1 }
 0xb7d   : > { %v2187_v3 = vpack.c.bf16 %v2161_v2, %v2158_v61  ;;  %v4357_v4 = vpop.f32.mrb[59].mxu1 }
 0xb7f   : > { %4359 = vmatpush3.bf16.msra.mxu0 %v2187_v3 }
 0xb80   : > { %4434 = vmatprep.subr.bf16.mxu0 %v4674_v11 }
 0xb82   : > { %4361 = vmatmul.mubr.msk.bf16.vlgmr.msra.gmra.mrb[60].mxu0 %vm6401_vm13, %v4578_v17  ;;  %vm2396_vm13 = vcmask 105472  }
 0xb83   : > { %4364 = vmatprep.mubr.msk.bf16.mxu0 %vm4676_vm1, %v4674_v11 }
 0xb8a   : > { %4365 = vmatmul.mubr.msk.bf16.gmra.mrb[64].mxu0 %vm6402_vm12, %v4579_v18  ;;  %vm6410_vm12 = vcmask 7168  }
 0xb8b   : > { %4368 = vmatprep.mubr.msk.bf16.mxu0 %vm4676_vm1, %v4674_v11 }
 0xb92   : > { %4369 = vmatmul.mubr.msk.bf16.gmra.mrb[68].mxu0 %vm6403_vm4, %v4580_v6  ;;  %vm2438_vm4 = vcmask 23552  }
 0xb93   : > { %4372 = vmatprep.mubr.msk.bf16.mxu0 %vm4676_vm1, %v4674_v11 }
 0xb9a   : > { %4373 = vmatmul.mubr.msk.bf16.gmra.mrb[72].mxu0 %vm6404_vm5, %v4581_v7  ;;  %vm2423_vm5 = vcmask 97280  }
 0xb9b   : > { %4376 = vmatprep.mubr.msk.bf16.mxu0 %vm4676_vm1, %v4674_v11 }
 0xba2   : > { %4377 = vmatmul.mubr.msk.bf16.gmra.mrb[76].mxu0 %vm6405_vm7, %v4582_v8  ;;  %vm6411_vm7 = vcmask 31744  }
 0xba3   : > { %4380 = vmatprep.mubr.msk.bf16.mxu0 %vm4676_vm1, %v4674_v11 }
 0xbaa   : > { %4381 = vmatmul.mubr.msk.bf16.gmra.mrb[80].mxu0 %vm6406_vm6, %v4583_v9  ;;  %vm6412_vm6 = vmmov %vm6410_vm12 }
 0xbab   : > { %4384 = vmatprep.mubr.msk.bf16.mxu0 %vm4676_vm1, %v4674_v11 }
 0xbb2   : > { %4385 = vmatmul.mubr.msk.bf16.gmra.mrb[84].mxu0 %vm6407_vm11, %v4584_v10  ;;  %vm2165_vm11 = vcmp.ne.s32.totalorder %v5655_v28, 0 }
 0xbb3   : > { %4388 = vmatprep.mubr.msk.bf16.mxu0 %vm4676_vm1, %v4674_v11 }
 0xbba   : > { %4389 = vmatmul.mubr.msk.bf16.gmra.mrb[88].mxu0 %vm6408_vm14, %v4585_v62  ;;  %vm2167_vm14 = vcmp.ne.s32.totalorder %v5655_v28, 3 }
 0xbbb   : > { %4392 = vmatprep.mubr.msk.bf16.mxu0 %vm4676_vm1, %v4674_v11 }
 0xbc2   : > { %4393 = vmatmul.mubr.msk.bf16.gmra.mrb[92].mxu0 %vm6409_vm10, %v4586_v56  ;;  %vm6413_vm10 = vmmov %vm6411_vm7 }
 0xbc3   : > { %4436 = vmatprep.mubr.msk.bf16.mxu0 %vm4676_vm1, %v4674_v11 }
 0xc55   : > { %v2294_v15 = vpop.f32.mrb[60].mxu0 }
 0xc56   : > { %v4362_v16 = vpop.f32.mrb[61].mxu0  ;;  %2367 = vrot.lane.b32.xlu0 %v2294_v15, %s4683_s16 }
 0xc57   : > { %v2297_v54 = vpop.f32.mrb[62].mxu0 }
 0xc58   : > { %v4363_v55 = vpop.f32.mrb[63].mxu0  ;;  %2369 = vrot.lane.b32.xlu1 %v2297_v54, %s4683_s16 }
 0xc5d   : > { %v2302_v19 = vpop.f32.mrb[64].mxu0 }
 0xc5e   : > { %2405 = vrot.lane.b32.xlu0 %v2302_v19, %s4684_s23  ;;  %v4366_v22 = vpop.f32.mrb[65].mxu0 }
 0xc5f   : > { %v2305_v23 = vpop.f32.mrb[66].mxu0 }
 0xc60   : > { %2407 = vrot.lane.b32.xlu1 %v2305_v23, %s4684_s23  ;;  %v4367_v24 = vpop.f32.mrb[67].mxu0 }
 0xc65   : > { %v2310_v25 = vpop.f32.mrb[68].mxu0 }
 0xc66   : > { %v4370_v30 = vpop.f32.mrb[69].mxu0  ;;  %2432 = vrot.lane.b32.xlu0 %v2310_v25, %s4685_s29 }
 0xc67   : > { %v2313_v58 = vpop.f32.mrb[70].mxu0 }
 0xc68   : > { %v4371_v1 = vpop.f32.mrb[71].mxu0  ;;  %2434 = vrot.lane.b32.xlu1 %v2313_v58, %s4685_s29 }
 0xc6d   : > { %v2318_v33 = vpop.f32.mrb[72].mxu0 }
 0xc6e   : > { %2378 = vrot.lane.b32.xlu0 %v2318_v33, %s6263_s25  ;;  %v4374_v31 = vpop.f32.mrb[73].mxu0 }
 0xc6f   : > { %v2321_v34 = vpop.f32.mrb[74].mxu0 }
 0xc70   : > { %2380 = vrot.lane.b32.xlu1 %v2321_v34, %s6263_s25  ;;  %v4375_v36 = vpop.f32.mrb[75].mxu0 }
 0xc71   : > { %v5814_v36 = vsel %vm2165_vm11, 1.0, %v4674_v11  ;;  %vm6416_vm11 = vcmask 130048  }
 0xc75   : > { %v2326_v26 = vpop.f32.mrb[76].mxu0 }
 0xc76   : > { %v4378_v37 = vpop.f32.mrb[77].mxu0 }
 0xc77   : > { %v5789_v39 = vpop.f32.mrb[78].mxu0 }
 0xc78   : > { %v4379_v41 = vpop.f32.mrb[79].mxu0 }
 0xc7d   : > { %v2334_v42 = vpop.f32.mrb[80].mxu0 }
 0xc7e   : > { %2443 = vrot.lane.b32.xlu0 %v2334_v42, %s6261_s26  ;;  %v4382_v43 = vpop.f32.mrb[81].mxu0 }
 0xc7f   : > { %v2337_v60 = vpop.f32.mrb[82].mxu0 }
 0xc80   : > { %2445 = vrot.lane.b32.xlu1 %v2337_v60, %s6261_s26  ;;  %v4383_v46 = vpop.f32.mrb[83].mxu0  ;;  %s6431_s26 = smov 123  }
 0xc85   : > { %v2342_v47 = vpop.f32.mrb[84].mxu0 }
 0xc86   : > { %2390 = vrot.lane.b32.xlu0 %v2342_v47, %s6259_s24  ;;  %v4386_v48 = vpop.f32.mrb[85].mxu0  ;;  %v5822_v47 = vsel %vm2167_vm14, 1.0, %v4674_v11  ;;  %vm6417_vm14 = vmmov %vm6416_vm11 }
 0xc87   : > { %v2345_v49 = vpop.f32.mrb[86].mxu0 }
 0xc88   : > { %2392 = vrot.lane.b32.xlu1 %v2345_v49, %s6259_s24  ;;  %v4387_v50 = vpop.f32.mrb[87].mxu0 }
 0xc8d   : > { %v2350_v51 = vpop.f32.mrb[88].mxu0 }
 0xc8e   : > { %2417 = vrot.lane.b32.xlu0 %v2350_v51, %s6257_s17  ;;  %v4390_v52 = vpop.f32.mrb[89].mxu0 }
 0xc8f   : > { %v2353_v38 = vpop.f32.mrb[90].mxu0 }
 0xc90   : > { %2419 = vrot.lane.b32.xlu1 %v2353_v38, %s6257_s17  ;;  %v4391_v27 = vpop.f32.mrb[91].mxu0  ;;  %s6469_s17 = smov 112  }
 0xc95   : > { %v2358_v32 = vpop.f32.mrb[92].mxu0 }
 0xc96   : > { %2455 = vrot.lane.b32.xlu0 %v2358_v32, %s6255_s22  ;;  %v4394_v29 = vpop.f32.mrb[93].mxu0 }
 0xc97   : > { %v2361_v53 = vpop.f32.mrb[94].mxu0 }
 0xc98   : > { %2457 = vrot.lane.b32.xlu1 %v2361_v53, %s6255_s22  ;;  %v4395_v57 = vpop.f32.mrb[95].mxu0 }
 0xcc8   : > { %v2368_v59 = vpop.permute.xlu0 %2367 }
 0xcc9   : > { %v2374_v56 = vsel %vm2373_vm15, 0.0, %v2368_v59 }
 0xcca   : > { %v2370_v61 = vpop.permute.xlu1 %2369 }
 0xccb   : > { %v2375_v55 = vsel %vm2373_vm15, 0.0, %v2370_v61 }
 0xcd0   : > { %v2406_v63 = vpop.permute.xlu0 %2405 }
 0xcd1   : > { %v2411_v15 = vsel %vm6411_vm7, 0.0, %v2406_v63  ;;  %vm2461_vm7 = vcmask 89088  }
 0xcd2   : > { %v2408_v2 = vpop.permute.xlu1 %2407  ;;  %v2413_v58 = vadd.f32 %v2411_v15, %v2326_v26 }
 0xcd3   : > { %v2412_v23 = vsel %vm6413_vm10, 0.0, %v2408_v2  ;;  %vm6418_vm10 = vmmov %vm6416_vm11 }
 0xcd4   : > { %v2414_v41 = vadd.f32 %v2412_v23, %v5789_v39 }
 0xcd8   : > { %v2433_v3 = vpop.permute.xlu0 %2432 }
 0xcd9   : > { %v2439_v31 = vsel %vm2438_vm4, 0.0, %v2433_v3 }
 0xcda   : > { %v2435_v4 = vpop.permute.xlu1 %2434 }
 0xcdb   : > { %v2440_v26 = vsel %vm2438_vm4, 0.0, %v2435_v4 }
 0xce0   : > { %v2379_v17 = vpop.permute.xlu0 %2378 }
 0xce1   : > { %v2384_v10 = vsel %vm6410_vm12, 0.0, %v2379_v17  ;;  %vm6414_vm12 = vcmask 121856  }
 0xce2   : > { %v2381_v18 = vpop.permute.xlu1 %2380  ;;  %v2386_v19 = vadd.f32 %v2384_v10, %v2374_v56 }
 0xce3   : > { %v2385_v16 = vsel %vm6412_vm6, 0.0, %v2381_v18  ;;  %vm6415_vm6 = vmmov %vm6414_vm12 }
 0xce4   : > { %v2387_v1 = vadd.f32 %v2385_v16, %v2375_v55 }
 0xcf0   : > { %v2444_v6 = vpop.permute.xlu0 %2443 }
 0xcf1   : > { %v2449_v24 = vsel %vm6414_vm12, %v2444_v6, 0.0  ;;  %vm6419_vm12 = vmmov %vm6418_vm10 }
 0xcf2   : > { %v2446_v7 = vpop.permute.xlu1 %2445  ;;  %v2451_v42 = vadd.f32 %v2449_v24, %v2439_v31 }
 0xcf3   : > { %v2450_v34 = vsel %vm6415_vm6, %v2446_v7, 0.0  ;;  %vm6420_vm6 = vmmov %vm6418_vm10 }
 0xcf4   : > { %v2452_v49 = vadd.f32 %v2450_v34, %v2440_v26  ;;  %v4590_v26 = vld [vmem:[%s6207_s6 + $0x18] sm:$0xff]  }
 0xcf8   : > { %v2391_v8 = vpop.permute.xlu0 %2390 }
 0xcf9   : > { %v2397_v54 = vsel %vm2396_vm13, %v2391_v8, 0.0 }
 0xcfa   : > { %v2393_v9 = vpop.permute.xlu1 %2392  ;;  %v2399_v33 = vadd.f32 %v2397_v54, %v2386_v19 }
 0xcfb   : > { %v2398_v25 = vsel %vm2396_vm13, %v2393_v9, 0.0 }
 0xcfc   : > { %v2400_v43 = vadd.f32 %v2398_v25, %v2387_v1  ;;  %v2401_v50 = vmul.f32 %v2399_v33, %v5814_v36 }
 0xcfe   : > { %v2402_v27 = vmul.f32 %v2400_v43, %v5814_v36  ;;  %v4587_v43 = vld [vmem:[%s6207_s6] sm:$0xff]  }
 0xd00   : > { %v2418_v62 = vpop.permute.xlu0 %2417 }
 0xd01   : > { %v2424_v30 = vsel %vm2423_vm5, %v2418_v62, 0.0 }
 0xd02   : > { %v2420_v22 = vpop.permute.xlu1 %2419  ;;  %v2426_v60 = vadd.f32 %v2424_v30, %v2413_v58 }
 0xd03   : > { %v2425_v37 = vsel %vm2423_vm5, %v2420_v22, 0.0 }
 0xd04   : > { %v2427_v51 = vadd.f32 %v2425_v37, %v2414_v41  ;;  %v2428_v32 = vadd.f32 %v2426_v60, %v2401_v50  ;;  %v4588_v60 = vld [vmem:[%s6207_s6 + $0x8] sm:$0xff]   ;;  %v4593_v50 = vld [vmem:[%s6207_s6 + $0x30] sm:$0xff]  }
 0xd06   : > { %v2429_v57 = vadd.f32 %v2427_v51, %v2402_v27  ;;  %v4594_v51 = vld [vmem:[%s6207_s6 + $0x38] sm:$0xff]  }
 0xd08   : > { %v2456_v46 = vpop.permute.xlu0 %2455 }
 0xd09   : > { %v2462_v48 = vsel %vm2461_vm7, %v2456_v46, 0.0  ;;  %v4589_v46 = vld [vmem:[%s6207_s6 + $0x10] sm:$0xff]  }
 0xd0a   : > { %v2464_v52 = vadd.f32 %v2462_v48, %v2451_v42  ;;  %v2458_v38 = vpop.permute.xlu1 %2457  ;;  %v4591_v48 = vld [vmem:[%s6207_s6 + $0x20] sm:$0xff]  }
 0xd0b   : > { %v2463_v39 = vsel %vm2461_vm7, %v2458_v38, 0.0 }
 0xd0c   : > { %v2466_v29 = vmul.f32 %v2464_v52, %v5822_v47  ;;  %v2465_v53 = vadd.f32 %v2463_v39, %v2452_v49  ;;  %v4592_v49 = vld [vmem:[%s6207_s6 + $0x28] sm:$0xff]   ;;  %v4595_v52 = vld [vmem:[%s6207_s6 + $0x40] sm:$0xff]  }
 0xd0e   : > { %v2468_v28 = vadd.f32 %v2466_v29, %v2428_v32  ;;  %v2467_v59 = vmul.f32 %v2465_v53, %v5822_v47 }
 0xd10   : > { %v2469_v61 = vadd.f32 %v2467_v59, %v2429_v57  ;;  %v2470_v63 = vsel %vm6416_vm11, %v2468_v28, 0.0  ;;  %v2478_v2 = vmul.f32 %v2468_v28, %v2468_v28  ;;  %vm6421_vm11 = vmmov %vm6420_vm6 }
 0xd11   : > { %2471 = vadd.xlane.f32.xlu0 %v2470_v63 }
 0xd12   : > { %v2473_v3 = vsel %vm6417_vm14, %v2469_v61, 0.0  ;;  %v2480_v4 = vsel %vm6418_vm10, %v2478_v2, 0.0  ;;  %v2479_v17 = vmul.f32 %v2469_v61, %v2469_v61  ;;  %vm6422_vm14 = vmmov %vm6420_vm6 }
 0xd13   : > { %2474 = vadd.xlane.f32.xlu1 %v2473_v3  ;;  %vm6423_vm10 = vmmov %vm6420_vm6 }
 0xd14   : > { %v2483_v18 = vsel %vm6419_vm12, %v2479_v17, 0.0  ;;  %vm6424_vm12 = vmmov %vm6420_vm6 }
 0xd15   : > { %2481 = vadd.xlane.f32.xlu0 %v2480_v4 }
 0xd19   : > { %2484 = vadd.xlane.f32.xlu0 %v2483_v18 }
 0xd9e   : > { %v2472_v6 = vpop.xlane.xlu0 %2471 }
 0xd9f   : > { %v2476_v7 = vmul.f32 0.0625, %v2472_v6 }
 0xda0   : > { %v2475_v8 = vpop.xlane.xlu1 %2474 }
 0xda1   : > { %v2488_v10 = vmul.f32 %v2476_v7, %v2476_v7  ;;  %v2477_v62 = vmul.f32 0.0625, %v2475_v8  ;;  %v2494_v58 = vsub.f32 %v2468_v28, %v2476_v7 }
 0xda2   : > { %v2482_v9 = vpop.xlane.xlu0 %2481 }
 0xda3   : > { %v2486_v56 = vmul.f32 0.0625, %v2482_v9  ;;  %v2489_v54 = vmul.f32 %v2477_v62, %v2477_v62  ;;  %v2495_v1 = vsub.f32 %v2469_v61, %v2477_v62 }
 0xda5   : > { %v2490_v15 = vsub.f32 %v2486_v56, %v2488_v10 }
 0xda6   : > { %v2485_v16 = vpop.xlane.xlu0 %2484 }
 0xda7   : > { %v2492_v55 = vmax.f32 %v2490_v15, 0.0  ;;  %v2487_v19 = vmul.f32 0.0625, %v2485_v16 }
 0xda9   : > { %v2496_v22 = vadd.f32 1e-05, %v2492_v55  ;;  %v2491_v23 = vsub.f32 %v2487_v19, %v2489_v54 }
 0xdab   : > { %4641 = vrsqrt.f32 %v2496_v22  ;;  %v2493_v24 = vmax.f32 %v2491_v23, 0.0 }
 0xdad   : > { %v2497_v25 = vadd.f32 1e-05, %v2493_v24 }
 0xdaf   : > { %4643 = vrsqrt.f32 %v2497_v25 }
 0xdb5   : > { %v4642_v30 = vpop.eup %4641 }
 0xdb6   : > { %v2500_v33 = vmul.f32 %v4642_v30, %v2494_v58 }
 0xdb8   : > { %v2502_v37 = vmax.f32 %v2500_v33, 0.0 }
 0xdb9   : > { %v4644_v31 = vpop.eup %4643 }
 0xdba   : > { %v2501_v34 = vmul.f32 %v4644_v31, %v2495_v1 }
 0xdbc   : > { %v2503_v41 = vmax.f32 %v2501_v34, 0.0 }
 0xdbe   : > { %v2522_v42 = vpack.c.bf16 %v2503_v41, %v2502_v37 }
 0xdc0   : > { %4397 = vmatpush3.bf16.msra.mxu1 %v2522_v42 }
 0xdc1   : > { %4440 = vmatprep.subr.bf16.mxu1 %v4674_v11 }
 0xdc3   : > { %4399 = vmatmul.mubr.msk.bf16.vlgmr.msra.gmra.mrb[60].mxu1 %vm6420_vm6, %v4587_v43 }
 0xdc4   : > { %4402 = vmatprep.mubr.msk.bf16.mxu1 %vm4676_vm1, %v4674_v11 }
 0xdcb   : > { %4403 = vmatmul.mubr.msk.bf16.gmra.mrb[64].mxu1 %vm6421_vm11, %v4588_v60  ;;  %vm6425_vm11 = vmmov %vm6420_vm6 }
 0xdcc   : > { %4406 = vmatprep.mubr.msk.bf16.mxu1 %vm4676_vm1, %v4674_v11 }
 0xdd3   : > { %4407 = vmatmul.mubr.msk.bf16.gmra.mrb[68].mxu1 %vm6422_vm14, %v4589_v46  ;;  %vm6426_vm14 = vmmov %vm6420_vm6 }
 0xdd4   : > { %4410 = vmatprep.mubr.msk.bf16.mxu1 %vm4676_vm1, %v4674_v11 }
 0xddb   : > { %4411 = vmatmul.mubr.msk.bf16.gmra.mrb[72].mxu1 %vm6423_vm10, %v4590_v26  ;;  %vm6427_vm10 = vmmov %vm6420_vm6 }
 0xddc   : > { %4414 = vmatprep.mubr.msk.bf16.mxu1 %vm4676_vm1, %v4674_v11 }
 0xde3   : > { %4415 = vmatmul.mubr.msk.bf16.gmra.mrb[76].mxu1 %vm6424_vm12, %v4591_v48  ;;  %vm6432_vm12 = vcmask 7168  }
 0xde4   : > { %4418 = vmatprep.mubr.msk.bf16.mxu1 %vm4676_vm1, %v4674_v11 }
 0xdeb   : > { %4419 = vmatmul.mubr.msk.bf16.gmra.mrb[80].mxu1 %vm6420_vm6, %v4592_v49  ;;  %vm6433_vm6 = vcmask 31744  }
 0xdec   : > { %4422 = vmatprep.mubr.msk.bf16.mxu1 %vm4676_vm1, %v4674_v11 }
 0xdf3   : > { %4423 = vmatmul.mubr.msk.bf16.gmra.mrb[84].mxu1 %vm6425_vm11, %v4593_v50  ;;  %vm6434_vm11 = vmmov %vm6432_vm12 }
 0xdf4   : > { %4426 = vmatprep.mubr.msk.bf16.mxu1 %vm4676_vm1, %v4674_v11 }
 0xdfb   : > { %4427 = vmatmul.mubr.msk.bf16.gmra.mrb[88].mxu1 %vm6426_vm14, %v4594_v51  ;;  %vm6435_vm14 = vmmov %vm6433_vm6 }
 0xdfc   : > { %4430 = vmatprep.mubr.msk.bf16.mxu1 %vm4676_vm1, %v4674_v11 }
 0xe03   : > { %4431 = vmatmul.mubr.msk.bf16.gmra.mrb[92].mxu1 %vm6427_vm10, %v4595_v52  ;;  %vm6436_vm10 = vcmask 121856  }
 0xe04   : > { %4444 = vmatprep.mubr.msk.bf16.mxu1 %vm4676_vm1, %v4674_v11 }
 0xe96   : > { %v2629_v38 = vpop.f32.mrb[60].mxu1 }
 0xe97   : > { %v4400_v39 = vpop.f32.mrb[61].mxu1  ;;  %2702 = vrot.lane.b32.xlu1 %v2629_v38, %s4683_s16 }
 0xe98   : > { %v2632_v27 = vpop.f32.mrb[62].mxu1 }
 0xe99   : > { %v4401_v32 = vpop.f32.mrb[63].mxu1  ;;  %2704 = vrot.lane.b32.xlu0 %v2632_v27, %s4683_s16  ;;  %s6428_s16 = smov 127  }
 0xe9e   : > { %v2637_v29 = vpop.f32.mrb[64].mxu1 }
 0xe9f   : > { %2738 = vrot.lane.b32.xlu0 %v2637_v29, %s4684_s23  ;;  %v4404_v53 = vpop.f32.mrb[65].mxu1 }
 0xea0   : > { %v2640_v57 = vpop.f32.mrb[66].mxu1 }
 0xea1   : > { %2740 = vrot.lane.b32.xlu1 %v2640_v57, %s4684_s23  ;;  %v4405_v28 = vpop.f32.mrb[67].mxu1  ;;  %s6429_s23 = smov 125  }
 0xea6   : > { %v2645_v59 = vpop.f32.mrb[68].mxu1 }
 0xea7   : > { %v4408_v61 = vpop.f32.mrb[69].mxu1  ;;  %2764 = vrot.lane.b32.xlu0 %v2645_v59, %s4685_s29 }
 0xea8   : > { %v2648_v63 = vpop.f32.mrb[70].mxu1 }
 0xea9   : > { %v4409_v2 = vpop.f32.mrb[71].mxu1  ;;  %2766 = vrot.lane.b32.xlu1 %v2648_v63, %s4685_s29  ;;  %s6430_s29 = smov 124  }
 0xeae   : > { %v2653_v3 = vpop.f32.mrb[72].mxu1 }
 0xeaf   : > { %2712 = vrot.lane.b32.xlu1 %v2653_v3, %s6263_s25  ;;  %v4412_v4 = vpop.f32.mrb[73].mxu1 }
 0xeb0   : > { %v2656_v17 = vpop.f32.mrb[74].mxu1 }
 0xeb1   : > { %v4413_v18 = vpop.f32.mrb[75].mxu1 }
 0xeb3   : > { %2714 = vrot.lane.b32.xlu1 %v2656_v17, %s6263_s25 }
 0xeb6   : > { %v2661_v6 = vpop.f32.mrb[76].mxu1 }
 0xeb7   : > { %v4416_v7 = vpop.f32.mrb[77].mxu1 }
 0xeb8   : > { %v2664_v8 = vpop.f32.mrb[78].mxu1 }
 0xeb9   : > { %v4417_v9 = vpop.f32.mrb[79].mxu1 }
 0xebe   : > { %v2669_v10 = vpop.f32.mrb[80].mxu1 }
 0xebf   : > { %2774 = vrot.lane.b32.xlu0 %v2669_v10, %s6428_s16  ;;  %v4420_v62 = vpop.f32.mrb[81].mxu1 }
 0xec0   : > { %v2672_v56 = vpop.f32.mrb[82].mxu1 }
 0xec1   : > { %2776 = vrot.lane.b32.xlu1 %v2672_v56, %s6428_s16  ;;  %v4421_v15 = vpop.f32.mrb[83].mxu1 }
 0xec6   : > { %v2677_v16 = vpop.f32.mrb[84].mxu1 }
 0xec7   : > { %2724 = vrot.lane.b32.xlu0 %v2677_v16, %s6429_s23  ;;  %v4424_v54 = vpop.f32.mrb[85].mxu1 }
 0xec8   : > { %v2680_v55 = vpop.f32.mrb[86].mxu1 }
 0xec9   : > { %2726 = vrot.lane.b32.xlu1 %v2680_v55, %s6429_s23  ;;  %v4425_v19 = vpop.f32.mrb[87].mxu1  ;;  %s6444_s23 = smov 8  }
 0xece   : > { %v2685_v22 = vpop.f32.mrb[88].mxu1 }
 0xecf   : > { %2750 = vrot.lane.b32.xlu0 %v2685_v22, %s6430_s29  ;;  %v4428_v23 = vpop.f32.mrb[89].mxu1 }
 0xed0   : > { %v2688_v24 = vpop.f32.mrb[90].mxu1 }
 0xed1   : > { %2752 = vrot.lane.b32.xlu1 %v2688_v24, %s6430_s29  ;;  %v4429_v25 = vpop.f32.mrb[91].mxu1  ;;  %s6445_s29 = smov 7  }
 0xed6   : > { %v2693_v30 = vpop.f32.mrb[92].mxu1 }
 0xed7   : > { %2786 = vrot.lane.b32.xlu0 %v2693_v30, %s6431_s26  ;;  %v4432_v58 = vpop.f32.mrb[93].mxu1 }
 0xed8   : > { %v2696_v1 = vpop.f32.mrb[94].mxu1 }
 0xed9   : > { %2788 = vrot.lane.b32.xlu1 %v2696_v1, %s6431_s26  ;;  %v4433_v33 = vpop.f32.mrb[95].mxu1  ;;  %s6446_s26 = smov 121  }
 0xf09   : > { %v2703_v31 = vpop.permute.xlu1 %2702 }
 0xf0a   : > { %v2708_v38 = vsel %vm2373_vm15, 0.0, %v2703_v31 }
 0xf0b   : > { %v2705_v37 = vpop.permute.xlu0 %2704 }
 0xf0c   : > { %v2709_v29 = vsel %vm2373_vm15, 0.0, %v2705_v37  ;;  %vm6438_vm15 = vcmask 130048  }
 0xf11   : > { %v2739_v42 = vpop.permute.xlu0 %2738 }
 0xf12   : > { %v2744_v39 = vsel %vm6433_vm6, 0.0, %v2739_v42  ;;  %vm2921_vm6 = vcmask 261120  }
 0xf13   : > { %v2741_v34 = vpop.permute.xlu1 %2740  ;;  %v2746_v2 = vadd.f32 %v2744_v39, %v2661_v6 }
 0xf14   : > { %v2745_v28 = vsel %vm6435_vm14, 0.0, %v2741_v34  ;;  %vm6447_vm14 = vcmask 465920  }
 0xf15   : > { %v2747_v9 = vadd.f32 %v2745_v28, %v2664_v8 }
 0xf19   : > { %v2765_v60 = vpop.permute.xlu0 %2764 }
 0xf1a   : > { %v2770_v17 = vsel %vm2438_vm4, 0.0, %v2765_v60 }
 0xf1b   : > { %v2767_v41 = vpop.permute.xlu1 %2766 }
 0xf1c   : > { %v2771_v16 = vsel %vm2438_vm4, 0.0, %v2767_v41 }
 0xf21   : > { %v2713_v43 = vpop.permute.xlu1 %2712 }
 0xf22   : > { %v2718_v51 = vsel %vm6432_vm12, 0.0, %v2713_v43  ;;  %vm6437_vm12 = vmmov %vm6436_vm10 }
 0xf23   : > { %v2720_v53 = vadd.f32 %v2718_v51, %v2708_v38 }
 0xf25   : > { %v2715_v46 = vpop.permute.xlu1 %2714 }
 0xf26   : > { %v2719_v27 = vsel %vm6434_vm11, 0.0, %v2715_v46  ;;  %v4596_v46 = vld [vmem:[%s6212_s11] sm:$0xff]  }
 0xf27   : > { %v2721_v3 = vadd.f32 %v2719_v27, %v2709_v29  ;;  %4435 = vmatpush3.bf16.msra.mxu0 %v4596_v46 }
 0xf28   : > { %4464 = vmatprep.subr.bf16.mxu0 %v4674_v11 }
 0xf31   : > { %v2775_v26 = vpop.permute.xlu0 %2774 }
 0xf32   : > { %v2780_v59 = vsel %vm6436_vm10, %v2775_v26, 0.0  ;;  %vm6448_vm10 = vcmask 64512  }
 0xf33   : > { %v2777_v48 = vpop.permute.xlu1 %2776  ;;  %v2782_v10 = vadd.f32 %v2780_v59, %v2770_v17 }
 0xf34   : > { %v2781_v18 = vsel %vm6437_vm12, %v2777_v48, 0.0  ;;  %vm6449_vm12 = vcmask 56320  }
 0xf35   : > { %v2783_v55 = vadd.f32 %v2781_v18, %v2771_v16 }
 0xf39   : > { %v2725_v49 = vpop.permute.xlu0 %2724 }
 0xf3a   : > { %v2730_v32 = vsel %vm2396_vm13, %v2725_v49, 0.0 }
 0xf3b   : > { %v2727_v50 = vpop.permute.xlu1 %2726  ;;  %v2732_v4 = vadd.f32 %v2730_v32, %v2720_v53 }
 0xf3c   : > { %v2731_v61 = vsel %vm2396_vm13, %v2727_v50, 0.0  ;;  %vm6439_vm13 = vmmov %vm6438_vm15 }
 0xf3d   : > { %v2733_v62 = vadd.f32 %v2731_v61, %v2721_v3  ;;  %v2734_v6 = vmul.f32 %v2732_v4, %v5814_v36  ;;  %vm6440_vm4 = vmmov %vm6439_vm13 }
 0xf3f   : > { %v2735_v25 = vmul.f32 %v2733_v62, %v5814_v36 }
 0xf41   : > { %v2751_v52 = vpop.permute.xlu0 %2750 }
 0xf42   : > { %v2756_v63 = vsel %vm2423_vm5, %v2751_v52, 0.0 }
 0xf43   : > { %v2753_v57 = vpop.permute.xlu1 %2752  ;;  %v2758_v56 = vadd.f32 %v2756_v63, %v2746_v2 }
 0xf44   : > { %v2757_v7 = vsel %vm2423_vm5, %v2753_v57, 0.0  ;;  %vm6441_vm5 = vmmov %vm6440_vm4 }
 0xf45   : > { %v2759_v19 = vadd.f32 %v2757_v7, %v2747_v9  ;;  %v2760_v30 = vadd.f32 %v2758_v56, %v2734_v6  ;;  %v4598_v6 = vld [vmem:[%s6208_s7 + $0x8] sm:$0xff]  }
 0xf47   : > { %v2761_v1 = vadd.f32 %v2759_v19, %v2735_v25  ;;  %v4601_v19 = vld [vmem:[%s6208_s7 + $0x20] ss:$0 sps:$4 sm:$0xff]  }
 0xf49   : > { %v2787_v15 = vpop.permute.xlu0 %2786 }
 0xf4a   : > { %v2792_v54 = vsel %vm2461_vm7, %v2787_v15, 0.0 }
 0xf4b   : > { %v2794_v22 = vadd.f32 %v2792_v54, %v2782_v10  ;;  %v2789_v23 = vpop.permute.xlu1 %2788  ;;  %v2897_v54 = vpack.c.bf16 %v5706_v35, %v5704_v40  ;;  %v4599_v40 = vld [vmem:[%s6208_s7 + $0x10] sm:$0xff]   ;;  %v4600_v35 = vld [vmem:[%s6208_s7 + $0x18] sm:$0xff]  }
 0xf4c   : > { %v2793_v24 = vsel %vm2461_vm7, %v2789_v23, 0.0  ;;  %vm6442_vm7 = vmmov %vm6440_vm4 }
 0xf4d   : > { %v2796_v8 = vmul.f32 %v2794_v22, %v5822_v47  ;;  %v2795_v58 = vadd.f32 %v2793_v24, %v2783_v55  ;;  %v4597_v55 = vld [vmem:[%s6208_s7] sm:$0xff]  }
 0xf4f   : > { %v2798_v33 = vadd.f32 %v2796_v8, %v2760_v30  ;;  %v2797_v31 = vmul.f32 %v2795_v58, %v5822_v47 }
 0xf51   : > { %v2799_v34 = vadd.f32 %v2797_v31, %v2761_v1  ;;  %v2800_v37 = vsel %vm6438_vm15, %v2798_v33, 0.0  ;;  %v2808_v41 = vmul.f32 %v2798_v33, %v2798_v33  ;;  %vm6450_vm15 = vcmask 1043456  }
 0xf52   : > { %2801 = vadd.xlane.f32.xlu0 %v2800_v37 }
 0xf53   : > { %v2803_v42 = vsel %vm6439_vm13, %v2799_v34, 0.0  ;;  %v2810_v43 = vsel %vm6440_vm4, %v2808_v41, 0.0  ;;  %v2809_v60 = vmul.f32 %v2799_v34, %v2799_v34  ;;  %vm6451_vm13 = vmmov %vm6448_vm10 }
 0xf54   : > { %2804 = vadd.xlane.f32.xlu1 %v2803_v42  ;;  %vm6452_vm4 = vmmov %vm6448_vm10 }
 0xf55   : > { %v2813_v36 = vsel %vm6441_vm5, %v2809_v60, 0.0  ;;  %vm6453_vm5 = vmmov %vm6452_vm4 }
 0xf56   : > { %2811 = vadd.xlane.f32.xlu0 %v2810_v43 }
 0xf5a   : > { %2814 = vadd.xlane.f32.xlu0 %v2813_v36 }
 0xfdf   : > { %v2802_v47 = vpop.xlane.xlu0 %2801 }
 0xfe0   : > { %v2806_v26 = vmul.f32 0.0625, %v2802_v47 }
 0xfe1   : > { %v2805_v48 = vpop.xlane.xlu1 %2804 }
 0xfe2   : > { %v2818_v50 = vmul.f32 %v2806_v26, %v2806_v26  ;;  %v2807_v51 = vmul.f32 0.0625, %v2805_v48  ;;  %v2824_v63 = vsub.f32 %v2798_v33, %v2806_v26 }
 0xfe3   : > { %v2812_v49 = vpop.xlane.xlu0 %2811 }
 0xfe4   : > { %v2816_v52 = vmul.f32 0.0625, %v2812_v49  ;;  %v2819_v27 = vmul.f32 %v2807_v51, %v2807_v51  ;;  %v2825_v2 = vsub.f32 %v2799_v34, %v2807_v51 }
 0xfe6   : > { %v2820_v38 = vsub.f32 %v2816_v52, %v2818_v50 }
 0xfe7   : > { %v2815_v39 = vpop.xlane.xlu0 %2814 }
 0xfe8   : > { %v2822_v32 = vmax.f32 %v2820_v38, 0.0  ;;  %v2817_v29 = vmul.f32 0.0625, %v2815_v39 }
 0xfea   : > { %v2826_v53 = vadd.f32 1e-05, %v2822_v32  ;;  %v2821_v57 = vsub.f32 %v2817_v29, %v2819_v27 }
 0xfec   : > { %4645 = vrsqrt.f32 %v2826_v53  ;;  %v2823_v28 = vmax.f32 %v2821_v57, 0.0 }
 0xfee   : > { %v2827_v59 = vadd.f32 1e-05, %v2823_v28 }
 0xff0   : > { %4647 = vrsqrt.f32 %v2827_v59 }
 0xff6   : > { %v4646_v61 = vpop.eup %4645 }
 0xff7   : > { %v2830_v3 = vmul.f32 %v4646_v61, %v2824_v63 }
 0xff9   : > { %v2832_v18 = vmax.f32 %v2830_v3, 0.0 }
 0xffa   : > { %v4648_v4 = vpop.eup %4647 }
 0xffb   : > { %v2831_v17 = vmul.f32 %v4648_v4, %v2825_v2 }
 0xffd   : > { %v2833_v7 = vmax.f32 %v2831_v17, 0.0 }
 0xfff   : > { %v2834_v9 = vpack.c.bf16 %v2833_v7, %v2832_v18 }
0x1001   : > { %4437 = vmatmul.mubr.msk.bf16.vlgmr.msra.gmra.mrb[96].mxu0 %vm6442_vm7, %v2834_v9  ;;  %vm6454_vm7 = vmmov %vm6452_vm4 }
0x1002   : > { %4466 = vmatprep.mubr.msk.bf16.mxu0 %vm4676_vm1, %v4674_v11 }
0x10d4   : > { %v2880_v10 = vpop.f32.mrb[96].mxu0 }
0x10d5   : > { %v4438_v62 = vpop.f32.mrb[97].mxu0 }
0x10d6   : > { %v2883_v56 = vpop.f32.mrb[98].mxu0 }
0x10d7   : > { %v2896_v15 = vpack.c.bf16 %v2883_v56, %v2880_v10  ;;  %v4439_v16 = vpop.f32.mrb[99].mxu0 }
0x10d9   : > { %4441 = vmatpush3.bf16.msra.mxu1 %v2896_v15 }
0x10da   : > { %4442 = vmatprep.subr.bf16.mxu1 %v4674_v11 }
0x10dd   : > { %4443 = vmatpush3.bf16.msra.mxu1 %v2897_v54 }
0x10e0   : > { %4445 = vmatmul.mubr.msk.bf16.vlgmr.msra.gmra.mrb[96].mxu1 %vm2921_vm6, %v4597_v55 }
0x10e1   : > { %4448 = vmatprep.mubr.msk.bf16.mxu1 %vm4676_vm1, %v4674_v11 }
0x10e8   : > { %4449 = vmatmul.mubr.msk.bf16.gmra.mrb[100].mxu1 %vm2921_vm6, %v4598_v6 }
0x10e9   : > { %4452 = vmatprep.mubr.msk.bf16.mxu1 %vm4676_vm1, %v4674_v11 }
0x10f0   : > { %4453 = vmatmul.mubr.msk.bf16.gmra.mrb[104].mxu1 %vm2921_vm6, %v4599_v40 }
0x10f1   : > { %4456 = vmatprep.mubr.msk.bf16.mxu1 %vm4676_vm1, %v4674_v11 }
0x10f8   : > { %4457 = vmatmul.mubr.msk.bf16.gmra.mrb[108].mxu1 %vm2921_vm6, %v4600_v35 }
0x10f9   : > { %4460 = vmatprep.mubr.msk.bf16.mxu1 %vm4676_vm1, %v4674_v11 }
0x1100   : > { %4461 = vmatmul.mubr.msk.bf16.gmra.mrb[112].mxu1 %vm2921_vm6, %v4601_v19  ;;  %vm6455_vm6 = vmmov %vm6452_vm4 }
0x1101   : > { %3350 = vmatprep.mubr.bf16.mxu1 %v4665_v0 }
0x11b3   : > { %v2971_v22 = vpop.f32.mrb[96].mxu1 }
0x11b4   : > { %3010 = vrot.lane.b32.xlu1 %v2971_v22, %s6443_s28  ;;  %v4446_v23 = vpop.f32.mrb[97].mxu1 }
0x11b5   : > { %v2974_v24 = vpop.f32.mrb[98].mxu1 }
0x11b6   : > { %v4447_v25 = vpop.f32.mrb[99].mxu1 }
0x11b8   : > { %3028 = vrot.lane.b32.xlu1 %v2974_v24, %s6444_s23 }
0x11bb   : > { %v2979_v30 = vpop.f32.mrb[100].mxu1 }
0x11bc   : > { %v4450_v8 = vpop.f32.mrb[101].mxu1  ;;  %3041 = vrot.lane.b32.xlu0 %v2979_v30, %s6445_s29 }
0x11bd   : > { %v2982_v58 = vpop.f32.mrb[102].mxu1 }
0x11be   : > { %v4451_v1 = vpop.f32.mrb[103].mxu1 }
0x11c0   : > { %3015 = vrot.lane.b32.xlu0 %v2982_v58, %s6263_s25 }
0x11c3   : > { %v2987_v33 = vpop.f32.mrb[104].mxu1 }
0x11c4   : > { %v4454_v31 = vpop.f32.mrb[105].mxu1 }
0x11c5   : > { %v2990_v34 = vpop.f32.mrb[106].mxu1  ;;  %v4602_v31 = vld [vmem:[%s6209_s8] sm:$0xff]  }
0x11c6   : > { %3046 = vrot.lane.b32.xlu1 %v2990_v34, %s6428_s16  ;;  %v4455_v37 = vpop.f32.mrb[107].mxu1  ;;  %v4603_v34 = vld [vmem:[%s6209_s8 + $0x8] sm:$0xff]  }
0x11c7   : > { %v4604_v37 = vld [vmem:[%s6209_s8 + $0x10] sm:$0xff]  }
0x11cb   : > { %v2995_v41 = vpop.f32.mrb[108].mxu1 }
0x11cc   : > { %3021 = vrot.lane.b32.xlu1 %v2995_v41, %s6446_s26  ;;  %v4458_v42 = vpop.f32.mrb[109].mxu1  ;;  %v4605_v41 = vld [vmem:[%s6209_s8 + $0x18] sm:$0xff]  }
0x11cd   : > { %v2998_v43 = vpop.f32.mrb[110].mxu1  ;;  %v4606_v42 = vld [vmem:[%s6209_s8 + $0x20] ss:$0 sps:$4 sm:$0xff]  }
0x11ce   : > { %3034 = vrot.lane.b32.xlu0 %v2998_v43, %s6393_s21  ;;  %v4459_v60 = vpop.f32.mrb[111].mxu1 }
0x11d3   : > { %v3003_v36 = vpop.f32.mrb[112].mxu1 }
0x11d4   : > { %3052 = vrot.lane.b32.xlu1 %v3003_v36, %s6394_s27  ;;  %v4462_v46 = vpop.f32.mrb[113].mxu1 }
0x11d5   : > { %v3006_v47 = vpop.f32.mrb[114].mxu1 }
0x11d6   : > { %v4463_v26 = vpop.f32.mrb[115].mxu1 }
0x1226   : > { %v3011_v48 = vpop.permute.xlu1 %3010 }
0x1227   : > { %v3013_v27 = vsel %vm1569_vm9, 0.0, %v3011_v48 }
0x122a   : > { %v3029_v50 = vpop.permute.xlu1 %3028 }
0x122b   : > { %v3031_v57 = vsel %vm6448_vm10, 0.0, %v3029_v50  ;;  %vm6459_vm10 = vmmov %vm6449_vm12 }
0x122c   : > { %v3032_v63 = vadd.f32 %v3031_v57, %v2987_v33 }
0x122e   : > { %v3042_v49 = vpop.permute.xlu0 %3041 }
0x122f   : > { %v3044_v2 = vsel %vm6449_vm12, 0.0, %v3042_v49 }
0x1232   : > { %v3016_v52 = vpop.permute.xlu0 %3015 }
0x1233   : > { %v3018_v38 = vsel %vm6434_vm11, 0.0, %v3016_v52 }
0x1234   : > { %v3019_v29 = vadd.f32 %v3018_v38, %v3013_v27 }
0x1238   : > { %v3047_v51 = vpop.permute.xlu1 %3046 }
0x1239   : > { %v3049_v59 = vsel %vm1645_vm0, %v3047_v51, 0.0 }
0x123a   : > { %v3050_v3 = vadd.f32 %v3049_v59, %v3044_v2 }
0x123e   : > { %v3022_v39 = vpop.permute.xlu1 %3021 }
0x123f   : > { %v3024_v32 = vsel %vm6447_vm14, %v3022_v39, 0.0 }
0x1240   : > { %v3035_v53 = vpop.permute.xlu0 %3034  ;;  %v3025_v28 = vadd.f32 %v3024_v32, %v3019_v29 }
0x1241   : > { %v3037_v61 = vsel %vm1619_vm8, %v3035_v53, 0.0 }
0x1242   : > { %v3026_v4 = vmul.f32 %v3025_v28, %v5524_v5  ;;  %v3038_v17 = vadd.f32 %v3037_v61, %v3032_v63 }
0x1244   : > { %v3039_v10 = vadd.f32 %v3038_v17, %v3026_v4 }
0x1246   : > { %v3053_v18 = vpop.permute.xlu1 %3052 }
0x1247   : > { %v3055_v7 = vsel %vm1658_vm2, %v3053_v18, 0.0 }
0x1248   : > { %v3056_v9 = vadd.f32 %v3055_v7, %v3050_v3 }
0x124a   : > { %v3057_v62 = vmul.f32 %v3056_v9, %v5532_v14 }
0x124c   : > { %v3058_v56 = vadd.f32 %v3057_v62, %v3039_v10 }
0x124e   : > { %v3059_v15 = vsel %vm1667_vm3, %v3058_v56, 0.0  ;;  %v3063_v16 = vmul.f32 %v3058_v56, %v3058_v56 }
0x124f   : > { %3060 = vadd.xlane.f32.xlu0 %v3059_v15 }
0x1250   : > { %v3064_v54 = vsel %vm1667_vm3, %v3063_v16, 0.0 }
0x1251   : > { %3065 = vadd.xlane.f32.xlu1 %v3064_v54 }
0x12dc   : > { %v3061_v55 = vpop.xlane.xlu0 %3060 }
0x12dd   : > { %v3062_v6 = vmul.f32 0.015625, %v3061_v55 }
0x12de   : > { %v3066_v40 = vpop.xlane.xlu1 %3065 }
0x12df   : > { %v3068_v35 = vmul.f32 %v3062_v6, %v3062_v6  ;;  %v3067_v19 = vmul.f32 0.015625, %v3066_v40  ;;  %v3071_v25 = vsub.f32 %v3058_v56, %v3062_v6 }
0x12e1   : > { %v3069_v22 = vsub.f32 %v3067_v19, %v3068_v35 }
0x12e3   : > { %v3070_v23 = vmax.f32 %v3069_v22, 0.0 }
0x12e5   : > { %v3072_v24 = vadd.f32 1e-05, %v3070_v23 }
0x12e7   : > { %4649 = vrsqrt.f32 %v3072_v24 }
0x12f1   : > { %v4650_v30 = vpop.eup %4649 }
0x12f2   : > { %v3074_v8 = vmul.f32 %v4650_v30, %v3071_v25 }
0x12f4   : > { %v3075_v58 = vmax.f32 %v3074_v8, 0.0 }
0x12f6   : > { %v3085_v1 = vpack.c.bf16 %v3075_v58, %v3075_v58 }
0x12f8   : > { %v3125_v33 = vsel %vm6450_vm15, %v3085_v1, 0 }
0x12f9   : > { %4465 = vmatpush3.bf16.msra.mxu0 %v3125_v33  ;;  %v4609_v33 = vld [vmem:[%s6213_s12 + $0x4] ss:$8 sps:$4 sm:$0xff]  }
0x12fa   : > { %3318 = vmatprep.subr.bf16.mxu1 %v4609_v33 }
0x12fc   : > { %4467 = vmatmul.mubr.msk.bf16.vlgmr.msra.gmra.mrb[100].mxu0 %vm6451_vm13, %v4602_v31  ;;  %v4610_v31 = vld [vmem:[%s6213_s12 + $0x10] ss:$8 sps:$4 sm:$0xff]   ;;  %vm6472_vm13 = vcmask 138240  }
0x12fd   : > { %4470 = vmatprep.mubr.msk.bf16.mxu0 %vm4676_vm1, %v4674_v11 }
0x1304   : > { %4471 = vmatmul.mubr.msk.bf16.gmra.mrb[104].mxu0 %vm6452_vm4, %v4603_v34  ;;  %v4615_v34 = vld [vmem:[%s6213_s12 + $0x24] ss:$8 sps:$4 sm:$0xff]  }
0x1305   : > { %4474 = vmatprep.mubr.msk.bf16.mxu0 %vm4676_vm1, %v4674_v11 }
0x130c   : > { %4475 = vmatmul.mubr.msk.bf16.gmra.mrb[108].mxu0 %vm6453_vm5, %v4604_v37  ;;  %v4613_v37 = vld [vmem:[%s6213_s12 + $0x20] ss:$8 sps:$4 sm:$0xff]  }
0x130d   : > { %4478 = vmatprep.mubr.msk.bf16.mxu0 %vm4676_vm1, %v4674_v11 }
0x1314   : > { %4479 = vmatmul.mubr.msk.bf16.gmra.mrb[112].mxu0 %vm6454_vm7, %v4605_v41  ;;  %v4618_v41 = vld [vmem:[%s6213_s12 + $0x34] ss:$8 sps:$4 sm:$0xff]  }
0x1315   : > { %4482 = vmatprep.mubr.msk.bf16.mxu0 %vm4676_vm1, %v4674_v11  ;;  %vm6457_vm1 = vmmov %vm6434_vm11 }
0x1316   : > { %vm6458_vm11 = vmmov %vm6452_vm4 }
0x1317   : > { %vm6470_vm12 = vmmov %vm6457_vm1 }
0x1318   : > { %vm6471_vm15 = vmmov %vm6457_vm1 }
0x1319   : > { %vm6473_vm4 = vmmov %vm6472_vm13 }
0x131c   : > { %4483 = vmatmul.mubr.msk.bf16.gmra.mrb[116].mxu0 %vm6455_vm6, %v4606_v42  ;;  %v4616_v42 = vld [vmem:[%s6213_s12 + $0x30] ss:$8 sps:$4 sm:$0xff]   ;;  %vm6476_vm6 = vcmask 924672  }
0x131d   : > { %3440 = vmatprep.mubr.bf16.mxu0 %v4665_v0 }
0x13cf   : > { %v3161_v43 = vpop.f32.mrb[100].mxu0 }
0x13d0   : > { %v4468_v60 = vpop.f32.mrb[101].mxu0  ;;  %3200 = vrot.lane.b32.xlu0 %v3161_v43, %s6443_s28 }
0x13d1   : > { %v3164_v36 = vpop.f32.mrb[102].mxu0 }
0x13d2   : > { %3218 = vrot.lane.b32.xlu1 %v3164_v36, %s6444_s23  ;;  %v4469_v46 = vpop.f32.mrb[103].mxu0  ;;  %s6465_s23 = smov 17  }
0x13d7   : > { %v3169_v47 = vpop.f32.mrb[104].mxu0 }
0x13d8   : > { %v4472_v26 = vpop.f32.mrb[105].mxu0  ;;  %3231 = vrot.lane.b32.xlu0 %v3169_v47, %s6445_s29  ;;  %s6466_s29 = smov 16  }
0x13d9   : > { %v3172_v11 = vpop.f32.mrb[106].mxu0 }
0x13da   : > { %v4473_v48 = vpop.f32.mrb[107].mxu0  ;;  %3205 = vrot.lane.b32.xlu1 %v3172_v11, %s6456_s0 }
0x13df   : > { %v3177_v49 = vpop.f32.mrb[108].mxu0 }
0x13e0   : > { %v4476_v50 = vpop.f32.mrb[109].mxu0 }
0x13e1   : > { %v3180_v51 = vpop.f32.mrb[110].mxu0 }
0x13e2   : > { %v4477_v52 = vpop.f32.mrb[111].mxu0  ;;  %3236 = vrot.lane.b32.xlu1 %v3180_v51, %s6428_s16 }
0x13e7   : > { %v3185_v38 = vpop.f32.mrb[112].mxu0 }
0x13e8   : > { %3211 = vrot.lane.b32.xlu0 %v3185_v38, %s6446_s26  ;;  %v4480_v39 = vpop.f32.mrb[113].mxu0  ;;  %s6467_s26 = smov 15  }
0x13e9   : > { %v3188_v27 = vpop.f32.mrb[114].mxu0 }
0x13ea   : > { %v4481_v32 = vpop.f32.mrb[115].mxu0 }
0x13ec   : > { %3224 = vrot.lane.b32.xlu0 %v3188_v27, %s6393_s21 }
0x13ef   : > { %v3193_v29 = vpop.f32.mrb[116].mxu0 }
0x13f0   : > { %3242 = vrot.lane.b32.xlu1 %v3193_v29, %s6394_s27  ;;  %v4484_v53 = vpop.f32.mrb[117].mxu0 }
0x13f1   : > { %v3196_v57 = vpop.f32.mrb[118].mxu0 }
0x13f2   : > { %v4485_v28 = vpop.f32.mrb[119].mxu0 }
0x13f3   : > { %v4619_v28 = vld [vmem:[%s6210_s9] sm:$0xff]  }
0x1442   : > { %v3201_v59 = vpop.permute.xlu0 %3200 }
0x1443   : > { %v3203_v7 = vsel %vm1569_vm9, 0.0, %v3201_v59  ;;  %vm6460_vm9 = vcmask 130048   ;;  %v4620_v59 = vld [vmem:[%s6210_s9 + $0x8] sm:$0xff]  }
0x1444   : > { %v3219_v61 = vpop.permute.xlu1 %3218 }
0x1445   : > { %v3221_v18 = vsel %vm6458_vm11, 0.0, %v3219_v61  ;;  %v4623_v61 = vld [vmem:[%s6210_s9 + $0x20] ss:$0 sps:$4 sm:$0xff]   ;;  %vm6478_vm11 = vcmask 1039360  }
0x1446   : > { %v3222_v16 = vadd.f32 %v3221_v18, %v3177_v49 }
0x144a   : > { %v3232_v63 = vpop.permute.xlu0 %3231 }
0x144b   : > { %v3234_v55 = vsel %vm6459_vm10, 0.0, %v3232_v63  ;;  %vm6480_vm10 = vcmask 916480  }
0x144c   : > { %v3206_v2 = vpop.permute.xlu1 %3205 }
0x144d   : > { %v3208_v4 = vsel %vm6457_vm1, 0.0, %v3206_v2  ;;  %vm6477_vm1 = vmmov %vm6476_vm6 }
0x144e   : > { %v3209_v10 = vadd.f32 %v3208_v4, %v3203_v7 }
0x1454   : > { %v3237_v17 = vpop.permute.xlu1 %3236 }
0x1455   : > { %v3239_v56 = vsel %vm1645_vm0, %v3237_v17, 0.0  ;;  %vm6461_vm0 = vmmov %vm6460_vm9 }
0x1456   : > { %v3240_v6 = vadd.f32 %v3239_v56, %v3234_v55  ;;  %vm6474_vm5 = vmmov %vm6461_vm0 }
0x1457   : > { %vm6475_vm7 = vmmov %vm6461_vm0 }
0x145a   : > { %v3212_v3 = vpop.permute.xlu0 %3211 }
0x145b   : > { %v3214_v9 = vsel %vm6447_vm14, %v3212_v3, 0.0  ;;  %vm6479_vm14 = vmmov %vm6478_vm11 }
0x145c   : > { %v3215_v54 = vadd.f32 %v3214_v9, %v3209_v10 }
0x145e   : > { %v3225_v62 = vpop.permute.xlu0 %3224  ;;  %v3216_v22 = vmul.f32 %v3215_v54, %v5524_v5  ;;  %v4607_v5 = vld [vmem:[%s6213_s12] ss:$8 sps:$4 sm:$0xff]  }
0x145f   : > { %v3227_v15 = vsel %vm1619_vm8, %v3225_v62, 0.0  ;;  %3319 = vmatpush1.bf16.msra.mxu1 %v4607_v5  ;;  %vm6462_vm8 = vmmov %vm6461_vm0 }
0x1460   : > { %v3228_v40 = vadd.f32 %v3227_v15, %v3222_v16 }
0x1462   : > { %v3243_v35 = vpop.permute.xlu1 %3242  ;;  %v3229_v24 = vadd.f32 %v3228_v40, %v3216_v22 }
0x1463   : > { %v3245_v19 = vsel %vm1658_vm2, %v3243_v35, 0.0  ;;  %vm6463_vm2 = vmmov %vm6461_vm0 }
0x1464   : > { %v3246_v23 = vadd.f32 %v3245_v19, %v3240_v6 }
0x1466   : > { %v3247_v25 = vmul.f32 %v3246_v23, %v5532_v14  ;;  %v4612_v14 = vld [vmem:[%s6213_s12 + $0x14] ss:$8 sps:$4 sm:$0xff]  }
0x1467   : > { %3320 = vmatprep.subr.bf16.mxu1 %v4612_v14 }
0x1468   : > { %v3248_v30 = vadd.f32 %v3247_v25, %v3229_v24  ;;  %3321 = vmatpush1.bf16.msra.mxu1 %v4610_v31 }
0x1469   : > { %3322 = vmatprep.subr.bf16.mxu1 %v4615_v34 }
0x146a   : > { %v3249_v8 = vsel %vm1667_vm3, %v3248_v30, 0.0  ;;  %v3253_v58 = vmul.f32 %v3248_v30, %v3248_v30 }
0x146b   : > { %3250 = vadd.xlane.f32.xlu0 %v3249_v8 }
0x146c   : > { %v3254_v1 = vsel %vm1667_vm3, %v3253_v58, 0.0  ;;  %3323 = vmatpush1.bf16.msra.mxu1 %v4613_v37 }
0x146d   : > { %3255 = vadd.xlane.f32.xlu1 %v3254_v1  ;;  %3324 = vmatprep.subr.bf16.mxu1 %v4618_v41 }
0x1470   : > { %3325 = vmatpush1.bf16.msra.mxu1 %v4616_v42 }
0x14f8   : > { %v3251_v43 = vpop.xlane.xlu0 %3250 }
0x14f9   : > { %v3252_v60 = vmul.f32 0.015625, %v3251_v43 }
0x14fa   : > { %v3256_v36 = vpop.xlane.xlu1 %3255 }
0x14fb   : > { %v3258_v46 = vmul.f32 %v3252_v60, %v3252_v60  ;;  %v3257_v47 = vmul.f32 0.015625, %v3256_v36  ;;  %v3261_v49 = vsub.f32 %v3248_v30, %v3252_v60 }
0x14fd   : > { %v3259_v26 = vsub.f32 %v3257_v47, %v3258_v46 }
0x14ff   : > { %v3260_v11 = vmax.f32 %v3259_v26, 0.0 }
0x1501   : > { %v3262_v48 = vadd.f32 1e-05, %v3260_v11 }
0x1503   : > { %4651 = vrsqrt.f32 %v3262_v48 }
0x150d   : > { %v4652_v50 = vpop.eup %4651 }
0x150e   : > { %v3264_v51 = vmul.f32 %v4652_v50, %v3261_v49 }
0x1510   : > { %v3265_v52 = vmax.f32 %v3264_v51, 0.0 }
0x1512   : > { %v3266_v38 = vpack.c.bf16 %v3265_v52, %v3265_v52 }
0x1514   : > { %4160 = vmatmul.mubr.msk.bf16.vlgmr.msra.gmra.mrb[116].mxu1 %vm1667_vm3, %v3266_v38  ;;  %vm6464_vm3 = vmmov %vm6461_vm0 }
0x1515   : > { %3697 = vmatprep.mubr.bf16.mxu1 %v4665_v0 }
0x15e7   : > { %v3352_v39 = vpop.f32.mrb[116].mxu1 }
0x15e8   : > { %v3354_v27 = vpop.f32.mrb[117].mxu1  ;;  %v3368_v53 = vpack.c.bf16 %v5387_v44, %v3352_v39  ;;  %v4621_v44 = vld [vmem:[%s6210_s9 + $0x10] sm:$0xff]  }
0x15e9   : > { %v3369_v32 = vpack.c.bf16 %v5389_v45, %v3354_v27  ;;  %v3356_v29 = vpop.f32.mrb[118].mxu1  ;;  %v4622_v45 = vld [vmem:[%s6210_s9 + $0x18] sm:$0xff]  }
0x15ea   : > { %v3357_v57 = vpop.f32.mrb[119].mxu1 }
0x15eb   : > { %3408 = vmatprep.subr.bf16.mxu0 %v3369_v32 }
0x15ec   : > { %3409 = vmatpush1.bf16.msra.mxu0 %v3368_v53 }
0x15ef   : > { %4166 = vmatmul.mubr.msk.bf16.vlgmr.msra.gmra.mrb[120].mxu0 %vm6460_vm9, %v4619_v28  ;;  %vm6481_vm9 = vmmov %vm6480_vm10 }
0x15f0   : > { %3450 = vmatprep.mubr.bf16.mxu0 %v4665_v0 }
0x15f7   : > { %4167 = vmatmul.mubr.msk.bf16.gmra.mrb[124].mxu0 %vm6461_vm0, %v4620_v59  ;;  %vm6482_vm0 = vcmask 121856  }
0x15f8   : > { %3460 = vmatprep.mubr.bf16.mxu0 %v4665_v0 }
0x15ff   : > { %4168 = vmatmul.mubr.msk.bf16.gmra.mrb[128].mxu0 %vm6462_vm8, %v4621_v44  ;;  %vm6483_vm8 = vmmov %vm6482_vm0 }
0x1600   : > { %3470 = vmatprep.mubr.bf16.mxu0 %v4665_v0 }
0x1607   : > { %4169 = vmatmul.mubr.msk.bf16.gmra.mrb[132].mxu0 %vm6463_vm2, %v4622_v45  ;;  %vm6484_vm2 = vcmask 908288  }
0x1608   : > { %3480 = vmatprep.mubr.bf16.mxu0 %v4665_v0 }
0x160f   : > { %4170 = vmatmul.mubr.msk.bf16.gmra.mrb[136].mxu0 %vm6464_vm3, %v4623_v61  ;;  %vm6485_vm3 = vmmov %vm6484_vm2 }
0x1610   : > { %3917 = vmatprep.mubr.bf16.mxu0 %v4665_v0 }
0x16c2   : > { %v3442_v63 = vpop.f32.mrb[120].mxu0 }
0x16c3   : > { %3491 = vrot.lane.b32.xlu0 %v3442_v63, %s6465_s23  ;;  %v3444_v2 = vpop.f32.mrb[121].mxu0 }
0x16c4   : > { %3493 = vrot.lane.b32.xlu1 %v3444_v2, %s6465_s23  ;;  %v3446_v3 = vpop.f32.mrb[122].mxu0 }
0x16c5   : > { %v3448_v4 = vpop.f32.mrb[123].mxu0 }
0x16c7   : > { %3527 = vrot.lane.b32.xlu0 %v3446_v3, %s6466_s29 }
0x16c8   : > { %3529 = vrot.lane.b32.xlu1 %v3448_v4, %s6466_s29 }
0x16ca   : > { %v3452_v17 = vpop.f32.mrb[124].mxu0 }
0x16cb   : > { %v3454_v18 = vpop.f32.mrb[125].mxu0  ;;  %3553 = vrot.lane.b32.xlu0 %v3452_v17, %s6467_s26 }
0x16cc   : > { %3555 = vrot.lane.b32.xlu1 %v3454_v18, %s6467_s26  ;;  %v3456_v7 = vpop.f32.mrb[126].mxu0 }
0x16cd   : > { %v3458_v9 = vpop.f32.mrb[127].mxu0 }
0x16cf   : > { %3501 = vrot.lane.b32.xlu0 %v3456_v7, %s6456_s0 }
0x16d0   : > { %3503 = vrot.lane.b32.xlu1 %v3458_v9, %s6456_s0 }
0x16d2   : > { %v3462_v10 = vpop.f32.mrb[128].mxu0 }
0x16d3   : > { %v3464_v62 = vpop.f32.mrb[129].mxu0 }
0x16d4   : > { %v3466_v56 = vpop.f32.mrb[130].mxu0 }
0x16d5   : > { %v3468_v15 = vpop.f32.mrb[131].mxu0  ;;  %3563 = vrot.lane.b32.xlu0 %v3466_v56, %s6428_s16 }
0x16d6   : > { %3565 = vrot.lane.b32.xlu1 %v3468_v15, %s6428_s16 }
0x16da   : > { %v3472_v16 = vpop.f32.mrb[132].mxu0 }
0x16db   : > { %v3474_v54 = vpop.f32.mrb[133].mxu0  ;;  %3513 = vrot.lane.b32.xlu0 %v3472_v16, %s6468_s30 }
0x16dc   : > { %3515 = vrot.lane.b32.xlu1 %v3474_v54, %s6468_s30  ;;  %v3476_v55 = vpop.f32.mrb[134].mxu0 }
0x16dd   : > { %v3478_v6 = vpop.f32.mrb[135].mxu0 }
0x16df   : > { %3539 = vrot.lane.b32.xlu0 %v3476_v55, %s6469_s17 }
0x16e0   : > { %3541 = vrot.lane.b32.xlu1 %v3478_v6, %s6469_s17 }
0x16e2   : > { %v3482_v40 = vpop.f32.mrb[136].mxu0 }
0x16e3   : > { %v3484_v35 = vpop.f32.mrb[137].mxu0  ;;  %3575 = vrot.lane.b32.xlu0 %v3482_v40, %s6275_s20 }
0x16e4   : > { %3577 = vrot.lane.b32.xlu1 %v3484_v35, %s6275_s20  ;;  %v3486_v19 = vpop.f32.mrb[138].mxu0 }
0x16e5   : > { %v3487_v22 = vpop.f32.mrb[139].mxu0 }
0x1735   : > { %v3492_v23 = vpop.permute.xlu0 %3491 }
0x1736   : > { %v3494_v24 = vpop.permute.xlu1 %3493  ;;  %v3498_v42 = vsel %vm6472_vm13, 0.0, %v3492_v23  ;;  %vm6488_vm13 = vcmask 64512  }
0x1737   : > { %v3495_v43 = vsel %vm6473_vm4, %v3492_v23, %v3494_v24  ;;  %vm6489_vm4 = vmmov %vm6488_vm13 }
0x1739   : > { %v3528_v25 = vpop.permute.xlu0 %3527 }
0x173a   : > { %v3530_v30 = vpop.permute.xlu1 %3529  ;;  %v3534_v60 = vsel %vm6474_vm5, 0.0, %v3528_v25  ;;  %vm6490_vm5 = vmmov %vm6489_vm4 }
0x173b   : > { %v3531_v36 = vsel %vm6475_vm7, %v3528_v25, %v3530_v30  ;;  %v3535_v39 = vadd.f32 %v3534_v60, %v3462_v10  ;;  %v4625_v60 = vld [vmem:[%s6211_s10 + $0x8] sm:$0xff]   ;;  %vm6491_vm7 = vmmov %vm6489_vm4 }
0x173c   : > { %v3536_v27 = vadd.f32 %v3531_v36, %v3464_v62  ;;  %v4626_v36 = vld [vmem:[%s6211_s10 + $0x10] sm:$0xff]  }
0x173d   : > { %v3554_v8 = vpop.permute.xlu0 %3553 }
0x173e   : > { %v3556_v58 = vpop.permute.xlu1 %3555  ;;  %v3560_v53 = vsel %vm6482_vm0, 0.0, %v3554_v8 }
0x173f   : > { %v3557_v57 = vsel %vm6483_vm8, %v3554_v8, %v3556_v58  ;;  %vm6499_vm8 = vcmask 924672  }
0x1741   : > { %v3502_v1 = vpop.permute.xlu0 %3501 }
0x1742   : > { %v3504_v33 = vpop.permute.xlu1 %3503  ;;  %v3508_v37 = vsel %vm6470_vm12, 0.0, %v3502_v1  ;;  %vm6486_vm12 = vcmask 1043456  }
0x1743   : > { %v3505_v41 = vsel %vm6471_vm15, %v3502_v1, %v3504_v33  ;;  %v3509_v11 = vadd.f32 %v3508_v37, %v3498_v42  ;;  %vm6487_vm15 = vmmov %vm6486_vm12 }
0x1744   : > { %v3510_v48 = vadd.f32 %v3505_v41, %v3495_v43  ;;  %v4624_v43 = vld [vmem:[%s6211_s10] sm:$0xff]  }
0x1747   : > { %v3564_v5 = vpop.permute.xlu0 %3563 }
0x1748   : > { %v3566_v14 = vpop.permute.xlu1 %3565 }
0x1749   : > { %v3567_v50 = vsel %vm6478_vm11, %v3564_v5, %v3566_v14  ;;  %v3570_v51 = vsel %vm6479_vm14, %v3566_v14, 0.0  ;;  %vm6495_vm14 = vcmask 138240  }
0x174a   : > { %v3571_v59 = vadd.f32 %v3567_v50, %v3560_v53  ;;  %v3572_v44 = vadd.f32 %v3570_v51, %v3557_v57 }
0x174d   : > { %v3514_v31 = vpop.permute.xlu0 %3513 }
0x174e   : > { %v3516_v34 = vpop.permute.xlu1 %3515 }
0x174f   : > { %v3517_v46 = vsel %vm6476_vm6, %v3514_v31, %v3516_v34  ;;  %v3520_v47 = vsel %vm6477_vm1, %v3516_v34, 0.0  ;;  %vm6492_vm6 = vmmov %vm6489_vm4  ;;  %vm6493_vm1 = vcmask 7168  }
0x1750   : > { %v3521_v32 = vadd.f32 %v3517_v46, %v3509_v11  ;;  %v3522_v29 = vadd.f32 %v3520_v47, %v3510_v48  ;;  %v4627_v46 = vld [vmem:[%s6211_s10 + $0x18] sm:$0xff]   ;;  %v4628_v47 = vld [vmem:[%s6211_s10 + $0x20] ss:$0 sps:$4 sm:$0xff]   ;;  %vm6494_vm11 = vmmov %vm6493_vm1 }
0x1751   : > { %v3540_v26 = vpop.permute.xlu0 %3539 }
0x1752   : > { %v3542_v49 = vpop.permute.xlu1 %3541  ;;  %v3523_v4 = vmul.f32 %v3521_v32, %v4872_v12  ;;  %v3524_v17 = vmul.f32 %v3522_v29, %v4877_v13 }
0x1753   : > { %v3543_v52 = vsel %vm6480_vm10, %v3540_v26, %v3542_v49  ;;  %v3546_v38 = vsel %vm6481_vm9, %v3542_v49, 0.0  ;;  %vm6496_vm10 = vmmov %vm6495_vm14  ;;  %vm6497_vm9 = vcmask 130048  }
0x1754   : > { %v3547_v45 = vadd.f32 %v3543_v52, %v3535_v39  ;;  %v3548_v61 = vadd.f32 %v3546_v38, %v3536_v27  ;;  %vm6498_vm0 = vmmov %vm6497_vm9 }
0x1755   : > { %v3576_v28 = vpop.permute.xlu0 %3575 }
0x1756   : > { %v3578_v63 = vpop.permute.xlu1 %3577  ;;  %v3549_v9 = vadd.f32 %v3547_v45, %v3523_v4  ;;  %v3550_v10 = vadd.f32 %v3548_v61, %v3524_v17 }
0x1757   : > { %v3579_v2 = vsel %vm6484_vm2, %v3576_v28, %v3578_v63  ;;  %v3582_v3 = vsel %vm6485_vm3, %v3578_v63, 0.0  ;;  %vm6500_vm2 = vmmov %vm6499_vm8  ;;  %vm6501_vm3 = vcmask 1039360  }
0x1758   : > { %v3583_v18 = vadd.f32 %v3579_v2, %v3571_v59  ;;  %v3584_v7 = vadd.f32 %v3582_v3, %v3572_v44 }
0x175a   : > { %v3585_v62 = vmul.f32 %v3583_v18, %v4882_v20  ;;  %v3586_v56 = vmul.f32 %v3584_v7, %v4887_v21 }
0x175c   : > { %v3587_v15 = vadd.f32 %v3585_v62, %v3549_v9  ;;  %v3588_v16 = vadd.f32 %v3586_v56, %v3550_v10 }
0x175e   : > { %v3589_v54 = vadd.f32 %v3588_v16, %v3587_v15  ;;  %v3593_v55 = vmul.f32 %v3587_v15, %v3587_v15  ;;  %v3594_v6 = vmul.f32 %v3588_v16, %v3588_v16 }
0x1760   : > { %3590 = vadd.xlane.f32.xlu0 %v3589_v54  ;;  %v3595_v40 = vadd.f32 %v3594_v6, %v3593_v55 }
0x1762   : > { %3596 = vadd.xlane.f32.xlu1 %v3595_v40 }
0x17ed   : > { %v3591_v35 = vpop.xlane.xlu0 %3590 }
0x17ee   : > { %v3592_v19 = vmul.f32 0.00390625, %v3591_v35 }
0x17ef   : > { %v3597_v22 = vpop.xlane.xlu1 %3596 }
0x17f0   : > { %v3598_v23 = vmul.f32 0.00390625, %v3597_v22  ;;  %v3599_v24 = vmul.f32 %v3592_v19, %v3592_v19  ;;  %v3602_v58 = vsub.f32 %v3587_v15, %v3592_v19  ;;  %v3603_v1 = vsub.f32 %v3588_v16, %v3592_v19 }
0x17f2   : > { %v3600_v25 = vsub.f32 %v3598_v23, %v3599_v24 }
0x17f4   : > { %v3601_v30 = vmax.f32 %v3600_v25, 0.0 }
0x17f6   : > { %v3604_v8 = vadd.f32 1e-05, %v3601_v30 }
0x17f8   : > { %4653 = vrsqrt.f32 %v3604_v8 }
0x1802   : > { %v4654_v33 = vpop.eup %4653 }
0x1803   : > { %v3607_v5 = vmul.f32 %v4654_v33, %v3603_v1  ;;  %v3606_v14 = vmul.f32 %v4654_v33, %v3602_v58 }
0x1805   : > { %v3609_v31 = vmax.f32 %v3607_v5, 0.0  ;;  %v3608_v34 = vmax.f32 %v3606_v14, 0.0 }
0x1807   : > { %v3620_v37 = vpack.c.bf16 %v3609_v31, %v3609_v31  ;;  %v3619_v41 = vpack.c.bf16 %v3608_v34, %v3608_v34 }
0x1809   : > { %4176 = vmatprep.subr.msk.bf16.mxu1 %vm6486_vm12, %v3620_v37  ;;  %v3660_v42 = vsel %vm6487_vm15, %v3619_v41, 0  ;;  %vm6502_vm12 = vmmov %vm6501_vm3  ;;  %vm6503_vm15 = vcmask 916480  }
0x180a   : > { %3666 = vmatpush1.bf16.msra.mxu1 %v3660_v42 }
0x180d   : > { %4177 = vmatmul.mubr.msk.bf16.vlgmr.msra.gmra.mrb[120].mxu1 %vm6488_vm13, %v4624_v43  ;;  %vm6504_vm13 = vmmov %vm6503_vm15 }
0x180e   : > { %3707 = vmatprep.mubr.bf16.mxu1 %v4665_v0 }
0x1815   : > { %4178 = vmatmul.mubr.msk.bf16.gmra.mrb[124].mxu1 %vm6489_vm4, %v4625_v60  ;;  %vm6505_vm4 = vcmask 121856  }
0x1816   : > { %3717 = vmatprep.mubr.bf16.mxu1 %v4665_v0 }
0x181d   : > { %4179 = vmatmul.mubr.msk.bf16.gmra.mrb[128].mxu1 %vm6490_vm5, %v4626_v36  ;;  %vm6506_vm5 = vmmov %vm6505_vm4 }
0x181e   : > { %3727 = vmatprep.mubr.bf16.mxu1 %v4665_v0 }
0x1825   : > { %4180 = vmatmul.mubr.msk.bf16.gmra.mrb[132].mxu1 %vm6491_vm7, %v4627_v46  ;;  %vm6507_vm7 = vcmask 908288  }
0x1826   : > { %3737 = vmatprep.mubr.bf16.mxu1 %v4665_v0 }
0x182d   : > { %4181 = vmatmul.mubr.msk.bf16.gmra.mrb[136].mxu1 %vm6492_vm6, %v4628_v47  ;;  %vm6508_vm6 = vmmov %vm6507_vm7 }
0x18e0   : > { %v3699_v26 = vpop.f32.mrb[120].mxu1 }
0x18e1   : > { %3748 = vrot.lane.b32.xlu0 %v3699_v26, %s6465_s23  ;;  %v3701_v11 = vpop.f32.mrb[121].mxu1 }
0x18e2   : > { %3750 = vrot.lane.b32.xlu1 %v3701_v11, %s6465_s23  ;;  %v3703_v48 = vpop.f32.mrb[122].mxu1 }
0x18e3   : > { %v3705_v49 = vpop.f32.mrb[123].mxu1 }
0x18e5   : > { %3784 = vrot.lane.b32.xlu0 %v3703_v48, %s6466_s29 }
0x18e6   : > { %3786 = vrot.lane.b32.xlu1 %v3705_v49, %s6466_s29  ;;  %s6512_s29 = sshll.u32 %s6514_s19, 3 }
0x18e8   : > { %v3709_v50 = vpop.f32.mrb[124].mxu1 }
0x18e9   : > { %v3711_v0 = vpop.f32.mrb[125].mxu1  ;;  %3810 = vrot.lane.b32.xlu0 %v3709_v50, %s6467_s26 }
0x18ea   : > { %3812 = vrot.lane.b32.xlu1 %v3711_v0, %s6467_s26  ;;  %v3713_v51 = vpop.f32.mrb[126].mxu1 }
0x18eb   : > { %v3715_v52 = vpop.f32.mrb[127].mxu1 }
0x18ed   : > { %3758 = vrot.lane.b32.xlu0 %v3713_v51, %s6456_s0 }
0x18ee   : > { %3760 = vrot.lane.b32.xlu1 %v3715_v52, %s6456_s0 }
0x18f0   : > { %v3719_v38 = vpop.f32.mrb[128].mxu1 }
0x18f1   : > { %v3721_v39 = vpop.f32.mrb[129].mxu1 }
0x18f2   : > { %v3723_v27 = vpop.f32.mrb[130].mxu1 }
0x18f3   : > { %v3725_v32 = vpop.f32.mrb[131].mxu1  ;;  %3820 = vrot.lane.b32.xlu0 %v3723_v27, %s6428_s16 }
0x18f4   : > { %3822 = vrot.lane.b32.xlu1 %v3725_v32, %s6428_s16 }
0x18f8   : > { %v3729_v29 = vpop.f32.mrb[132].mxu1 }
0x18f9   : > { %v3731_v53 = vpop.f32.mrb[133].mxu1  ;;  %3770 = vrot.lane.b32.xlu0 %v3729_v29, %s6468_s30 }
0x18fa   : > { %3772 = vrot.lane.b32.xlu1 %v3731_v53, %s6468_s30  ;;  %v3733_v57 = vpop.f32.mrb[134].mxu1 }
0x18fb   : > { %v3735_v28 = vpop.f32.mrb[135].mxu1 }
0x18fd   : > { %3796 = vrot.lane.b32.xlu0 %v3733_v57, %s6469_s17 }
0x18fe   : > { %3798 = vrot.lane.b32.xlu1 %v3735_v28, %s6469_s17  ;;  %s494_s17 = scalar_lea.vmem %s6216_s15, %s6512_s29 }
0x1900   : > { %v3739_v59 = vpop.f32.mrb[136].mxu1 }
0x1901   : > { %v3741_v44 = vpop.f32.mrb[137].mxu1  ;;  %3832 = vrot.lane.b32.xlu0 %v3739_v59, %s6275_s20 }
0x1902   : > { %3834 = vrot.lane.b32.xlu1 %v3741_v44, %s6275_s20  ;;  %v3743_v45 = vpop.f32.mrb[138].mxu1 }
0x1903   : > { %v3744_v61 = vpop.f32.mrb[139].mxu1 }
0x1953   : > { %v3749_v63 = vpop.permute.xlu0 %3748 }
0x1954   : > { %v3751_v2 = vpop.permute.xlu1 %3750  ;;  %v3755_v55 = vsel %vm6495_vm14, 0.0, %v3749_v63  ;;  %vm6511_vm14 = vcmask 64512  }
0x1955   : > { %v3752_v6 = vsel %vm6496_vm10, %v3749_v63, %v3751_v2 }
0x1957   : > { %v3785_v3 = vpop.permute.xlu0 %3784 }
0x1958   : > { %v3787_v4 = vpop.permute.xlu1 %3786  ;;  %v3791_v40 = vsel %vm6497_vm9, 0.0, %v3785_v3 }
0x1959   : > { %v3788_v35 = vsel %vm6498_vm0, %v3785_v3, %v3787_v4  ;;  %v3792_v5 = vadd.f32 %v3791_v40, %v3719_v38 }
0x195a   : > { %v3793_v14 = vadd.f32 %v3788_v35, %v3721_v39 }
0x195b   : > { %v3811_v17 = vpop.permute.xlu0 %3810 }
0x195c   : > { %v3813_v18 = vpop.permute.xlu1 %3812  ;;  %v3817_v37 = vsel %vm6505_vm4, 0.0, %v3811_v17 }
0x195d   : > { %v3814_v41 = vsel %vm6506_vm5, %v3811_v17, %v3813_v18 }
0x195f   : > { %v3759_v7 = vpop.permute.xlu0 %3758 }
0x1960   : > { %v3761_v9 = vpop.permute.xlu1 %3760  ;;  %v3765_v16 = vsel %vm6493_vm1, 0.0, %v3759_v7  ;;  %vm6509_vm1 = vcmask 1043456  }
0x1961   : > { %v3762_v54 = vsel %vm6494_vm11, %v3759_v7, %v3761_v9  ;;  %v3766_v24 = vadd.f32 %v3765_v16, %v3755_v55  ;;  %vm6510_vm11 = vmmov %vm6509_vm1 }
0x1962   : > { %v3767_v25 = vadd.f32 %v3762_v54, %v3752_v6 }
0x1965   : > { %v3821_v10 = vpop.permute.xlu0 %3820 }
0x1966   : > { %v3823_v62 = vpop.permute.xlu1 %3822 }
0x1967   : > { %v3824_v8 = vsel %vm6501_vm3, %v3821_v10, %v3823_v62  ;;  %v3827_v58 = vsel %vm6502_vm12, %v3823_v62, 0.0 }
0x1968   : > { %v3828_v43 = vadd.f32 %v3824_v8, %v3817_v37  ;;  %v3829_v60 = vadd.f32 %v3827_v58, %v3814_v41 }
0x196b   : > { %v3771_v56 = vpop.permute.xlu0 %3770 }
0x196c   : > { %v3773_v15 = vpop.permute.xlu1 %3772 }
0x196d   : > { %v3774_v19 = vsel %vm6499_vm8, %v3771_v56, %v3773_v15  ;;  %v3777_v22 = vsel %vm6500_vm2, %v3773_v15, 0.0  ;;  %v3867_v15 = vld [vmem:[%s6214_s13] sm:$0x3] }
0x196e   : > { %v3778_v31 = vadd.f32 %v3774_v19, %v3766_v24  ;;  %v3779_v34 = vadd.f32 %v3777_v22, %v3767_v25 }
0x196f   : > { %v3797_v23 = vpop.permute.xlu0 %3796 }
0x1970   : > { %v3799_v30 = vpop.permute.xlu1 %3798  ;;  %v3780_v48 = vmul.f32 %v3778_v31, %v4872_v12  ;;  %v3781_v49 = vmul.f32 %v3779_v34, %v4877_v13  ;;  %v3870_v12 = vld [vmem:[%s6215_s14] sm:$0xf] }
0x1971   : > { %v3800_v1 = vsel %vm6503_vm15, %v3797_v23, %v3799_v30  ;;  %v3803_v33 = vsel %vm6504_vm13, %v3799_v30, 0.0 }
0x1972   : > { %v3804_v36 = vadd.f32 %v3800_v1, %v3792_v5  ;;  %v3805_v46 = vadd.f32 %v3803_v33, %v3793_v14 }
0x1973   : > { %v3833_v42 = vpop.permute.xlu0 %3832 }
0x1974   : > { %v3835_v47 = vpop.permute.xlu1 %3834  ;;  %v3806_v51 = vadd.f32 %v3804_v36, %v3780_v48  ;;  %v3807_v52 = vadd.f32 %v3805_v46, %v3781_v49 }
0x1975   : > { %v3836_v26 = vsel %vm6507_vm7, %v3833_v42, %v3835_v47  ;;  %v3839_v11 = vsel %vm6508_vm6, %v3835_v47, 0.0 }
0x1976   : > { %v3840_v50 = vadd.f32 %v3836_v26, %v3828_v43  ;;  %v3841_v0 = vadd.f32 %v3839_v11, %v3829_v60 }
0x1978   : > { %v3842_v38 = vmul.f32 %v3840_v50, %v4882_v20  ;;  %v3843_v39 = vmul.f32 %v3841_v0, %v4887_v21 }
0x197a   : > { %v3844_v27 = vadd.f32 %v3842_v38, %v3806_v51  ;;  %v3845_v32 = vadd.f32 %v3843_v39, %v3807_v52 }
0x197c   : > { %v3846_v29 = vadd.f32 %v3845_v32, %v3844_v27  ;;  %v3850_v53 = vmul.f32 %v3844_v27, %v3844_v27  ;;  %v3851_v57 = vmul.f32 %v3845_v32, %v3845_v32 }
0x197e   : > { %3847 = vadd.xlane.f32.xlu0 %v3846_v29  ;;  %v3852_v28 = vadd.f32 %v3851_v57, %v3850_v53 }
0x1980   : > { %3853 = vadd.xlane.f32.xlu1 %v3852_v28 }
0x1994   : > { %3873 = vperm.xlu0 %4548, %v3870_v12  }
0x1a0b   : > { %v3848_v13 = vpop.xlane.xlu0 %3847 }
0x1a0c   : > { %v3849_v59 = vmul.f32 0.00390625, %v3848_v13 }
0x1a0d   : > { %v3854_v44 = vpop.xlane.xlu1 %3853 }
0x1a0e   : > { %v3855_v45 = vmul.f32 0.00390625, %v3854_v44  ;;  %v3856_v20 = vmul.f32 %v3849_v59, %v3849_v59  ;;  %v3859_v2 = vsub.f32 %v3844_v27, %v3849_v59  ;;  %v3860_v3 = vsub.f32 %v3845_v32, %v3849_v59 }
0x1a10   : > { %v3857_v61 = vsub.f32 %v3855_v45, %v3856_v20 }
0x1a12   : > { %v3858_v21 = vmax.f32 %v3857_v61, 0.0 }
0x1a13   : > { %v3874_v16 = vpop.permute.xlu0 %3873 }
0x1a14   : > { %v3861_v63 = vadd.f32 1e-05, %v3858_v21 }
0x1a16   : > { %4655 = vrsqrt.f32 %v3861_v63 }
0x1a20   : > { %v4656_v4 = vpop.eup %4655 }
0x1a21   : > { %v3864_v17 = vmul.f32 %v4656_v4, %v3860_v3  ;;  %v3863_v18 = vmul.f32 %v4656_v4, %v3859_v2 }
0x1a23   : > { %v3866_v7 = vmax.f32 %v3864_v17, 0.0  ;;  %v3865_v9 = vmax.f32 %v3863_v18, 0.0 }
0x1a25   : > { %v3869_v10 = vpack.c.bf16 %v3866_v7, %v3866_v7  ;;  %v3868_v62 = vpack.c.bf16 %v3865_v9, %v3865_v9 }
0x1a27   : > { %4182 = vmatprep.subr.msk.bf16.mxu0 %vm6509_vm1, %v3869_v10  ;;  %v3880_v56 = vsel %vm6510_vm11, %v3868_v62, 0 }
0x1a28   : > { %3886 = vmatpush1.bf16.msra.mxu0 %v3880_v56 }
0x1a2b   : > { %4183 = vmatmul.mubr.msk.bf16.vlgmr.msra.gmra.mrb[140].mxu0 %vm6511_vm14, %v3867_v15 }
0x1afe   : > { %v3919_v54 = vpop.f32.mrb[140].mxu0 }
0x1aff   : > { %v3921_v55 = vpop.f32.mrb[141].mxu0  ;;  %v3920_v6 = vadd.f32 %v3919_v54, %v3874_v16 }
0x1b00   : > { %v3923_v40 = vpop.f32.mrb[142].mxu0  ;;  %v3922_v35 = vadd.f32 %v3921_v55, %v3874_v16 }
0x1b01   : > { %v3924_v19 = vpop.f32.mrb[143].mxu0 }
0x1b02   : > { %v3928_v22 = vcombine.low %v3920_v6, %v3922_v35 }
0x1b04   : > { %3930 = vst [vmem:[%s494_s17] sm:$0xff] %v3928_v22 }
0x1b05 PF: > { %s25_s18 = sadd.s32 1, %s4663_s18  }
0x1b06   : > { %p22_p4 = scmp.ge.s32.totalorder %s25_s18, 4  }
0x1b08   :  { %24 = sbr.rel (!%p22_p4) target bundleno = 2 (0x2), region = 110 }

</bundles_post_ra>
